<compile_context>
chip_gen: v7x
topology: tpu7x:2x2x1
jax: 0.10.0
libtpu: 0.0.40
codegen_flags: <defaults>
</compile_context>

<pallas_src>
import jax
import jax.numpy as jnp
from jax import lax
from jax.experimental import pallas as pl
from jax.experimental.pallas import tpu as pltpu

HIGHEST = jax.lax.Precision.HIGHEST   # only used by the pure-JAX reference


# ----------------------------------------------------------------------------
# Fused Pallas kernel (one batch element per grid step)
# ----------------------------------------------------------------------------
def _make_decoder_kernel(has_e, H, W):
    HW = H * W

    def kernel(*refs):
        x_ref = refs[0]                       # (1, Cx, H0*W0)  low-res input, NCHW-flat
        if has_e:
            e_ref = refs[1]                   # (1, Ce, H*W)    encoder skip, NCHW-flat
            rest = refs[2:]
        else:
            e_ref = None
            rest = refs[1:]
        (mup_ref,                              # (H0*W0, H*W) bf16  kron(Mh, Mw)^T
         ml_ref, mr_ref,                       # (1, H*W) f32       horizontal-border masks
         w1_ref, s1_ref, b1_ref,               # conv1: (Ch, 9*Cin) bf16, BN (Ch,1) f32
         w2_ref, s2_ref, b2_ref,               # conv2: (Cout, 9*Ch) bf16, BN (Cout,1) f32
         ws_ref,                               # (Cout, 1)  SpatialAttention2d squeeze
         wg1_ref, bg1_ref, wg2_ref, bg2_ref,   # GAB: (Cout,Cr),(1,Cr),(Cout,Cr),(Cout,1)
         o_ref,                                # (1, Cout, H*W)
         vp1_ref, vp2_ref, pat_ref) = rest     # VMEM scratch

        Cx = x_ref.shape[1]

        def conv3x3_bn_elu(vp_ref, w_ref, scale_ref, shift_ref):
            # vp_ref: (cin, (H+2)*W + 2) vertically zero-padded activation, flat pixels.
            # im2col: tap (a, b) of output pixel j = p*W+q lives at lane j + a*W + b.
            cin = vp_ref.shape[0]
            for a in range(3):
                for b in range(3):
                    tap = vp_ref[:, a * W + b: a * W + b + HW]       # (cin, H*W)
                    if b == 0:
                        tap = tap * ml_ref[...]                      # zero q == 0 wrap
                    elif b == 2:
                        tap = tap * mr_ref[...]                      # zero q == W-1 wrap
                    k = a * 3 + b
                    pat_ref[k * cin:(k + 1) * cin, :] = tap
            patches = pat_ref[0:9 * cin, :].astype(jnp.bfloat16)     # (9*cin, H*W)
            y = jnp.dot(w_ref[...], patches,                          # single K=9*cin matmul
                        preferred_element_type=jnp.float32)           # (cout, H*W) f32
            y = y * scale_ref[...] + shift_ref[...]                   # fused BatchNorm (eval)
            # ELU(alpha=1); exp(y)-1 is exact enough at f32 for this use.
            return jnp.where(y > 0.0, y, jnp.exp(y) - 1.0)

        # fresh zero borders every step (scratch is per-core; do not rely on step 0 only)
        vp1_ref[...] = jnp.zeros_like(vp1_ref)
        vp2_ref[...] = jnp.zeros_like(vp2_ref)

        # ---- bilinear x2 upsample (align_corners=True) as one matmul, + concat(e) ----
        ups = jnp.dot(x_ref[0].astype(jnp.bfloat16), mup_ref[...],
                      preferred_element_type=jnp.float32)             # (Cx, H*W) f32
        vp1_ref[0:Cx, W + 1:W + 1 + HW] = ups
        if has_e:
            vp1_ref[Cx:, W + 1:W + 1 + HW] = e_ref[0]                 # torch.cat dim=1

        # ---- conv1 -> conv2 (3x3, pad 1, BN eval, ELU) ----
        h = conv3x3_bn_elu(vp1_ref, w1_ref, s1_ref, b1_ref)           # (Ch, H*W)
        vp2_ref[:, W + 1:W + 1 + HW] = h
        y = conv3x3_bn_elu(vp2_ref, w2_ref, s2_ref, b2_ref)           # (Cout, H*W)

        # ---- SpatialAttention2d + GAB (channel attention), fused ----
        zs = jax.nn.sigmoid(jnp.sum(y * ws_ref[...], axis=0, keepdims=True))     # (1, HW)
        v = jnp.mean(y, axis=1, keepdims=True)                                   # (Cout, 1)
        h1 = jnp.maximum(jnp.sum(wg1_ref[...] * v, axis=0, keepdims=True)
                         + bg1_ref[...], 0.0)                                    # (1, Cr)
        zc = jax.nn.sigmoid(jnp.sum(wg2_ref[...] * h1, axis=1, keepdims=True)
                            + bg2_ref[...])                                      # (Cout, 1)
        o_ref[0] = (y * (zs + zc)).astype(o_ref.dtype)                # s_att + c_att

    return kernel


# ----------------------------------------------------------------------------
# Wrapper
# ----------------------------------------------------------------------------
def _interp_matrix(n_in, n_out):
    # Row i holds bilinear weights for output coord i, align_corners=True.
    if n_in == 1:
        return jnp.ones((n_out, 1), jnp.float32)
    src = jnp.arange(n_out, dtype=jnp.float32) * (n_in - 1) / (n_out - 1)
    i0 = jnp.clip(jnp.floor(src).astype(jnp.int32), 0, n_in - 2)
    frac = src - i0.astype(jnp.float32)
    return (jax.nn.one_hot(i0, n_in, dtype=jnp.float32) * (1.0 - frac)[:, None]
            + jax.nn.one_hot(i0 + 1, n_in, dtype=jnp.float32) * frac[:, None])


def _full_spec(a):
    nd = a.ndim
    return pl.BlockSpec(a.shape, lambda n, _nd=nd: (0,) * _nd)


def decoder_forward(params, x_nchw, e_nchw=None):
    N, Cx, H0, W0 = x_nchw.shape
    H, W = 2 * H0, 2 * W0
    HW = H * W
    has_e = e_nchw is not None
    Ce = e_nchw.shape[1] if has_e else 0
    Cin = Cx + Ce
    Ch = params['w1t'].shape[0]
    Cout = params['w2t'].shape[0]
    if has_e:
        assert e_nchw.shape[2] == H and e_nchw.shape[3] == W

    # x2 bilinear upsample folded into the kernel: one matmul with kron(Mh, Mw)^T.
    Mh = _interp_matrix(H0, H)
    Mw = _interp_matrix(W0, W)
    mup_t = jnp.kron(Mh, Mw).T.astype(jnp.bfloat16)                   # (H0*W0, H*W)

    # Lane masks zeroing the horizontally out-of-range taps of the im2col slices.
    q = jnp.arange(HW, dtype=jnp.int32) % W
    mask_l = (q != 0).astype(jnp.float32)[None, :]                    # for kw == 0
    mask_r = (q != W - 1).astype(jnp.float32)[None, :]                # for kw == 2

    inputs = [x_nchw.reshape(N, Cx, H0 * W0)]
    in_specs = [pl.BlockSpec((1, Cx, H0 * W0), lambda n: (n, 0, 0))]
    if has_e:
        inputs.append(e_nchw.reshape(N, Ce, HW))
        in_specs.append(pl.BlockSpec((1, Ce, HW), lambda n: (n, 0, 0)))

    shared = [mup_t, mask_l, mask_r,
              params['w1t'], params['bn1_scale'], params['bn1_shift'],
              params['w2t'], params['bn2_scale'], params['bn2_shift'],
              params['ws'], params['wg1t'], params['bg1'],
              params['wg2'], params['bg2']]
    inputs += shared
    in_specs += [_full_spec(a) for a in shared]

    out = pl.pallas_call(
        _make_decoder_kernel(has_e, H, W),
        out_shape=jax.ShapeDtypeStruct((N, Cout, HW), jnp.float32),
        grid=(N,),
        in_specs=in_specs,
        out_specs=pl.BlockSpec((1, Cout, HW), lambda n: (n, 0, 0)),
        scratch_shapes=[
            pltpu.VMEM((Cin, (H + 2) * W + 2), jnp.float32),          # padded conv1 input
            pltpu.VMEM((Ch, (H + 2) * W + 2), jnp.float32),           # padded conv2 input
            pltpu.VMEM((9 * max(Cin, Ch), HW), jnp.float32),          # im2col patch matrix
        ],
        compiler_params=pltpu.CompilerParams(dimension_semantics=("parallel",)),
    )(*inputs)
    return out.reshape(N, Cout, H, W)                                 # NCHW, no transpose


# ----------------------------------------------------------------------------
# Parameter construction (raw torch-layout params + kernel-layout params)
# ----------------------------------------------------------------------------
def init_params(key, in_channels, channels, out_channels, reduction=16):
    ks = jax.random.split(key, 16)
    cr = out_channels // reduction

    def nrm(k, shape, s):
        return jax.random.normal(k, shape, jnp.float32) * s

    raw = dict(
        w1=nrm(ks[0], (channels, in_channels, 3, 3), 0.05),
        g1=1.0 + nrm(ks[1], (channels,), 0.05), b1=nrm(ks[2], (channels,), 0.05),
        m1=nrm(ks[3], (channels,), 0.05),
        v1=jax.random.uniform(ks[4], (channels,), jnp.float32, 0.8, 1.2),
        w2=nrm(ks[5], (out_channels, channels, 3, 3), 0.05),
        g2=1.0 + nrm(ks[6], (out_channels,), 0.05), b2=nrm(ks[7], (out_channels,), 0.05),
        m2=nrm(ks[8], (out_channels,), 0.05),
        v2=jax.random.uniform(ks[9], (out_channels,), jnp.float32, 0.8, 1.2),
        ws=nrm(ks[10], (1, out_channels, 1, 1), 0.1),
        wg1=nrm(ks[11], (cr, out_channels, 1, 1), 0.2),
        bg1=nrm(ks[12], (cr,), 0.1),
        wg2=nrm(ks[13], (out_channels, cr, 1, 1), 0.2),
        bg2=nrm(ks[14], (out_channels,), 0.1),
    )
    eps = 1e-5
    s1 = raw['g1'] / jnp.sqrt(raw['v1'] + eps)
    s2 = raw['g2'] / jnp.sqrt(raw['v2'] + eps)

    def im2col_w(w):
        # (Cout, Cin, 3, 3) -> (Cout, 9*Cin) with K ordered (tap=kh*3+kw, cin); bf16.
        co, ci = w.shape[0], w.shape[1]
        return jnp.transpose(w, (0, 2, 3, 1)).reshape(co, 9 * ci).astype(jnp.bfloat16)

    params = dict(
        w1t=im2col_w(raw['w1']),
        bn1_scale=s1[:, None], bn1_shift=(raw['b1'] - raw['m1'] * s1)[:, None],
        w2t=im2col_w(raw['w2']),
        bn2_scale=s2[:, None], bn2_shift=(raw['b2'] - raw['m2'] * s2)[:, None],
        ws=raw['ws'][0, :, 0, 0][:, None],            # (Cout, 1)
        wg1t=jnp.transpose(raw['wg1'][:, :, 0, 0]),   # (Cout, Cr)  == W1^T
        bg1=raw['bg1'][None, :],                      # (1, Cr)
        wg2=raw['wg2'][:, :, 0, 0],                   # (Cout, Cr)
        bg2=raw['bg2'][:, None],                      # (Cout, 1)
    )
    return raw, params


# ----------------------------------------------------------------------------
# Pure-JAX reference (f32, HIGHEST precision) for correctness check
# ----------------------------------------------------------------------------
def _ref_conv_bn_elu(x, w, gamma, beta, mean, var):
    y = lax.conv_general_dilated(x, w, (1, 1), ((1, 1), (1, 1)),
                                 dimension_numbers=('NCHW', 'OIHW', 'NCHW'),
                                 precision=HIGHEST)
    scale = gamma / jnp.sqrt(var + 1e-5)
    y = y * scale[None, :, None, None] + (beta - mean * scale)[None, :, None, None]
    return jnp.where(y > 0, y, jnp.exp(y) - 1.0)


def reference_forward(raw, x, e=None):
    N, C, H, W = x.shape
    Mh = _interp_matrix(H, 2 * H)
    Mw = _interp_matrix(W, 2 * W)
    x = jnp.einsum('nchw,ph,qw->ncpq', x, Mh, Mw, precision=HIGHEST)
    if e is not None:
        x = jnp.concatenate([x, e], axis=1)
    x = _ref_conv_bn_elu(x, raw['w1'], raw['g1'], raw['b1'], raw['m1'], raw['v1'])
    x = _ref_conv_bn_elu(x, raw['w2'], raw['g2'], raw['b2'], raw['m2'], raw['v2'])
    zs = jax.nn.sigmoid(jnp.einsum('nchw,c->nhw', x, raw['ws'][0, :, 0, 0],
                                   precision=HIGHEST))[:, None, :, :]
    s = x * zs
    v = jnp.mean(x, axis=(2, 3))
    h1 = jax.nn.relu(jnp.einsum('nc,rc->nr', v, raw['wg1'][:, :, 0, 0],
                                precision=HIGHEST) + raw['bg1'])
    zc = jax.nn.sigmoid(jnp.einsum('nr,cr->nc', h1, raw['wg2'][:, :, 0, 0],
                                   precision=HIGHEST) + raw['bg2'])
    c = x * zc[:, :, None, None]
    return s + c


# ----------------------------------------------------------------------------
if __name__ == "__main__":
    key = jax.random.PRNGKey(0)
    kx, ke, kp = jax.random.split(key, 3)

    # Decoder(in_channels=32, channels=32, out_channels=32); low-res 8x8 -> 16x16.
    N, Cx, H0, W0 = 2, 16, 8, 8
    Ce = 16
    in_channels, channels, out_channels = Cx + Ce, 32, 32

    x = jax.random.normal(kx, (N, Cx, H0, W0), jnp.float32)            # low-res feature
    e = jax.random.normal(ke, (N, Ce, 2 * H0, 2 * W0), jnp.float32)    # encoder skip

    raw, params = init_params(kp, in_channels, channels, out_channels, reduction=16)

    out = jax.block_until_ready(decoder_forward(params, x, e))
    assert out.shape == (N, out_channels, 2 * H0, 2 * W0), out.shape

    ref = reference_forward(raw, x, e)
    err = float(jnp.max(jnp.abs(out - ref)))
    if not err < 5e-2:
        raise AssertionError(f"kernel/reference mismatch, max abs err = {err}")

    print("KERNEL_OK")
</pallas_src>

<mosaic_0001>
module attributes {stable_mosaic.version = 11 : i64} {
  func.func @kernel(%arg0: i32, %arg1: memref<1x16x64xf32, #tpu.memory_space<vmem>>, %arg2: memref<1x16x256xf32, #tpu.memory_space<vmem>>, %arg3: memref<64x256xbf16, #tpu.memory_space<vmem>>, %arg4: memref<1x256xf32, #tpu.memory_space<vmem>>, %arg5: memref<1x256xf32, #tpu.memory_space<vmem>>, %arg6: memref<32x288xbf16, #tpu.memory_space<vmem>>, %arg7: memref<32x1xf32, #tpu.memory_space<vmem>>, %arg8: memref<32x1xf32, #tpu.memory_space<vmem>>, %arg9: memref<32x288xbf16, #tpu.memory_space<vmem>>, %arg10: memref<32x1xf32, #tpu.memory_space<vmem>>, %arg11: memref<32x1xf32, #tpu.memory_space<vmem>>, %arg12: memref<32x1xf32, #tpu.memory_space<vmem>>, %arg13: memref<32x2xf32, #tpu.memory_space<vmem>>, %arg14: memref<1x2xf32, #tpu.memory_space<vmem>>, %arg15: memref<32x2xf32, #tpu.memory_space<vmem>>, %arg16: memref<32x1xf32, #tpu.memory_space<vmem>>, %arg17: memref<1x32x256xf32, #tpu.memory_space<vmem>>, %arg18: memref<32x290xf32, #tpu.memory_space<vmem>>, %arg19: memref<32x290xf32, #tpu.memory_space<vmem>>, %arg20: memref<288x256xf32, #tpu.memory_space<vmem>>) attributes {dimension_semantics = [#tpu.dimension_semantics<parallel>], iteration_bounds = array<i64: 2>, scalar_prefetch = 0 : i64, scratch_operands = 3 : i64, tpu.core_type = #tpu.core_type<tc>, window_params = [{transform_indices = @transform_0, window_bounds = array<i64: 1, 16, 64>}, {transform_indices = @transform_1, window_bounds = array<i64: 1, 16, 256>}, {pipeline_mode = #tpu.pipeline_mode<synchronous>, transform_indices = @transform_2, window_bounds = array<i64: 64, 256>}, {pipeline_mode = #tpu.pipeline_mode<synchronous>, transform_indices = @transform_3, window_bounds = array<i64: 1, 256>}, {pipeline_mode = #tpu.pipeline_mode<synchronous>, transform_indices = @transform_4, window_bounds = array<i64: 1, 256>}, {pipeline_mode = #tpu.pipeline_mode<synchronous>, transform_indices = @transform_5, window_bounds = array<i64: 32, 288>}, {pipeline_mode = #tpu.pipeline_mode<synchronous>, transform_indices = @transform_6, window_bounds = array<i64: 32, 1>}, {pipeline_mode = #tpu.pipeline_mode<synchronous>, transform_indices = @transform_7, window_bounds = array<i64: 32, 1>}, {pipeline_mode = #tpu.pipeline_mode<synchronous>, transform_indices = @transform_8, window_bounds = array<i64: 32, 288>}, {pipeline_mode = #tpu.pipeline_mode<synchronous>, transform_indices = @transform_9, window_bounds = array<i64: 32, 1>}, {pipeline_mode = #tpu.pipeline_mode<synchronous>, transform_indices = @transform_10, window_bounds = array<i64: 32, 1>}, {pipeline_mode = #tpu.pipeline_mode<synchronous>, transform_indices = @transform_11, window_bounds = array<i64: 32, 1>}, {pipeline_mode = #tpu.pipeline_mode<synchronous>, transform_indices = @transform_12, window_bounds = array<i64: 32, 2>}, {pipeline_mode = #tpu.pipeline_mode<synchronous>, transform_indices = @transform_13, window_bounds = array<i64: 1, 2>}, {pipeline_mode = #tpu.pipeline_mode<synchronous>, transform_indices = @transform_14, window_bounds = array<i64: 32, 2>}, {pipeline_mode = #tpu.pipeline_mode<synchronous>, transform_indices = @transform_15, window_bounds = array<i64: 32, 1>}, {transform_indices = @transform_16, window_bounds = array<i64: 1, 32, 256>}]} {
    %cst = arith.constant 0.000000e+00 : f32
    %0 = vector.broadcast %cst : f32 to vector<32x290xf32>
    %c0 = arith.constant 0 : index
    %c0_0 = arith.constant 0 : index
    %1 = vector.load %arg18[%c0, %c0_0] : memref<32x290xf32, #tpu.memory_space<vmem>>, vector<32x290xf32>
    tpu.vector_store %arg18[%c0, %c0_0], %0 {strides = array<i32>} : memref<32x290xf32, #tpu.memory_space<vmem>>, vector<32x290xf32>,
    %cst_1 = arith.constant 0.000000e+00 : f32
    %2 = vector.broadcast %cst_1 : f32 to vector<32x290xf32>
    %c0_2 = arith.constant 0 : index
    %c0_3 = arith.constant 0 : index
    %3 = vector.load %arg19[%c0_2, %c0_3] : memref<32x290xf32, #tpu.memory_space<vmem>>, vector<32x290xf32>
    tpu.vector_store %arg19[%c0_2, %c0_3], %2 {strides = array<i32>} : memref<32x290xf32, #tpu.memory_space<vmem>>, vector<32x290xf32>,
    %c0_4 = arith.constant 0 : index
    %c0_5 = arith.constant 0 : index
    %c0_6 = arith.constant 0 : index
    %4 = vector.load %arg1[%c0_4, %c0_5, %c0_6] : memref<1x16x64xf32, #tpu.memory_space<vmem>>, vector<1x16x64xf32>
    %5 = vector.shape_cast %4 : vector<1x16x64xf32> to vector<16x64xf32>
    %6 = arith.truncf %5 : vector<16x64xf32> to vector<16x64xbf16>
    %c0_7 = arith.constant 0 : index
    %c0_8 = arith.constant 0 : index
    %7 = vector.load %arg3[%c0_7, %c0_8] : memref<64x256xbf16, #tpu.memory_space<vmem>>, vector<64x256xbf16>
    %cst_9 = arith.constant dense<0.000000e+00> : vector<16x256xf32>
    %8 = tpu.matmul %6, %7, %cst_9 {dimension_numbers = #tpu.dot_dimension_numbers<[1], [0], [0], [1], [0, 0, 1, 1], [], []>} : vector<16x64xbf16>, vector<64x256xbf16>, vector<16x256xf32> -> vector<16x256xf32>
    %c0_10 = arith.constant 0 : index
    %c17 = arith.constant 17 : index
    %9 = vector.load %arg18[%c0_10, %c17] : memref<32x290xf32, #tpu.memory_space<vmem>>, vector<16x256xf32>
    tpu.vector_store %arg18[%c0_10, %c17], %8 {strides = array<i32>} : memref<32x290xf32, #tpu.memory_space<vmem>>, vector<16x256xf32>,
    %c0_11 = arith.constant 0 : index
    %c0_12 = arith.constant 0 : index
    %c0_13 = arith.constant 0 : index
    %10 = vector.load %arg2[%c0_11, %c0_12, %c0_13] : memref<1x16x256xf32, #tpu.memory_space<vmem>>, vector<1x16x256xf32>
    %11 = vector.shape_cast %10 : vector<1x16x256xf32> to vector<16x256xf32>
    %c16 = arith.constant 16 : index
    %c17_14 = arith.constant 17 : index
    %12 = vector.load %arg18[%c16, %c17_14] : memref<32x290xf32, #tpu.memory_space<vmem>>, vector<16x256xf32>
    tpu.vector_store %arg18[%c16, %c17_14], %11 {strides = array<i32>} : memref<32x290xf32, #tpu.memory_space<vmem>>, vector<16x256xf32>,
    %c0_15 = arith.constant 0 : index
    %c0_16 = arith.constant 0 : index
    %13 = vector.load %arg18[%c0_15, %c0_16] : memref<32x290xf32, #tpu.memory_space<vmem>>, vector<32x256xf32>
    %c0_17 = arith.constant 0 : index
    %c0_18 = arith.constant 0 : index
    %14 = vector.load %arg4[%c0_17, %c0_18] : memref<1x256xf32, #tpu.memory_space<vmem>>, vector<1x256xf32>
    %15 = vector.broadcast %14 : vector<1x256xf32> to vector<32x256xf32>
    %16 = arith.mulf %13, %15 : vector<32x256xf32>
    %c0_19 = arith.constant 0 : index
    %c0_20 = arith.constant 0 : index
    %17 = vector.load %arg20[%c0_19, %c0_20] : memref<288x256xf32, #tpu.memory_space<vmem>>, vector<32x256xf32>
    tpu.vector_store %arg20[%c0_19, %c0_20], %16 {strides = array<i32>} : memref<288x256xf32, #tpu.memory_space<vmem>>, vector<32x256xf32>,
    %c0_21 = arith.constant 0 : index
    %c1 = arith.constant 1 : index
    %18 = vector.load %arg18[%c0_21, %c1] : memref<32x290xf32, #tpu.memory_space<vmem>>, vector<32x256xf32>
    %c32 = arith.constant 32 : index
    %c0_22 = arith.constant 0 : index
    %19 = vector.load %arg20[%c32, %c0_22] : memref<288x256xf32, #tpu.memory_space<vmem>>, vector<32x256xf32>
    tpu.vector_store %arg20[%c32, %c0_22], %18 {strides = array<i32>} : memref<288x256xf32, #tpu.memory_space<vmem>>, vector<32x256xf32>,
    %c0_23 = arith.constant 0 : index
    %c2 = arith.constant 2 : index
    %20 = vector.load %arg18[%c0_23, %c2] : memref<32x290xf32, #tpu.memory_space<vmem>>, vector<32x256xf32>
    %c0_24 = arith.constant 0 : index
    %c0_25 = arith.constant 0 : index
    %21 = vector.load %arg5[%c0_24, %c0_25] : memref<1x256xf32, #tpu.memory_space<vmem>>, vector<1x256xf32>
    %22 = vector.broadcast %21 : vector<1x256xf32> to vector<32x256xf32>
    %23 = arith.mulf %20, %22 : vector<32x256xf32>
    %c64 = arith.constant 64 : index
    %c0_26 = arith.constant 0 : index
    %24 = vector.load %arg20[%c64, %c0_26] : memref<288x256xf32, #tpu.memory_space<vmem>>, vector<32x256xf32>
    tpu.vector_store %arg20[%c64, %c0_26], %23 {strides = array<i32>} : memref<288x256xf32, #tpu.memory_space<vmem>>, vector<32x256xf32>,
    %c0_27 = arith.constant 0 : index
    %c16_28 = arith.constant 16 : index
    %25 = vector.load %arg18[%c0_27, %c16_28] : memref<32x290xf32, #tpu.memory_space<vmem>>, vector<32x256xf32>
    %c0_29 = arith.constant 0 : index
    %c0_30 = arith.constant 0 : index
    %26 = vector.load %arg4[%c0_29, %c0_30] : memref<1x256xf32, #tpu.memory_space<vmem>>, vector<1x256xf32>
    %27 = vector.broadcast %26 : vector<1x256xf32> to vector<32x256xf32>
    %28 = arith.mulf %25, %27 : vector<32x256xf32>
    %c96 = arith.constant 96 : index
    %c0_31 = arith.constant 0 : index
    %29 = vector.load %arg20[%c96, %c0_31] : memref<288x256xf32, #tpu.memory_space<vmem>>, vector<32x256xf32>
    tpu.vector_store %arg20[%c96, %c0_31], %28 {strides = array<i32>} : memref<288x256xf32, #tpu.memory_space<vmem>>, vector<32x256xf32>,
    %c0_32 = arith.constant 0 : index
    %c17_33 = arith.constant 17 : index
    %30 = vector.load %arg18[%c0_32, %c17_33] : memref<32x290xf32, #tpu.memory_space<vmem>>, vector<32x256xf32>
    %c128 = arith.constant 128 : index
    %c0_34 = arith.constant 0 : index
    %31 = vector.load %arg20[%c128, %c0_34] : memref<288x256xf32, #tpu.memory_space<vmem>>, vector<32x256xf32>
    tpu.vector_store %arg20[%c128, %c0_34], %30 {strides = array<i32>} : memref<288x256xf32, #tpu.memory_space<vmem>>, vector<32x256xf32>,
    %c0_35 = arith.constant 0 : index
    %c18 = arith.constant 18 : index
    %32 = vector.load %arg18[%c0_35, %c18] : memref<32x290xf32, #tpu.memory_space<vmem>>, vector<32x256xf32>
    %c0_36 = arith.constant 0 : index
    %c0_37 = arith.constant 0 : index
    %33 = vector.load %arg5[%c0_36, %c0_37] : memref<1x256xf32, #tpu.memory_space<vmem>>, vector<1x256xf32>
    %34 = vector.broadcast %33 : vector<1x256xf32> to vector<32x256xf32>
    %35 = arith.mulf %32, %34 : vector<32x256xf32>
    %c160 = arith.constant 160 : index
    %c0_38 = arith.constant 0 : index
    %36 = vector.load %arg20[%c160, %c0_38] : memref<288x256xf32, #tpu.memory_space<vmem>>, vector<32x256xf32>
    tpu.vector_store %arg20[%c160, %c0_38], %35 {strides = array<i32>} : memref<288x256xf32, #tpu.memory_space<vmem>>, vector<32x256xf32>,
    %c0_39 = arith.constant 0 : index
    %c32_40 = arith.constant 32 : index
    %37 = vector.load %arg18[%c0_39, %c32_40] : memref<32x290xf32, #tpu.memory_space<vmem>>, vector<32x256xf32>
    %c0_41 = arith.constant 0 : index
    %c0_42 = arith.constant 0 : index
    %38 = vector.load %arg4[%c0_41, %c0_42] : memref<1x256xf32, #tpu.memory_space<vmem>>, vector<1x256xf32>
    %39 = vector.broadcast %38 : vector<1x256xf32> to vector<32x256xf32>
    %40 = arith.mulf %37, %39 : vector<32x256xf32>
    %c192 = arith.constant 192 : index
    %c0_43 = arith.constant 0 : index
    %41 = vector.load %arg20[%c192, %c0_43] : memref<288x256xf32, #tpu.memory_space<vmem>>, vector<32x256xf32>
    tpu.vector_store %arg20[%c192, %c0_43], %40 {strides = array<i32>} : memref<288x256xf32, #tpu.memory_space<vmem>>, vector<32x256xf32>,
    %c0_44 = arith.constant 0 : index
    %c33 = arith.constant 33 : index
    %42 = vector.load %arg18[%c0_44, %c33] : memref<32x290xf32, #tpu.memory_space<vmem>>, vector<32x256xf32>
    %c224 = arith.constant 224 : index
    %c0_45 = arith.constant 0 : index
    %43 = vector.load %arg20[%c224, %c0_45] : memref<288x256xf32, #tpu.memory_space<vmem>>, vector<32x256xf32>
    tpu.vector_store %arg20[%c224, %c0_45], %42 {strides = array<i32>} : memref<288x256xf32, #tpu.memory_space<vmem>>, vector<32x256xf32>,
    %c0_46 = arith.constant 0 : index
    %c34 = arith.constant 34 : index
    %44 = vector.load %arg18[%c0_46, %c34] : memref<32x290xf32, #tpu.memory_space<vmem>>, vector<32x256xf32>
    %c0_47 = arith.constant 0 : index
    %c0_48 = arith.constant 0 : index
    %45 = vector.load %arg5[%c0_47, %c0_48] : memref<1x256xf32, #tpu.memory_space<vmem>>, vector<1x256xf32>
    %46 = vector.broadcast %45 : vector<1x256xf32> to vector<32x256xf32>
    %47 = arith.mulf %44, %46 : vector<32x256xf32>
    %c256 = arith.constant 256 : index
    %c0_49 = arith.constant 0 : index
    %48 = vector.load %arg20[%c256, %c0_49] : memref<288x256xf32, #tpu.memory_space<vmem>>, vector<32x256xf32>
    tpu.vector_store %arg20[%c256, %c0_49], %47 {strides = array<i32>} : memref<288x256xf32, #tpu.memory_space<vmem>>, vector<32x256xf32>,
    %c0_50 = arith.constant 0 : index
    %c0_51 = arith.constant 0 : index
    %49 = vector.load %arg20[%c0_50, %c0_51] : memref<288x256xf32, #tpu.memory_space<vmem>>, vector<288x256xf32>
    %50 = arith.truncf %49 : vector<288x256xf32> to vector<288x256xbf16>
    %c0_52 = arith.constant 0 : index
    %c0_53 = arith.constant 0 : index
    %51 = vector.load %arg6[%c0_52, %c0_53] : memref<32x288xbf16, #tpu.memory_space<vmem>>, vector<32x288xbf16>
    %cst_54 = arith.constant dense<0.000000e+00> : vector<32x256xf32>
    %52 = tpu.matmul %51, %50, %cst_54 {dimension_numbers = #tpu.dot_dimension_numbers<[1], [0], [0], [1], [0, 0, 1, 1], [], []>} : vector<32x288xbf16>, vector<288x256xbf16>, vector<32x256xf32> -> vector<32x256xf32>
    %c0_55 = arith.constant 0 : index
    %c0_56 = arith.constant 0 : index
    %53 = vector.load %arg7[%c0_55, %c0_56] : memref<32x1xf32, #tpu.memory_space<vmem>>, vector<32x1xf32>
    %54 = vector.broadcast %53 : vector<32x1xf32> to vector<32x256xf32>
    %55 = arith.mulf %52, %54 : vector<32x256xf32>
    %c0_57 = arith.constant 0 : index
    %c0_58 = arith.constant 0 : index
    %56 = vector.load %arg8[%c0_57, %c0_58] : memref<32x1xf32, #tpu.memory_space<vmem>>, vector<32x1xf32>
    %57 = vector.broadcast %56 : vector<32x1xf32> to vector<32x256xf32>
    %58 = arith.addf %55, %57 : vector<32x256xf32>
    %cst_59 = arith.constant 0.000000e+00 : f32
    %59 = vector.broadcast %cst_59 : f32 to vector<32x256xf32>
    %60 = arith.cmpf ogt, %58, %59 : vector<32x256xf32>
    %61 = math.exp %58 : vector<32x256xf32>
    %cst_60 = arith.constant 1.000000e+00 : f32
    %62 = vector.broadcast %cst_60 : f32 to vector<32x256xf32>
    %63 = arith.subf %61, %62 : vector<32x256xf32>
    %64 = arith.select %60, %58, %63 : vector<32x256xi1>, vector<32x256xf32>
    %c0_61 = arith.constant 0 : index
    %c17_62 = arith.constant 17 : index
    %65 = vector.load %arg19[%c0_61, %c17_62] : memref<32x290xf32, #tpu.memory_space<vmem>>, vector<32x256xf32>
    tpu.vector_store %arg19[%c0_61, %c17_62], %64 {strides = array<i32>} : memref<32x290xf32, #tpu.memory_space<vmem>>, vector<32x256xf32>,
    %c0_63 = arith.constant 0 : index
    %c0_64 = arith.constant 0 : index
    %66 = vector.load %arg19[%c0_63, %c0_64] : memref<32x290xf32, #tpu.memory_space<vmem>>, vector<32x256xf32>
    %c0_65 = arith.constant 0 : index
    %c0_66 = arith.constant 0 : index
    %67 = vector.load %arg4[%c0_65, %c0_66] : memref<1x256xf32, #tpu.memory_space<vmem>>, vector<1x256xf32>
    %68 = vector.broadcast %67 : vector<1x256xf32> to vector<32x256xf32>
    %69 = arith.mulf %66, %68 : vector<32x256xf32>
    %c0_67 = arith.constant 0 : index
    %c0_68 = arith.constant 0 : index
    %70 = vector.load %arg20[%c0_67, %c0_68] : memref<288x256xf32, #tpu.memory_space<vmem>>, vector<32x256xf32>
    tpu.vector_store %arg20[%c0_67, %c0_68], %69 {strides = array<i32>} : memref<288x256xf32, #tpu.memory_space<vmem>>, vector<32x256xf32>,
    %c0_69 = arith.constant 0 : index
    %c1_70 = arith.constant 1 : index
    %71 = vector.load %arg19[%c0_69, %c1_70] : memref<32x290xf32, #tpu.memory_space<vmem>>, vector<32x256xf32>
    %c32_71 = arith.constant 32 : index
    %c0_72 = arith.constant 0 : index
    %72 = vector.load %arg20[%c32_71, %c0_72] : memref<288x256xf32, #tpu.memory_space<vmem>>, vector<32x256xf32>
    tpu.vector_store %arg20[%c32_71, %c0_72], %71 {strides = array<i32>} : memref<288x256xf32, #tpu.memory_space<vmem>>, vector<32x256xf32>,
    %c0_73 = arith.constant 0 : index
    %c2_74 = arith.constant 2 : index
    %73 = vector.load %arg19[%c0_73, %c2_74] : memref<32x290xf32, #tpu.memory_space<vmem>>, vector<32x256xf32>
    %c0_75 = arith.constant 0 : index
    %c0_76 = arith.constant 0 : index
    %74 = vector.load %arg5[%c0_75, %c0_76] : memref<1x256xf32, #tpu.memory_space<vmem>>, vector<1x256xf32>
    %75 = vector.broadcast %74 : vector<1x256xf32> to vector<32x256xf32>
    %76 = arith.mulf %73, %75 : vector<32x256xf32>
    %c64_77 = arith.constant 64 : index
    %c0_78 = arith.constant 0 : index
    %77 = vector.load %arg20[%c64_77, %c0_78] : memref<288x256xf32, #tpu.memory_space<vmem>>, vector<32x256xf32>
    tpu.vector_store %arg20[%c64_77, %c0_78], %76 {strides = array<i32>} : memref<288x256xf32, #tpu.memory_space<vmem>>, vector<32x256xf32>,
    %c0_79 = arith.constant 0 : index
    %c16_80 = arith.constant 16 : index
    %78 = vector.load %arg19[%c0_79, %c16_80] : memref<32x290xf32, #tpu.memory_space<vmem>>, vector<32x256xf32>
    %c0_81 = arith.constant 0 : index
    %c0_82 = arith.constant 0 : index
    %79 = vector.load %arg4[%c0_81, %c0_82] : memref<1x256xf32, #tpu.memory_space<vmem>>, vector<1x256xf32>
    %80 = vector.broadcast %79 : vector<1x256xf32> to vector<32x256xf32>
    %81 = arith.mulf %78, %80 : vector<32x256xf32>
    %c96_83 = arith.constant 96 : index
    %c0_84 = arith.constant 0 : index
    %82 = vector.load %arg20[%c96_83, %c0_84] : memref<288x256xf32, #tpu.memory_space<vmem>>, vector<32x256xf32>
    tpu.vector_store %arg20[%c96_83, %c0_84], %81 {strides = array<i32>} : memref<288x256xf32, #tpu.memory_space<vmem>>, vector<32x256xf32>,
    %c0_85 = arith.constant 0 : index
    %c17_86 = arith.constant 17 : index
    %83 = vector.load %arg19[%c0_85, %c17_86] : memref<32x290xf32, #tpu.memory_space<vmem>>, vector<32x256xf32>
    %c128_87 = arith.constant 128 : index
    %c0_88 = arith.constant 0 : index
    %84 = vector.load %arg20[%c128_87, %c0_88] : memref<288x256xf32, #tpu.memory_space<vmem>>, vector<32x256xf32>
    tpu.vector_store %arg20[%c128_87, %c0_88], %83 {strides = array<i32>} : memref<288x256xf32, #tpu.memory_space<vmem>>, vector<32x256xf32>,
    %c0_89 = arith.constant 0 : index
    %c18_90 = arith.constant 18 : index
    %85 = vector.load %arg19[%c0_89, %c18_90] : memref<32x290xf32, #tpu.memory_space<vmem>>, vector<32x256xf32>
    %c0_91 = arith.constant 0 : index
    %c0_92 = arith.constant 0 : index
    %86 = vector.load %arg5[%c0_91, %c0_92] : memref<1x256xf32, #tpu.memory_space<vmem>>, vector<1x256xf32>
    %87 = vector.broadcast %86 : vector<1x256xf32> to vector<32x256xf32>
    %88 = arith.mulf %85, %87 : vector<32x256xf32>
    %c160_93 = arith.constant 160 : index
    %c0_94 = arith.constant 0 : index
    %89 = vector.load %arg20[%c160_93, %c0_94] : memref<288x256xf32, #tpu.memory_space<vmem>>, vector<32x256xf32>
    tpu.vector_store %arg20[%c160_93, %c0_94], %88 {strides = array<i32>} : memref<288x256xf32, #tpu.memory_space<vmem>>, vector<32x256xf32>,
    %c0_95 = arith.constant 0 : index
    %c32_96 = arith.constant 32 : index
    %90 = vector.load %arg19[%c0_95, %c32_96] : memref<32x290xf32, #tpu.memory_space<vmem>>, vector<32x256xf32>
    %c0_97 = arith.constant 0 : index
    %c0_98 = arith.constant 0 : index
    %91 = vector.load %arg4[%c0_97, %c0_98] : memref<1x256xf32, #tpu.memory_space<vmem>>, vector<1x256xf32>
    %92 = vector.broadcast %91 : vector<1x256xf32> to vector<32x256xf32>
    %93 = arith.mulf %90, %92 : vector<32x256xf32>
    %c192_99 = arith.constant 192 : index
    %c0_100 = arith.constant 0 : index
    %94 = vector.load %arg20[%c192_99, %c0_100] : memref<288x256xf32, #tpu.memory_space<vmem>>, vector<32x256xf32>
    tpu.vector_store %arg20[%c192_99, %c0_100], %93 {strides = array<i32>} : memref<288x256xf32, #tpu.memory_space<vmem>>, vector<32x256xf32>,
    %c0_101 = arith.constant 0 : index
    %c33_102 = arith.constant 33 : index
    %95 = vector.load %arg19[%c0_101, %c33_102] : memref<32x290xf32, #tpu.memory_space<vmem>>, vector<32x256xf32>
    %c224_103 = arith.constant 224 : index
    %c0_104 = arith.constant 0 : index
    %96 = vector.load %arg20[%c224_103, %c0_104] : memref<288x256xf32, #tpu.memory_space<vmem>>, vector<32x256xf32>
    tpu.vector_store %arg20[%c224_103, %c0_104], %95 {strides = array<i32>} : memref<288x256xf32, #tpu.memory_space<vmem>>, vector<32x256xf32>,
    %c0_105 = arith.constant 0 : index
    %c34_106 = arith.constant 34 : index
    %97 = vector.load %arg19[%c0_105, %c34_106] : memref<32x290xf32, #tpu.memory_space<vmem>>, vector<32x256xf32>
    %c0_107 = arith.constant 0 : index
    %c0_108 = arith.constant 0 : index
    %98 = vector.load %arg5[%c0_107, %c0_108] : memref<1x256xf32, #tpu.memory_space<vmem>>, vector<1x256xf32>
    %99 = vector.broadcast %98 : vector<1x256xf32> to vector<32x256xf32>
    %100 = arith.mulf %97, %99 : vector<32x256xf32>
    %c256_109 = arith.constant 256 : index
    %c0_110 = arith.constant 0 : index
    %101 = vector.load %arg20[%c256_109, %c0_110] : memref<288x256xf32, #tpu.memory_space<vmem>>, vector<32x256xf32>
    tpu.vector_store %arg20[%c256_109, %c0_110], %100 {strides = array<i32>} : memref<288x256xf32, #tpu.memory_space<vmem>>, vector<32x256xf32>,
    %c0_111 = arith.constant 0 : index
    %c0_112 = arith.constant 0 : index
    %102 = vector.load %arg20[%c0_111, %c0_112] : memref<288x256xf32, #tpu.memory_space<vmem>>, vector<288x256xf32>
    %103 = arith.truncf %102 : vector<288x256xf32> to vector<288x256xbf16>
    %c0_113 = arith.constant 0 : index
    %c0_114 = arith.constant 0 : index
    %104 = vector.load %arg9[%c0_113, %c0_114] : memref<32x288xbf16, #tpu.memory_space<vmem>>, vector<32x288xbf16>
    %cst_115 = arith.constant dense<0.000000e+00> : vector<32x256xf32>
    %105 = tpu.matmul %104, %103, %cst_115 {dimension_numbers = #tpu.dot_dimension_numbers<[1], [0], [0], [1], [0, 0, 1, 1], [], []>} : vector<32x288xbf16>, vector<288x256xbf16>, vector<32x256xf32> -> vector<32x256xf32>
    %c0_116 = arith.constant 0 : index
    %c0_117 = arith.constant 0 : index
    %106 = vector.load %arg10[%c0_116, %c0_117] : memref<32x1xf32, #tpu.memory_space<vmem>>, vector<32x1xf32>
    %107 = vector.broadcast %106 : vector<32x1xf32> to vector<32x256xf32>
    %108 = arith.mulf %105, %107 : vector<32x256xf32>
    %c0_118 = arith.constant 0 : index
    %c0_119 = arith.constant 0 : index
    %109 = vector.load %arg11[%c0_118, %c0_119] : memref<32x1xf32, #tpu.memory_space<vmem>>, vector<32x1xf32>
    %110 = vector.broadcast %109 : vector<32x1xf32> to vector<32x256xf32>
    %111 = arith.addf %108, %110 : vector<32x256xf32>
    %cst_120 = arith.constant 0.000000e+00 : f32
    %112 = vector.broadcast %cst_120 : f32 to vector<32x256xf32>
    %113 = arith.cmpf ogt, %111, %112 : vector<32x256xf32>
    %114 = math.exp %111 : vector<32x256xf32>
    %cst_121 = arith.constant 1.000000e+00 : f32
    %115 = vector.broadcast %cst_121 : f32 to vector<32x256xf32>
    %116 = arith.subf %114, %115 : vector<32x256xf32>
    %117 = arith.select %113, %111, %116 : vector<32x256xi1>, vector<32x256xf32>
    %c0_122 = arith.constant 0 : index
    %c0_123 = arith.constant 0 : index
    %118 = vector.load %arg12[%c0_122, %c0_123] : memref<32x1xf32, #tpu.memory_space<vmem>>, vector<32x1xf32>
    %119 = vector.broadcast %118 : vector<32x1xf32> to vector<32x256xf32>
    %120 = arith.mulf %117, %119 : vector<32x256xf32>
    %cst_124 = arith.constant dense<0.000000e+00> : vector<256xf32>
    %121 = vector.multi_reduction <add>, %120, %cst_124 [0] : vector<32x256xf32> to vector<256xf32>
    %122 = vector.shape_cast %121 : vector<256xf32> to vector<1x256xf32>
    %123 = arith.negf %122 : vector<1x256xf32>
    %124 = math.exp %123 : vector<1x256xf32>
    %cst_125 = arith.constant 1.000000e+00 : f32
    %125 = vector.broadcast %cst_125 : f32 to vector<1x256xf32>
    %126 = arith.addf %125, %124 : vector<1x256xf32>
    %127 = arith.divf %125, %126 : vector<1x256xf32>
    %cst_126 = arith.constant dense<0.000000e+00> : vector<32xf32>
    %128 = vector.multi_reduction <add>, %117, %cst_126 [1] : vector<32x256xf32> to vector<32xf32>
    %129 = vector.shape_cast %128 : vector<32xf32> to vector<32x1xf32>
    %cst_127 = arith.constant 2.560000e+02 : f32
    %130 = vector.broadcast %cst_127 : f32 to vector<32x1xf32>
    %131 = arith.divf %129, %130 : vector<32x1xf32>
    %c0_128 = arith.constant 0 : index
    %c0_129 = arith.constant 0 : index
    %132 = vector.load %arg13[%c0_128, %c0_129] : memref<32x2xf32, #tpu.memory_space<vmem>>, vector<32x2xf32>
    %133 = vector.broadcast %131 : vector<32x1xf32> to vector<32x2xf32>
    %134 = arith.mulf %132, %133 : vector<32x2xf32>
    %cst_130 = arith.constant dense<0.000000e+00> : vector<2xf32>
    %135 = vector.multi_reduction <add>, %134, %cst_130 [0] : vector<32x2xf32> to vector<2xf32>
    %136 = vector.shape_cast %135 : vector<2xf32> to vector<1x2xf32>
    %c0_131 = arith.constant 0 : index
    %c0_132 = arith.constant 0 : index
    %137 = vector.load %arg14[%c0_131, %c0_132] : memref<1x2xf32, #tpu.memory_space<vmem>>, vector<1x2xf32>
    %138 = arith.addf %136, %137 : vector<1x2xf32>
    %cst_133 = arith.constant 0.000000e+00 : f32
    %139 = vector.broadcast %cst_133 : f32 to vector<1x2xf32>
    %140 = arith.maximumf %138, %139 : vector<1x2xf32>
    %c0_134 = arith.constant 0 : index
    %c0_135 = arith.constant 0 : index
    %141 = vector.load %arg15[%c0_134, %c0_135] : memref<32x2xf32, #tpu.memory_space<vmem>>, vector<32x2xf32>
    %142 = vector.broadcast %140 : vector<1x2xf32> to vector<32x2xf32>
    %143 = arith.mulf %141, %142 : vector<32x2xf32>
    %cst_136 = arith.constant dense<0.000000e+00> : vector<32xf32>
    %144 = vector.multi_reduction <add>, %143, %cst_136 [1] : vector<32x2xf32> to vector<32xf32>
    %145 = vector.shape_cast %144 : vector<32xf32> to vector<32x1xf32>
    %c0_137 = arith.constant 0 : index
    %c0_138 = arith.constant 0 : index
    %146 = vector.load %arg16[%c0_137, %c0_138] : memref<32x1xf32, #tpu.memory_space<vmem>>, vector<32x1xf32>
    %147 = arith.addf %145, %146 : vector<32x1xf32>
    %148 = arith.negf %147 : vector<32x1xf32>
    %149 = math.exp %148 : vector<32x1xf32>
    %cst_139 = arith.constant 1.000000e+00 : f32
    %150 = vector.broadcast %cst_139 : f32 to vector<32x1xf32>
    %151 = arith.addf %150, %149 : vector<32x1xf32>
    %152 = arith.divf %150, %151 : vector<32x1xf32>
    %153 = vector.broadcast %127 : vector<1x256xf32> to vector<32x256xf32>
    %154 = vector.broadcast %152 : vector<32x1xf32> to vector<32x256xf32>
    %155 = arith.addf %153, %154 : vector<32x256xf32>
    %156 = arith.mulf %117, %155 : vector<32x256xf32>
    %c0_140 = arith.constant 0 : index
    %c0_141 = arith.constant 0 : index
    %c0_142 = arith.constant 0 : index
    %157 = vector.load %arg17[%c0_140, %c0_141, %c0_142] : memref<1x32x256xf32, #tpu.memory_space<vmem>>, vector<1x32x256xf32>
    %158 = vector.shape_cast %157 : vector<1x32x256xf32> to vector<32x256xf32>
    %159 = vector.shape_cast %156 : vector<32x256xf32> to vector<1x32x256xf32>
    tpu.vector_store %arg17[%c0_140, %c0_141, %c0_142], %159 {strides = array<i32>} : memref<1x32x256xf32, #tpu.memory_space<vmem>>, vector<1x32x256xf32>,
    return
  }
  func.func @transform_0(%arg0: i32) -> (i32, i32, i32) {
    %c0_i32 = arith.constant 0 : i32
    %c0_i32_0 = arith.constant 0 : i32
    %c0_i32_1 = arith.constant 0 : i32
    return %arg0, %c0_i32, %c0_i32_0 : i32, i32, i32
  }
  func.func @transform_1(%arg0: i32) -> (i32, i32, i32) {
    %c0_i32 = arith.constant 0 : i32
    %c0_i32_0 = arith.constant 0 : i32
    %c0_i32_1 = arith.constant 0 : i32
    return %arg0, %c0_i32, %c0_i32_0 : i32, i32, i32
  }
  func.func @transform_2(%arg0: i32) -> (i32, i32) {
    %c0_i32 = arith.constant 0 : i32
    %c0_i32_0 = arith.constant 0 : i32
    %c0_i32_1 = arith.constant 0 : i32
    return %c0_i32, %c0_i32_0 : i32, i32
  }
  func.func @transform_3(%arg0: i32) -> (i32, i32) {
    %c0_i32 = arith.constant 0 : i32
    %c0_i32_0 = arith.constant 0 : i32
    %c0_i32_1 = arith.constant 0 : i32
    return %c0_i32, %c0_i32_0 : i32, i32
  }
  func.func @transform_4(%arg0: i32) -> (i32, i32) {
    %c0_i32 = arith.constant 0 : i32
    %c0_i32_0 = arith.constant 0 : i32
    %c0_i32_1 = arith.constant 0 : i32
    return %c0_i32, %c0_i32_0 : i32, i32
  }
  func.func @transform_5(%arg0: i32) -> (i32, i32) {
    %c0_i32 = arith.constant 0 : i32
    %c0_i32_0 = arith.constant 0 : i32
    %c0_i32_1 = arith.constant 0 : i32
    return %c0_i32, %c0_i32_0 : i32, i32
  }
  func.func @transform_6(%arg0: i32) -> (i32, i32) {
    %c0_i32 = arith.constant 0 : i32
    %c0_i32_0 = arith.constant 0 : i32
    %c0_i32_1 = arith.constant 0 : i32
    return %c0_i32, %c0_i32_0 : i32, i32
  }
  func.func @transform_7(%arg0: i32) -> (i32, i32) {
    %c0_i32 = arith.constant 0 : i32
    %c0_i32_0 = arith.constant 0 : i32
    %c0_i32_1 = arith.constant 0 : i32
    return %c0_i32, %c0_i32_0 : i32, i32
  }
  func.func @transform_8(%arg0: i32) -> (i32, i32) {
    %c0_i32 = arith.constant 0 : i32
    %c0_i32_0 = arith.constant 0 : i32
    %c0_i32_1 = arith.constant 0 : i32
    return %c0_i32, %c0_i32_0 : i32, i32
  }
  func.func @transform_9(%arg0: i32) -> (i32, i32) {
    %c0_i32 = arith.constant 0 : i32
    %c0_i32_0 = arith.constant 0 : i32
    %c0_i32_1 = arith.constant 0 : i32
    return %c0_i32, %c0_i32_0 : i32, i32
  }
  func.func @transform_10(%arg0: i32) -> (i32, i32) {
    %c0_i32 = arith.constant 0 : i32
    %c0_i32_0 = arith.constant 0 : i32
    %c0_i32_1 = arith.constant 0 : i32
    return %c0_i32, %c0_i32_0 : i32, i32
  }
  func.func @transform_11(%arg0: i32) -> (i32, i32) {
    %c0_i32 = arith.constant 0 : i32
    %c0_i32_0 = arith.constant 0 : i32
    %c0_i32_1 = arith.constant 0 : i32
    return %c0_i32, %c0_i32_0 : i32, i32
  }
  func.func @transform_12(%arg0: i32) -> (i32, i32) {
    %c0_i32 = arith.constant 0 : i32
    %c0_i32_0 = arith.constant 0 : i32
    %c0_i32_1 = arith.constant 0 : i32
    return %c0_i32, %c0_i32_0 : i32, i32
  }
  func.func @transform_13(%arg0: i32) -> (i32, i32) {
    %c0_i32 = arith.constant 0 : i32
    %c0_i32_0 = arith.constant 0 : i32
    %c0_i32_1 = arith.constant 0 : i32
    return %c0_i32, %c0_i32_0 : i32, i32
  }
  func.func @transform_14(%arg0: i32) -> (i32, i32) {
    %c0_i32 = arith.constant 0 : i32
    %c0_i32_0 = arith.constant 0 : i32
    %c0_i32_1 = arith.constant 0 : i32
    return %c0_i32, %c0_i32_0 : i32, i32
  }
  func.func @transform_15(%arg0: i32) -> (i32, i32) {
    %c0_i32 = arith.constant 0 : i32
    %c0_i32_0 = arith.constant 0 : i32
    %c0_i32_1 = arith.constant 0 : i32
    return %c0_i32, %c0_i32_0 : i32, i32
  }
  func.func @transform_16(%arg0: i32) -> (i32, i32, i32) {
    %c0_i32 = arith.constant 0 : i32
    %c0_i32_0 = arith.constant 0 : i32
    %c0_i32_1 = arith.constant 0 : i32
    return %arg0, %c0_i32, %c0_i32_0 : i32, i32, i32
  }
}

</mosaic_0001>

<bundles_post_ra>
// kernel: tpu_custom_call.1
= control target key start
LH: loop header
LB: loop body
LE: loop exit
PB: predicated region body
PF: predicated region fallthrough
CT: control target
= control target key end

     0   :  { %s5535_s0 = inlined_call_operand.vmem [shape: f32[2,16,64], index: 0, kind: input, shape index: {}]   ;;  %s5536_s1 = inlined_call_operand.vmem [shape: f32[2,16,256], index: 1, kind: input, shape index: {}]   ;;  %s5537_s2 = inlined_call_operand.vmem [shape: bf16[64,256], index: 2, kind: input, shape index: {}]   ;;  %s5538_s3 = inlined_call_operand.vmem [shape: f32[1,256], index: 3, kind: input, shape index: {}]   ;;  %s5539_s4 = inlined_call_operand.vmem [shape: f32[1,256], index: 4, kind: input, shape index: {}]   ;;  %s5540_s5 = inlined_call_operand.vmem [shape: bf16[32,288], index: 5, kind: input, shape index: {}]   ;;  %s5541_s6 = inlined_call_operand.vmem [shape: f32[32,1], index: 6, kind: input, shape index: {}]   ;;  %s5542_s7 = inlined_call_operand.vmem [shape: f32[32,1], index: 7, kind: input, shape index: {}]   ;;  %s5543_s8 = inlined_call_operand.vmem [shape: bf16[32,288], index: 8, kind: input, shape index: {}]   ;;  %s5544_s9 = inlined_call_operand.vmem [shape: f32[32,1], index: 9, kind: input, shape index: {}]   ;;  %s5545_s10 = inlined_call_operand.vmem [shape: f32[32,1], index: 10, kind: input, shape index: {}]   ;;  %s5546_s11 = inlined_call_operand.vmem [shape: f32[32,1], index: 11, kind: input, shape index: {}]   ;;  %s5547_s12 = inlined_call_operand.vmem [shape: f32[32,2], index: 12, kind: input, shape index: {}]   ;;  %s5548_s13 = inlined_call_operand.vmem [shape: f32[1,2], index: 13, kind: input, shape index: {}]   ;;  %s5549_s14 = inlined_call_operand.vmem [shape: f32[32,2], index: 14, kind: input, shape index: {}]   ;;  %s5550_s15 = inlined_call_operand.vmem [shape: f32[32,1], index: 15, kind: input, shape index: {}]   ;;  %s5551_s16 = inlined_call_operand.hbm [shape: f32[2,32,256], index: 16, kind: output, shape index: {}]  }
   0x1   :  { %5584 = sst [smem:[#allocation15_spill]] %s5535_s0 }
   0x2   :  { %5585 = sst [smem:[#allocation16_spill]] %s5551_s16 }
   0x3   :  { %21 = vsyncpa [#allocation6], 0 }
   0x4   :  { %23 = vsyncpa [#allocation6 + $0x1], 0  ;;  %s4198_s21 = smov 0   ;;  %s4200_s22 = smov 0  }
   0x5   :  { %s4202_s23 = smov 0   ;;  %s4204_s24 = smov 0  }
   0x6 LB: > { %5586 = sst [smem:[#allocation8_spill]] %s4081_s21  ;;  %s4219_s25 = sadd.s32 4294967295, %s4093_s24   ;;  %s4093_s24 = sphi %s4204_s24, %s5635_s24   ;;  %s4089_s23 = sphi %s4202_s23, %s5637_s23   ;;  %s4085_s22 = sphi %s4200_s22, %s5639_s22   ;;  %s4081_s21 = sphi %s4198_s21, %s5638_s21  }
   0x7   : > { %5587 = sst [smem:[#allocation9_spill]] %s4089_s23  ;;  %s3325_s26 = sadd.s32 4294967294, %s4093_s24  }
   0x8   : > { %5588 = sst [smem:[#allocation10_spill]] %s4093_s24  ;;  %s4223_s27 = sadd.s32 1, %s4093_s24  }
   0x9   : > { %5589 = sst [smem:[#allocation11_spill]] %s4223_s27  ;;  %s382_s28 = sadd.s32 1, %s4089_s23 }
   0xa   : > { %s379_s29 = ssub.s32 %s4093_s24, %s4223_s27  ;;  %p392_p0 = scmp.ne.s32.totalorder %s4089_s23, %s4085_s22 }
   0xb   : > { %p380_p1 = scmp.eq.s32.totalorder %s379_s29, 0  ;;  %p393_p2 = scmp.eq.s32.totalorder %s4219_s25, 1 }
   0xc   : > { %p398_p3 = scmp.ne.s32.totalorder %s4085_s22, %s4081_s21  ;;  %p399_p4 = scmp.eq.s32.totalorder %s3325_s26, 1 }
   0xd   : > { %s4234_s30 = scalar_select %p380_p1, %s4089_s23, %s382_s28  }
   0xe   : > { %p4236_p5 = por %p393_p2, %p392_p0  ;;  %p4240_p6 = por %p399_p4, %p398_p3 }
   0xf   : > { %5590 = sst [smem:[#allocation12_spill]] %s4234_s30  ;;  %p3328_p7 = scmp.ge.s32.totalorder %s4093_s24, 1 }
  0x10   : > { %s5591_s0 = scalar_select %p4236_p5, 1, 0 }
  0x11   : > { %s5593_s17 = scalar_select %p4240_p6, 1, 0 }
  0x12   : > { %5592 = sst [smem:[#allocation13_spill]] %s5591_s0  ;;  %p475_p8 = scmp.lt.s32.totalorder %s4093_s24, 3 }
  0x13   : > { %5594 = sst [smem:[#allocation14_spill]] %s5593_s17 }
  0x14   : > { %p476_p9 = pnand %p3328_p7, %p475_p8 }
  0x15   : > { %v3947_v0 = vld [vmem:[%s5537_s2 + $0x4] ss:$8 sps:$4 sm:$0xff] (!%p476_p9)   ;;  %p530_p10 = scmp.lt.s32.totalorder (!%p476_p9), %s4219_s25, 1  ;;  %v3949_v1 = vld [vmem:[%s5537_s2] ss:$8 sps:$4 sm:$0xff] (!%p476_p9)   ;;  %v4095_v2 = vmov (!%p476_p9), 0   ;;  %v732_v18 = vlaneseq (!%p476_p9) }
  0x16   : > { %479 = sbr.rel (%p476_p9) target bundleno = 1924 (0x784), region = 84  ;;  %653 = vmatprep.mubr.bf16.mxu0 (!%p476_p9), %v4095_v2  ;;  %3706 = vset.pattern.permute.xlu1 (!%p476_p9), %v4095_v2  ;;  %v3950_v3 = vld [vmem:[%s5537_s2 + $0x14] ss:$8 sps:$4 sm:$0xff] (!%p476_p9)   ;;  %v3952_v4 = vld [vmem:[%s5537_s2 + $0x10] ss:$8 sps:$4 sm:$0xff] (!%p476_p9)   ;;  %s5595_s26 = sld [smem:[#allocation15_spill]] (!%p476_p9) }
  0x17   : > { %621 = vmatprep.subr.bf16.mxu0 (!%p476_p9), %v3947_v0  ;;  %3705 = vset.pattern.permute.xlu0 (!%p476_p9), %v4095_v2  ;;  %v3953_v5 = vld [vmem:[%s5537_s2 + $0x24] ss:$8 sps:$4 sm:$0xff] (!%p476_p9)   ;;  %v3955_v6 = vld [vmem:[%s5537_s2 + $0x20] ss:$8 sps:$4 sm:$0xff] (!%p476_p9)   ;;  %v3956_v7 = vld [vmem:[%s5537_s2 + $0x34] ss:$8 sps:$4 sm:$0xff] (!%p476_p9)  }
  0x18   : > { %622 = vmatpush1.bf16.msra.mxu0 (!%p476_p9), %v3949_v1  ;;  %v3958_v10 = vld [vmem:[%s5537_s2 + $0x30] ss:$8 sps:$4 sm:$0xff] (!%p476_p9)   ;;  %vm617_vm0 = vcmask (!%p476_p9), 523264   ;;  %vm543_vm1 = vcmask (!%p476_p9), 277504   ;;  %vm676_vm2 = vcmask (!%p476_p9), 138240   ;;  %v4097_v16 = vmov (!%p476_p9), 0.0  }
  0x19   : > { %623 = vmatprep.subr.bf16.mxu0 (!%p476_p9), %v3950_v3  ;;  %548 = vst [vmem:[#allocation2 + $0x30] sm:$0xff] (!%p476_p9), %v4097_v16  ;;  %vm685_vm3 = vcmask (!%p476_p9), 1047688   ;;  %541 = vst [vmem:[#allocation2] sm:$0xff] (!%p476_p9), %v4097_v16  ;;  %v733_v21 = vshrl.u32 (!%p476_p9), %v732_v18, 7  ;;  %v843_v26 = vld [vmem:[%s5539_s4] sm:$0x3] (!%p476_p9) }
  0x1a   : > { %545 = vst [vmem:[#allocation2 + $0x18] sm:$0xff] (!%p476_p9), %v4097_v16  ;;  %551 = vst [vmem:[#allocation2 + $0x48] sm:$0xff] (!%p476_p9), %v4097_v16  ;;  %v947_v30 = vld [vmem:[%s5538_s3] sm:$0x3] (!%p476_p9)  ;;  %s4098_s17 = smov (!%p476_p9), 2   ;;  %s5579_s16 = smov (!%p476_p9), 32  }
  0x1b   : > { %554 = vst [vmem:[#allocation3] sm:$0xff] (!%p476_p9), %v4097_v16  ;;  %557 = vst [vmem:[#allocation3 + $0x18] sm:$0xff] (!%p476_p9), %v4097_v16  ;;  %v4303_v24 = vsub.s32 (!%p476_p9), 0, %v733_v21  ;;  %v4310_v27 = vsub.s32 (!%p476_p9), 1, %v733_v21  ;;  %v1124_v33 = vld [vmem:[%s5539_s4] sm:$0x3] (!%p476_p9) }
  0x1c   : > { %624 = vmatpush1.bf16.msra.mxu0 (!%p476_p9), %v3952_v4  ;;  %560 = vst [vmem:[#allocation3 + $0x30] sm:$0xff] (!%p476_p9), %v4097_v16  ;;  %563 = vst [vmem:[#allocation3 + $0x48] sm:$0xff] (!%p476_p9), %v4097_v16  ;;  %v1228_v36 = vld [vmem:[%s5538_s3] sm:$0x3] (!%p476_p9)  ;;  %vm857_vm4 = vcmask (!%p476_p9), 15360   ;;  %vm961_vm5 = vcmask (!%p476_p9), 130048  }
  0x1d   : > { %s531_s30 = scalar_select %p530_p10, %s4219_s25, 1  ;;  %625 = vmatprep.subr.bf16.mxu0 %v3953_v5  ;;  %550 = vst.msk [vmem:[#allocation2 + $0x40] sm:$0xff] %vm543_vm1, %v4097_v16  ;;  %544 = vst.msk [vmem:[#allocation2 + $0x10] sm:$0xff] %vm543_vm1, %v4097_v16  ;;  %v848_v29 = vrot.slane %v843_v26, %v4303_v24  ;;  %v852_v31 = vrot.slane %v843_v26, %v4310_v27  ;;  %v952_v32 = vrot.slane %v947_v30, %v4303_v24  ;;  %v1405_v39 = vld [vmem:[%s5539_s4] sm:$0x3]  ;;  %vm1242_vm6 = vcmask 261120  }
  0x1e   : > { %547 = vst.msk [vmem:[#allocation2 + $0x28] sm:$0xff] %vm543_vm1, %v4097_v16  ;;  %553 = vst.msk [vmem:[#allocation2 + $0x58] sm:$0xff] %vm543_vm1, %v4097_v16  ;;  %v956_v34 = vrot.slane %v947_v30, %v4310_v27  ;;  %v1129_v35 = vrot.slane %v1124_v33, %v4303_v24  ;;  %v1133_v37 = vrot.slane %v1124_v33, %v4310_v27  ;;  %v730_v47 = vld [vmem:[%s5538_s3] sm:$0x3]  ;;  %s5569_s18 = smov 126   ;;  %s5567_s19 = smov 112  }
  0x1f   : > { %s3386_s23 = sshll.u32 %s531_s30, 4  ;;  %s3387_s27 = sshll.u32 %s531_s30, 5  ;;  %556 = vst.msk [vmem:[#allocation3 + $0x10] sm:$0xff] %vm543_vm1, %v4097_v16  ;;  %559 = vst.msk [vmem:[#allocation3 + $0x28] sm:$0xff] %vm543_vm1, %v4097_v16  ;;  %v1233_v38 = vrot.slane %v1228_v36, %v4303_v24  ;;  %v1237_v40 = vrot.slane %v1228_v36, %v4310_v27  ;;  %v1414_v41 = vrot.slane %v1405_v39, %v4310_v27  ;;  %vm1138_vm7 = vcmask 146432  }
  0x20   : > { %s4269_s28 = scalar_lea.vmem %s5536_s1, %s3387_s27  ;;  %s534_s0 = scalar_lea.vmem %s5595_s26, %s3386_s23  ;;  %626 = vmatpush1.bf16.msra.mxu0 %v3955_v6  ;;  %562 = vst.msk [vmem:[#allocation3 + $0x40] sm:$0xff] %vm543_vm1, %v4097_v16  ;;  %565 = vst.msk [vmem:[#allocation3 + $0x58] sm:$0xff] %vm543_vm1, %v4097_v16  ;;  %v1410_v42 = vrot.slane %v1405_v39, %v4303_v24  ;;  %v739_v51 = vrot.slane %v730_v47, %v4310_v27  ;;  %v735_v53 = vrot.slane %v730_v47, %v4303_v24  ;;  %vm806_vm8 = vcmask 1039360  }
  0x21   : > { %v692_v8 = vld [vmem:[%s4269_s28] sm:$0xff]  ;;  %s4096_s30 = smov 17   ;;  %v693_v9 = vld [vmem:[%s4269_s28 + $0x8] sm:$0xff]  ;;  %627 = vmatprep.subr.bf16.mxu0 %v3956_v7  ;;  %v694_v25 = vld [vmem:[%s4269_s28 + $0x10] sm:$0xff]  ;;  %s4100_s26 = smov 18   ;;  %vm910_vm9 = vcmask 1031168  }
  0x22   : > { %700 = vrot.lane.b32.xlu0 %v692_v8, %s4096_s30  ;;  %702 = vrot.lane.b32.xlu1 %v693_v9, %s4096_s30  ;;  %v566_v11 = vld [vmem:[%s534_s0] sm:$0xff]  ;;  %v567_v12 = vld [vmem:[%s534_s0 + $0x8] sm:$0xff]  ;;  %s5575_s23 = smov 34   ;;  %s5573_s27 = smov 127   ;;  %vm1014_vm10 = vcmask 916480   ;;  %vm1087_vm11 = vcmask 908288  }
  0x23   : > { %v568_v13 = vpack.c.bf16 %v567_v12, %v566_v11  ;;  %v695_v28 = vld [vmem:[%s4269_s28 + $0x18] sm:$0xff]  ;;  %s4099_s28 = smov 16   ;;  %s5571_s20 = smov 111   ;;  %vm1191_vm12 = vcmask 900096   ;;  %vm5583_vm13 = vcmask 785408   ;;  %vm5582_vm14 = vcmask 777216  }
  0x24   : > { %628 = vmatpush1.bf16.msra.mxu0 %v3958_v10  ;;  %s5563_s21 = smov 110   ;;  %s5561_s24 = smov 96   ;;  %vm5581_vm15 = vcmask 769024  }
  0x25   : > { %s5565_s0 = smov 95   ;;  %s5602_s29 = smov 110  }
  0x27   : > { %3342 = vmatmul.mubr.msk.bf16.vlgmr.msra.gmra.mrb[0].mxu0 %vm617_vm0, %v568_v13 }
  0x94   : > { %v701_v14 = vpop.permute.xlu0 %700  ;;  %v703_v15 = vpop.permute.xlu1 %702 }
  0x95   : > { %v4289_v17 = vsel %vm676_vm2, %v701_v14, %v703_v15  ;;  %716 = vst.msk [vmem:[#allocation2 + $0x30] sm:$0xff] %vm685_vm3, %v701_v14 }
  0x96   : > { %718 = vst.msk [vmem:[#allocation2 + $0x40] sm:$0xff] %vm676_vm2, %v703_v15  ;;  %v747_v1 = vmul.f32 %v739_v51, %v4289_v17 }
  0x9c   : > { %v4387_v4 = vld [vmem:[#allocation2 + $0x30] sm:$0xff] }
  0x9d   : > { %v4345_v43 = vld [vmem:[#allocation2 + $0x40] sm:$0xff]  ;;  %v746_v11 = vmul.f32 %v4387_v4, %v735_v53 }
  0x9e   : > { %v4351_v44 = vpack.i.bf16 %v4345_v43, %v4289_v17 }
  0xfa   : > { %v655_v19 = vpop.f32.mrb[0].mxu0 }
  0xfb   : > { %668 = vrot.lane.b32.xlu0 %v655_v19, %s4096_s30  ;;  %v657_v20 = vpop.f32.mrb[1].mxu0 }
  0xfc   : > { %v659_v22 = vpop.f32.mrb[2].mxu0 }
  0xfd   : > { %672 = vrot.lane.b32.xlu1 %v659_v22, %s4096_s30  ;;  %v661_v23 = vpop.f32.mrb[3].mxu0 }
  0xff   : > { %670 = vrot.lane.b32.xlu0 %v657_v20, %s4096_s30 }
 0x101   : > { %674 = vrot.lane.b32.xlu1 %v661_v23, %s4096_s30 }
 0x103   : > { %704 = vrot.lane.b32.xlu0 %v694_v25, %s4096_s30 }
 0x105   : > { %706 = vrot.lane.b32.xlu1 %v695_v28, %s4096_s30 }
 0x107   : > { %853 = vrot.lane.b32.xlu0 %v848_v29, %s4098_s17 }
 0x109   : > { %855 = vrot.lane.b32.xlu1 %v852_v31, %s4098_s17 }
 0x10b   : > { %957 = vrot.lane.b32.xlu0 %v952_v32, %s4099_s28 }
 0x10d   : > { %959 = vrot.lane.b32.xlu1 %v956_v34, %s4099_s28 }
 0x10f   : > { %1134 = vrot.lane.b32.xlu0 %v1129_v35, %s4100_s26 }
 0x111   : > { %1136 = vrot.lane.b32.xlu1 %v1133_v37, %s4100_s26 }
 0x113   : > { %1238 = vrot.lane.b32.xlu0 %v1233_v38, %s5579_s16 }
 0x115   : > { %1240 = vrot.lane.b32.xlu1 %v1237_v40, %s5579_s16 }
 0x117   : > { %1417 = vrot.lane.b32.xlu0 %v1414_v41, %s5575_s23 }
 0x119   : > { %1415 = vrot.lane.b32.xlu1 %v1410_v42, %s5575_s23  ;;  %s5597_s23 = smov 34  }
 0x11d   : > { %3466 = vrot.lane.b32.xlu1 %v4351_v44, %s5573_s27 }
 0x16d   : > { %v669_v45 = vpop.permute.xlu0 %668 }
 0x16e   : > { %686 = vst.msk [vmem:[#allocation2] sm:$0xff] %vm685_vm3, %v669_v45 }
 0x16f   : > { %v673_v46 = vpop.permute.xlu1 %672 }
 0x170   : > { %689 = vst.msk [vmem:[#allocation2 + $0x18] sm:$0xff] %vm685_vm3, %v673_v46 }
 0x171   : > { %v671_v48 = vpop.permute.xlu0 %670 }
 0x172   : > { %v4361_v49 = vsel %vm676_vm2, %v669_v45, %v671_v48  ;;  %688 = vst.msk [vmem:[#allocation2 + $0x10] sm:$0xff] %vm676_vm2, %v671_v48 }
 0x173   : > { %v675_v50 = vpop.permute.xlu1 %674  ;;  %v743_v55 = vmul.f32 %v739_v51, %v4361_v49 }
 0x174   : > { %v4366_v52 = vsel %vm676_vm2, %v673_v46, %v675_v50  ;;  %691 = vst.msk [vmem:[#allocation2 + $0x28] sm:$0xff] %vm676_vm2, %v675_v50 }
 0x175   : > { %v705_v54 = vpop.permute.xlu0 %704  ;;  %v745_v56 = vmul.f32 %v739_v51, %v4366_v52  ;;  %v4372_v57 = vld [vmem:[#allocation2] sm:$0xff] }
 0x176   : > { %719 = vst.msk [vmem:[#allocation2 + $0x48] sm:$0xff] %vm685_vm3, %v705_v54  ;;  %v742_v62 = vmul.f32 %v735_v53, %v4372_v57 }
 0x177   : > { %v707_v58 = vpop.permute.xlu1 %706  ;;  %v1569_v59 = vpack.c.bf16 %v745_v56, %v743_v55  ;;  %v4375_v60 = vld [vmem:[#allocation2 + $0x18] sm:$0xff] }
 0x178   : > { %v4378_v61 = vsel %vm676_vm2, %v705_v54, %v707_v58  ;;  %721 = vst.msk [vmem:[#allocation2 + $0x58] sm:$0xff] %vm676_vm2, %v707_v58  ;;  %v744_v63 = vmul.f32 %v735_v53, %v4375_v60 }
 0x179   : > { %v4383_v0 = vpop.permute.xlu0 %853  ;;  %1648 = vmatprep.subr.bf16.mxu1 %v1569_v59  ;;  %v749_v3 = vmul.f32 %v739_v51, %v4378_v61  ;;  %v4454_v40 = vld [vmem:[#allocation2 + $0x10] sm:$0xff] }
 0x17a   : > { %v1568_v5 = vpack.c.bf16 %v744_v63, %v742_v62  ;;  %v868_v31 = vmul.f32 %v4383_v0, %v4387_v4  ;;  %v4471_v48 = vpack.i.bf16 %v4454_v40, %v4361_v49  ;;  %v4503_v62 = vpack.i.bf16 %v4375_v60, %v4372_v57 }
 0x17b   : > { %v4389_v6 = vpop.permute.xlu1 %855  ;;  %v1571_v7 = vpack.c.bf16 %v749_v3, %v747_v1  ;;  %v4493_v58 = vld [vmem:[#allocation2 + $0x28] sm:$0xff] }
 0x17c   : > { %1649 = vmatpush1.bf16.msra.mxu1 %v1568_v5  ;;  %v4394_v8 = vsel %vm857_vm4, %v4383_v0, %v4389_v6  ;;  %v870_v14 = vmul.f32 %v4389_v6, %v4345_v43 }
 0x17d   : > { %v4396_v9 = vpop.permute.xlu0 %957  ;;  %v4398_v10 = vld [vmem:[#allocation2 + $0x48] sm:$0xff]  ;;  %1650 = vmatprep.subr.bf16.mxu1 %v1571_v7  ;;  %v869_v13 = vmul.f32 %v4394_v8, %v4289_v17  ;;  %v872_v26 = vmul.f32 %v4394_v8, %v4378_v61  ;;  %v4521_v7 = vpack.i.bf16 %v4493_v58, %v4366_v52 }
 0x17e   : > { %v4403_v12 = vpack.i.bf16 %v4398_v10, %v4387_v4  ;;  %v748_v15 = vmul.f32 %v4398_v10, %v735_v53  ;;  %v871_v28 = vmul.f32 %v4383_v0, %v4398_v10  ;;  %v972_v42 = vmul.f32 %v4396_v9, %v4387_v4 }
 0x17f   : > { %v4410_v16 = vpop.permute.xlu1 %959  ;;  %v4412_v18 = vld [vmem:[#allocation2 + $0x58] sm:$0xff]  ;;  %v3480_v25 = vpack.i.bf16 %v870_v14, %v869_v13  ;;  %v975_v45 = vmul.f32 %v4396_v9, %v4398_v10 }
 0x180   : > { %3476 = vrot.lane.b32.xlu1 %v4403_v12, %s5573_s27  ;;  %v4418_v19 = vpack.i.bf16 %v4412_v18, %v4378_v61  ;;  %v1570_v20 = vpack.c.bf16 %v748_v15, %v746_v11  ;;  %v873_v21 = vmul.f32 %v4389_v6, %v4412_v18  ;;  %v4425_v22 = vsel %vm961_vm5, %v4396_v9, %v4410_v16 }
 0x181   : > { %v4427_v23 = vpop.permute.xlu0 %1134  ;;  %v976_v32 = vmul.f32 %v4425_v22, %v4378_v61  ;;  %v977_v33 = vmul.f32 %v4410_v16, %v4412_v18  ;;  %v3490_v34 = vpack.i.bf16 %v871_v28, %v868_v31  ;;  %v973_v35 = vmul.f32 %v4425_v22, %v4289_v17 }
 0x182   : > { %3471 = vrot.lane.b32.xlu0 %v4418_v19, %s5573_s27  ;;  %1651 = vmatpush1.bf16.msra.mxu1 %v1570_v20  ;;  %v3485_v30 = vpack.i.bf16 %v873_v21, %v872_v26  ;;  %v974_v36 = vmul.f32 %v4410_v16, %v4345_v43  ;;  %v3505_v53 = vpack.i.bf16 %v975_v45, %v972_v42 }
 0x183   : > { %v4435_v29 = vpop.permute.xlu1 %1136  ;;  %v3500_v39 = vpack.i.bf16 %v977_v33, %v976_v32  ;;  %v866_v26 = vmul.f32 %v4394_v8, %v4366_v52  ;;  %v867_v28 = vmul.f32 %v4389_v6, %v4493_v58  ;;  %v864_v31 = vmul.f32 %v4389_v6, %v4454_v40 }
 0x184   : > { %3481 = vrot.lane.b32.xlu1 %v3480_v25, %s5569_s18  ;;  %v3495_v41 = vpack.i.bf16 %v974_v36, %v973_v35  ;;  %v865_v35 = vmul.f32 %v4383_v0, %v4375_v60  ;;  %v971_v6 = vmul.f32 %v4410_v16, %v4493_v58  ;;  %v1139_v42 = vsel %vm1138_vm7, %v4427_v23, %v4435_v29 }
 0x185   : > { %v4451_v38 = vpop.permute.xlu0 %1238  ;;  %v3560_v32 = vpack.i.bf16 %v867_v28, %v866_v26  ;;  %v1151_v26 = vmul.f32 %v4435_v29, %v4345_v43 }
 0x186   : > { %3486 = vrot.lane.b32.xlu0 %v3485_v30, %s5569_s18  ;;  %v4475_v50 = vmul.f32 %v4451_v38, %v4372_v57  ;;  %v4483_v54 = vmul.f32 %v4451_v38, %v4375_v60  ;;  %v863_v30 = vmul.f32 %v4394_v8, %v4361_v49  ;;  %v970_v8 = vmul.f32 %v4425_v22, %v4366_v52 }
 0x187   : > { %v4449_v37 = vpop.permute.xlu1 %1240 }
 0x188   : > { %3491 = vrot.lane.b32.xlu1 %v3490_v34, %s5569_s18  ;;  %v4464_v46 = vsel %vm1242_vm6, %v4451_v38, %v4449_v37  ;;  %v4491_v56 = vmul.f32 %v4449_v37, %v4412_v18  ;;  %v3615_v63 = vpack.i.bf16 %v4483_v54, %v4475_v50  ;;  %v3535_v33 = vpack.i.bf16 %v864_v31, %v863_v30  ;;  %v1757_v50 = vld [vmem:[%s5541_s6 + $0x18] sm:$0xff]  ;;  %v1788_v54 = vld [vmem:[%s5542_s7 + $0x10] sm:$0xff] }
 0x189   : > { %v4477_v51 = vpop.permute.xlu0 %1417  ;;  %v4487_v55 = vmul.f32 %v4464_v46, %v4378_v61  ;;  %v862_v34 = vmul.f32 %v4383_v0, %v4372_v57  ;;  %v3575_v0 = vpack.i.bf16 %v971_v6, %v970_v8  ;;  %v1149_v31 = vmul.f32 %v4427_v23, %v4387_v4 }
 0x18a   : > { %3501 = vrot.lane.b32.xlu0 %v3500_v39, %s5567_s19  ;;  %v4515_v5 = vmul.f32 %v4477_v51, %v4454_v40  ;;  %v4539_v20 = vmul.f32 %v4477_v51, %v4412_v18  ;;  %v967_v39 = vmul.f32 %v4425_v22, %v4361_v49  ;;  %v969_v22 = vmul.f32 %v4396_v9, %v4375_v60 }
 0x18b   : > { %v4466_v47 = vpop.permute.xlu1 %1415  ;;  %v3630_v1 = vpack.i.bf16 %v4491_v56, %v4487_v55  ;;  %v3540_v36 = vpack.i.bf16 %v865_v35, %v862_v34  ;;  %v1147_v35 = vmul.f32 %v1139_v42, %v4366_v52  ;;  %v1148_v8 = vmul.f32 %v4435_v29, %v4493_v58  ;;  %v1789_v55 = vld [vmem:[%s5542_s7 + $0x18] sm:$0xff] }
 0x18c   : > { %3496 = vrot.lane.b32.xlu1 %v3495_v41, %s5567_s19  ;;  %v4498_v59 = vsel %vm543_vm1, %v4466_v47, %v4477_v51  ;;  %v4525_v11 = vmul.f32 %v4466_v47, %v4372_v57  ;;  %v4529_v13 = vmul.f32 %v4466_v47, %v4375_v60  ;;  %v968_v41 = vmul.f32 %v4410_v16, %v4454_v40 }
 0x18d   : > { %v4511_v3 = vmul.f32 %v4498_v59, %v4361_v49  ;;  %v4535_v15 = vmul.f32 %v4498_v59, %v4378_v61  ;;  %v1150_v16 = vmul.f32 %v1139_v42, %v4289_v17 }
 0x18e   : > { %3511 = vrot.lane.b32.xlu0 %v4471_v48, %s5573_s27  ;;  %v3680_v21 = vpack.i.bf16 %v4529_v13, %v4525_v11  ;;  %v3545_v45 = vpack.i.bf16 %v968_v41, %v967_v39  ;;  %v1146_v39 = vmul.f32 %v4427_v23, %v4375_v60  ;;  %v3620_v41 = vpack.i.bf16 %v1148_v8, %v1147_v35 }
 0x18f   : > { %v3675_v14 = vpack.i.bf16 %v4515_v5, %v4511_v3  ;;  %v3695_v25 = vpack.i.bf16 %v4539_v20, %v4535_v15  ;;  %v3595_v30 = vpack.i.bf16 %v1151_v26, %v1150_v16  ;;  %v1252_v16 = vmul.f32 %v4449_v37, %v4493_v58 }
 0x190   : > { %3506 = vrot.lane.b32.xlu1 %v3505_v53, %s5567_s19  ;;  %v966_v53 = vmul.f32 %v4396_v9, %v4372_v57  ;;  %v1152_v9 = vmul.f32 %v4427_v23, %v4398_v10 }
 0x192   : > { %3516 = vrot.lane.b32.xlu0 %v4503_v62, %s5573_s27  ;;  %v3550_v28 = vpack.i.bf16 %v969_v22, %v966_v53  ;;  %v3605_v34 = vpack.i.bf16 %v1152_v9, %v1149_v31  ;;  %v1153_v22 = vmul.f32 %v1139_v42, %v4378_v61  ;;  %v1249_v61 = vmul.f32 %v4449_v37, %v4454_v40 }
 0x194   : > { %3531 = vrot.lane.b32.xlu1 %v4521_v7, %s5573_s27  ;;  %s5598_s27 = smov 127  }
 0x196   : > { %3521 = vrot.lane.b32.xlu0 %v4471_v48, %s5571_s20 }
 0x198   : > { %3556 = vrot.lane.b32.xlu1 %v4521_v7, %s5571_s20 }
 0x19a   : > { %3526 = vrot.lane.b32.xlu0 %v4503_v62, %s5571_s20 }
 0x19c   : > { %3561 = vrot.lane.b32.xlu1 %v3560_v32, %s5569_s18  ;;  %v1144_v32 = vmul.f32 %v1139_v42, %v4361_v49  ;;  %v1256_v42 = vmul.f32 %v4451_v38, %v4398_v10 }
 0x19e   : > { %3536 = vrot.lane.b32.xlu0 %v3535_v33, %s5569_s18  ;;  %v1145_v33 = vmul.f32 %v4435_v29, %v4454_v40  ;;  %v1430_v40 = vmul.f32 %v4498_v59, %v4289_v17 }
 0x1a0   : > { %3566 = vrot.lane.b32.xlu1 %v4351_v44, %s5571_s20  ;;  %v3585_v6 = vpack.i.bf16 %v1145_v33, %v1144_v32 }
 0x1a2   : > { %3541 = vrot.lane.b32.xlu0 %v3540_v36, %s5569_s18  ;;  %v1143_v36 = vmul.f32 %v4427_v23, %v4372_v57  ;;  %v1154_v57 = vmul.f32 %v4435_v29, %v4412_v18  ;;  %v1251_v23 = vmul.f32 %v4464_v46, %v4366_v52  ;;  %v1253_v29 = vmul.f32 %v4451_v38, %v4387_v4 }
 0x1a4   : > { %3576 = vrot.lane.b32.xlu1 %v3575_v0, %s5567_s19  ;;  %v1254_v0 = vmul.f32 %v4464_v46, %v4289_v17  ;;  %v3590_v53 = vpack.i.bf16 %v1146_v39, %v1143_v36  ;;  %v3600_v26 = vpack.i.bf16 %v1154_v57, %v1153_v22  ;;  %v3635_v18 = vpack.i.bf16 %v1252_v16, %v1251_v23 }
 0x1a5   : > { %v3640_v31 = vpack.i.bf16 %v1256_v42, %v1253_v29  ;;  %v1432_v17 = vmul.f32 %v4466_v47, %v4398_v10  ;;  %v1786_v10 = vld [vmem:[%s5542_s7] sm:$0xff] }
 0x1a6   : > { %3546 = vrot.lane.b32.xlu0 %v3545_v45, %s5567_s19  ;;  %v1255_v45 = vmul.f32 %v4449_v37, %v4345_v43  ;;  %v1428_v37 = vmul.f32 %v4477_v51, %v4493_v58 }
 0x1a8   : > { %3581 = vrot.lane.b32.xlu1 %v4403_v12, %s5571_s20  ;;  %v3625_v60 = vpack.i.bf16 %v1255_v45, %v1254_v0 }
 0x1aa   : > { %3551 = vrot.lane.b32.xlu0 %v3550_v28, %s5567_s19  ;;  %v1248_v28 = vmul.f32 %v4464_v46, %v4361_v49  ;;  %v1427_v49 = vmul.f32 %v4498_v59, %v4366_v52  ;;  %v1431_v52 = vmul.f32 %v4477_v51, %v4345_v43  ;;  %v1429_v46 = vmul.f32 %v4466_v47, %v4387_v4  ;;  %v1755_v43 = vld [vmem:[%s5541_s6 + $0x8] sm:$0xff]  ;;  %v1754_v4 = vld [vmem:[%s5541_s6] sm:$0xff]  ;;  %v1756_v47 = vld [vmem:[%s5541_s6 + $0x10] sm:$0xff]  ;;  %v3467_v51 = vpop.permute.xlu1 %3466  ;;  %s5604_s19 = smov 95  }
 0x1ab   : > { %v3468_v32 = vunpack.i.l.bf16 %v3467_v51 }
 0x1ac   : > { %3596 = vrot.lane.b32.xlu1 %v3595_v30, %s5563_s21  ;;  %v3610_v30 = vpack.i.bf16 %v1249_v61, %v1248_v28  ;;  %v3685_v38 = vpack.i.bf16 %v1428_v37, %v1427_v49 }
 0x1ae   : > { %3571 = vrot.lane.b32.xlu0 %v4418_v19, %s5571_s20  ;;  %s5596_s20 = smov 32  }
 0x1b0   : > { %3606 = vrot.lane.b32.xlu1 %v3605_v34, %s5563_s21 }
 0x1b2   : > { %3586 = vrot.lane.b32.xlu0 %v3585_v6, %s5563_s21 }
 0x1b4   : > { %3621 = vrot.lane.b32.xlu1 %v3620_v41, %s5563_s21 }
 0x1b6   : > { %3591 = vrot.lane.b32.xlu0 %v3590_v53, %s5563_s21 }
 0x1b8   : > { %3626 = vrot.lane.b32.xlu1 %v3625_v60, %s5561_s24 }
 0x1ba   : > { %3601 = vrot.lane.b32.xlu0 %v3600_v26, %s5563_s21  ;;  %s5577_s21 = smov 94  }
 0x1bc   : > { %3636 = vrot.lane.b32.xlu1 %v3635_v18, %s5561_s24 }
 0x1be   : > { %3611 = vrot.lane.b32.xlu0 %v3610_v30, %s5561_s24 }
 0x1c0   : > { %3641 = vrot.lane.b32.xlu1 %v3640_v31, %s5561_s24 }
 0x1c2   : > { %3616 = vrot.lane.b32.xlu0 %v3615_v63, %s5561_s24 }
 0x1c4   : > { %3651 = vrot.lane.b32.xlu1 %v4521_v7, %s5565_s0 }
 0x1c6   : > { %3631 = vrot.lane.b32.xlu0 %v3630_v1, %s5561_s24  ;;  %s5601_s24 = smov 112  }
 0x1c8   : > { %3661 = vrot.lane.b32.xlu1 %v4351_v44, %s5565_s0  ;;  %v3961_v44 = vld [vmem:[%s5540_s5 + $0x4] ss:$12 sps:$4 sm:$0xff]  }
 0x1c9   : > { %1680 = vmatprep.mubr.bf16.mxu1 %v3961_v44 }
 0x1ca   : > { %3646 = vrot.lane.b32.xlu0 %v4471_v48, %s5565_s0  ;;  %v3700_v48 = vpack.i.bf16 %v1432_v17, %v1429_v46 }
 0x1cc   : > { %3671 = vrot.lane.b32.xlu1 %v4403_v12, %s5565_s0  ;;  %v3690_v12 = vpack.i.bf16 %v1431_v52, %v1430_v40 }
 0x1ce   : > { %3656 = vrot.lane.b32.xlu0 %v4503_v62, %s5565_s0 }
 0x1d0   : > { %3686 = vrot.lane.b32.xlu1 %v3685_v38, %s5577_s21 }
 0x1d2   : > { %3666 = vrot.lane.b32.xlu0 %v4418_v19, %s5565_s0  ;;  %v1787_v19 = vld [vmem:[%s5542_s7 + $0x8] sm:$0xff]  ;;  %s5600_s0 = smov 126  }
 0x1d4   : > { %3691 = vrot.lane.b32.xlu1 %v3690_v12, %s5577_s21 }
 0x1d6   : > { %3676 = vrot.lane.b32.xlu0 %v3675_v14, %s5577_s21 }
 0x1d8   : > { %3701 = vrot.lane.b32.xlu1 %v3700_v48, %s5577_s21 }
 0x1da   : > { %3681 = vrot.lane.b32.xlu0 %v3680_v21, %s5577_s21 }
 0x1dc   : > { %1765 = vperm.xlu1 %3706, %v1755_v43  }
 0x1de   : > { %3696 = vrot.lane.b32.xlu0 %v3695_v25, %s5577_s21  ;;  %v3469_v25 = vunpack.i.h.bf16 %v3467_v51  ;;  %s5599_s21 = smov 111  }
 0x1e0   : > { %1792 = vperm.xlu1 %3706, %v1786_v10   ;;  %v812_v23 = vsel %vm806_vm8, %v3468_v32, %v3469_v25 }
 0x1e2   : > { %1760 = vperm.xlu0 %3705, %v1754_v4  }
 0x1e4   : > { %1770 = vperm.xlu1 %3706, %v1756_v47  }
 0x1e6   : > { %1797 = vperm.xlu0 %3705, %v1787_v19  }
 0x1e8   : > { %1802 = vperm.xlu1 %3706, %v1788_v54  }
 0x1ea   : > { %1775 = vperm.xlu0 %3705, %v1757_v50  }
 0x1ee   : > { %1807 = vperm.xlu0 %3705, %v1789_v55  }
 0x1f2   : > { %v3477_v56 = vpop.permute.xlu1 %3476 }
 0x1f3   : > { %v3479_v45 = vunpack.i.h.bf16 %v3477_v56  ;;  %v3478_v53 = vunpack.i.l.bf16 %v3477_v56 }
 0x1f4   : > { %v3472_v58 = vpop.permute.xlu0 %3471 }
 0x1f5   : > { %v3474_v11 = vunpack.i.h.bf16 %v3472_v58  ;;  %v3473_v13 = vunpack.i.l.bf16 %v3472_v58  ;;  %v811_v18 = vsel %vm806_vm8, %v3478_v53, %v3468_v32 }
 0x1f6   : > { %v4712_v59 = vpop.permute.xlu1 %3481 }
 0x1f7   : > { %v814_v6 = vsel %vm806_vm8, %v3473_v13, %v3474_v11  ;;  %v813_v28 = vsel %vm806_vm8, %v3479_v45, %v3473_v13  ;;  %v3484_v44 = vunpack.i.h.bf16 %v4712_v59  ;;  %v3483_v52 = vunpack.i.l.bf16 %v4712_v59 }
 0x1f8   : > { %v4714_v62 = vpop.permute.xlu0 %3486  ;;  %v1575_v26 = vpack.c.bf16 %v814_v6, %v812_v23  ;;  %v1574_v30 = vpack.c.bf16 %v813_v28, %v811_v18 }
 0x1f9   : > { %v3489_v49 = vunpack.i.h.bf16 %v4714_v62  ;;  %v3488_v37 = vunpack.i.l.bf16 %v4714_v62  ;;  %v916_v54 = vsel %vm910_vm9, %v3483_v52, %v3484_v44 }
 0x1fa   : > { %v4716_v63 = vpop.permute.xlu1 %3491 }
 0x1fb   : > { %v3494_v48 = vunpack.i.h.bf16 %v4716_v63  ;;  %v3493_v10 = vunpack.i.l.bf16 %v4716_v63  ;;  %v918_v50 = vsel %vm910_vm9, %v3488_v37, %v3489_v49 }
 0x1fc   : > { %v4718_v1 = vpop.permute.xlu0 %3501  ;;  %v1579_v13 = vpack.c.bf16 %v918_v50, %v916_v54 }
 0x1fd   : > { %v3503_v32 = vunpack.i.l.bf16 %v4718_v1 }
 0x1fe   : > { %v4720_v3 = vpop.permute.xlu1 %3496 }
 0x1ff   : > { %v3499_v62 = vunpack.i.h.bf16 %v4720_v3 }
 0x200   : > { %v3512_v5 = vpop.permute.xlu0 %3511 }
 0x201   : > { %v3514_v15 = vunpack.i.h.bf16 %v3512_v5  ;;  %v3513_v20 = vunpack.i.l.bf16 %v3512_v5  ;;  %v3498_v5 = vunpack.i.l.bf16 %v4720_v3 }
 0x202   : > { %v4722_v7 = vpop.permute.xlu1 %3506 }
 0x203   : > { %v808_v36 = vsel %vm806_vm8, %v3513_v20, %v3514_v15 }
 0x204   : > { %v3517_v14 = vpop.permute.xlu0 %3516 }
 0x205   : > { %v3518_v21 = vunpack.i.l.bf16 %v3517_v14  ;;  %v3519_v33 = vunpack.i.h.bf16 %v3517_v14 }
 0x206   : > { %v3532_v9 = vpop.permute.xlu1 %3531 }
 0x207   : > { %v3534_v34 = vunpack.i.h.bf16 %v3532_v9  ;;  %v3533_v35 = vunpack.i.l.bf16 %v3532_v9  ;;  %v807_v41 = vsel %vm806_vm8, %v3518_v21, %v3513_v20  ;;  %v915_v20 = vsel %vm910_vm9, %v3493_v10, %v3483_v52 }
 0x208   : > { %v4724_v8 = vpop.permute.xlu0 %3521  ;;  %v917_v21 = vsel %vm910_vm9, %v3494_v48, %v3488_v37  ;;  %v3504_v9 = vunpack.i.h.bf16 %v4718_v1 }
 0x209   : > { %v810_v39 = vsel %vm806_vm8, %v3533_v35, %v3534_v34  ;;  %v809_v0 = vsel %vm806_vm8, %v3519_v33, %v3533_v35  ;;  %v1578_v35 = vpack.c.bf16 %v917_v21, %v915_v20  ;;  %v3524_v28 = vunpack.i.h.bf16 %v4724_v8 }
 0x20a   : > { %v4731_v22 = vpop.permute.xlu1 %3556  ;;  %v1573_v57 = vpack.c.bf16 %v810_v39, %v808_v36  ;;  %v1572_v60 = vpack.c.bf16 %v809_v0, %v807_v41  ;;  %v1020_v36 = vsel %vm1014_vm10, %v3498_v5, %v3499_v62  ;;  %v3509_v39 = vunpack.i.h.bf16 %v4722_v7 }
 0x20b   : > { %v3508_v41 = vunpack.i.l.bf16 %v4722_v7  ;;  %v3559_v53 = vunpack.i.h.bf16 %v4731_v22  ;;  %v3558_v1 = vunpack.i.l.bf16 %v4731_v22  ;;  %v3523_v7 = vunpack.i.l.bf16 %v4724_v8 }
 0x20c   : > { %1652 = vmatprep.subr.bf16.mxu1 %v1573_v57  ;;  %v4734_v16 = vpop.permute.xlu0 %3526 }
 0x20d   : > { %1653 = vmatpush1.bf16.msra.mxu1 %v1572_v60  ;;  %v3529_v22 = vunpack.i.h.bf16 %v4734_v16 }
 0x20e   : > { %v3562_v61 = vpop.permute.xlu1 %3561  ;;  %1654 = vmatprep.subr.bf16.mxu1 %v1575_v26  ;;  %v1022_v26 = vsel %vm1014_vm10, %v3503_v32, %v3504_v9 }
 0x20f   : > { %v3564_v29 = vunpack.i.h.bf16 %v3562_v61  ;;  %v3563_v42 = vunpack.i.l.bf16 %v3562_v61 }
 0x210   : > { %v3537_v31 = vpop.permute.xlu0 %3536 }
 0x211   : > { %v3539_v38 = vunpack.i.h.bf16 %v3537_v31  ;;  %v3538_v40 = vunpack.i.l.bf16 %v3537_v31  ;;  %1655 = vmatpush1.bf16.msra.mxu1 %v1574_v30  ;;  %v914_v17 = vsel %vm910_vm9, %v3563_v42, %v3564_v29  ;;  %v1583_v29 = vpack.c.bf16 %v1022_v26, %v1020_v36 }
 0x212   : > { %v4742_v12 = vpop.permute.xlu1 %3566  ;;  %v1019_v30 = vsel %vm1014_vm10, %v3508_v41, %v3498_v5  ;;  %v1021_v31 = vsel %vm1014_vm10, %v3509_v39, %v3503_v32 }
 0x213   : > { %v912_v46 = vsel %vm910_vm9, %v3538_v40, %v3539_v38  ;;  %v3569_v8 = vunpack.i.h.bf16 %v4742_v12  ;;  %v3568_v44 = vunpack.i.l.bf16 %v4742_v12 }
 0x214   : > { %v3542_v43 = vpop.permute.xlu0 %3541  ;;  %v1577_v4 = vpack.c.bf16 %v914_v17, %v912_v46  ;;  %v1582_v46 = vpack.c.bf16 %v1021_v31, %v1019_v30 }
 0x215   : > { %v3544_v19 = vunpack.i.h.bf16 %v3542_v43  ;;  %v3543_v47 = vunpack.i.l.bf16 %v3542_v43  ;;  %v1090_v43 = vsel %vm1087_vm11, %v3529_v22, %v3558_v1 }
 0x216   : > { %v3577_v51 = vpop.permute.xlu1 %3576  ;;  %1656 = vmatprep.subr.bf16.mxu1 %v1577_v4 }
 0x217   : > { %v3579_v55 = vunpack.i.h.bf16 %v3577_v51  ;;  %v3578_v56 = vunpack.i.l.bf16 %v3577_v51  ;;  %v911_v58 = vsel %vm910_vm9, %v3543_v47, %v3538_v40  ;;  %v913_v59 = vsel %vm910_vm9, %v3544_v19, %v3563_v42 }
 0x218   : > { %v3547_v11 = vpop.permute.xlu0 %3546  ;;  %v1576_v63 = vpack.c.bf16 %v913_v59, %v911_v58  ;;  %v3528_v42 = vunpack.i.l.bf16 %v4734_v16  ;;  %v1091_v40 = vsel %vm1087_vm11, %v3558_v1, %v3559_v53  ;;  %v1089_v16 = vsel %vm1087_vm11, %v3523_v7, %v3524_v28 }
 0x219   : > { %v3549_v14 = vunpack.i.h.bf16 %v3547_v11  ;;  %v3548_v15 = vunpack.i.l.bf16 %v3547_v11  ;;  %v1018_v33 = vsel %vm1014_vm10, %v3578_v56, %v3579_v55  ;;  %v1585_v17 = vpack.c.bf16 %v1091_v40, %v1089_v16 }
 0x21a   : > { %v4756_v25 = vpop.permute.xlu1 %3581  ;;  %1657 = vmatpush1.bf16.msra.mxu1 %v1576_v63  ;;  %v1088_v48 = vsel %vm1087_vm11, %v3528_v42, %v3523_v7  ;;  %v1093_v58 = vsel %vm1087_vm11, %v3568_v44, %v3569_v8 }
 0x21b   : > { %1658 = vmatprep.subr.bf16.mxu1 %v1579_v13  ;;  %v1016_v3 = vsel %vm1014_vm10, %v3548_v15, %v3549_v14  ;;  %v3584_v4 = vunpack.i.h.bf16 %v4756_v25  ;;  %v3583_v10 = vunpack.i.l.bf16 %v4756_v25 }
 0x21c   : > { %v3552_v34 = vpop.permute.xlu0 %3551  ;;  %v1581_v6 = vpack.c.bf16 %v1018_v33, %v1016_v3 }
 0x21d   : > { %v3554_v0 = vunpack.i.h.bf16 %v3552_v34  ;;  %v3553_v45 = vunpack.i.l.bf16 %v3552_v34  ;;  %v1092_v20 = vsel %vm1087_vm11, %v3583_v10, %v3568_v44 }
 0x21e   : > { %v4767_v57 = vpop.permute.xlu1 %3596  ;;  %1659 = vmatpush1.bf16.msra.mxu1 %v1578_v35 }
 0x21f   : > { %1660 = vmatprep.subr.bf16.mxu1 %v1581_v6  ;;  %v1015_v60 = vsel %vm1014_vm10, %v3553_v45, %v3548_v15  ;;  %v1017_v23 = vsel %vm1014_vm10, %v3554_v0, %v3578_v56  ;;  %v1584_v56 = vpack.c.bf16 %v1090_v43, %v1088_v48  ;;  %v3599_v13 = vunpack.i.h.bf16 %v4767_v57 }
 0x220   : > { %v3572_v61 = vpop.permute.xlu0 %3571  ;;  %v1580_v18 = vpack.c.bf16 %v1017_v23, %v1015_v60  ;;  %v3598_v14 = vunpack.i.l.bf16 %v4767_v57 }
 0x221   : > { %v3574_v49 = vunpack.i.h.bf16 %v3572_v61  ;;  %v3573_v37 = vunpack.i.l.bf16 %v3572_v61 }
 0x222   : > { %v4778_v38 = vpop.permute.xlu1 %3606  ;;  %1661 = vmatpush1.bf16.msra.mxu1 %v1580_v18  ;;  %v1197_v39 = vsel %vm1191_vm12, %v3598_v14, %v3599_v13 }
 0x223   : > { %1662 = vmatprep.subr.bf16.mxu1 %v1583_v29  ;;  %v1095_v47 = vsel %vm1087_vm11, %v3573_v37, %v3574_v49  ;;  %v1094_v59 = vsel %vm1087_vm11, %v3584_v4, %v3573_v37  ;;  %v3609_v6 = vunpack.i.h.bf16 %v4778_v38  ;;  %v3608_v41 = vunpack.i.l.bf16 %v4778_v38 }
 0x224   : > { %v3587_v52 = vpop.permute.xlu0 %3586  ;;  %v1587_v11 = vpack.c.bf16 %v1095_v47, %v1093_v58  ;;  %v1586_v9 = vpack.c.bf16 %v1094_v59, %v1092_v20 }
 0x225   : > { %v3589_v50 = vunpack.i.h.bf16 %v3587_v52  ;;  %v3588_v51 = vunpack.i.l.bf16 %v3587_v52  ;;  %v1196_v61 = vsel %vm1191_vm12, %v3608_v41, %v3598_v14 }
 0x226   : > { %v3622_v19 = vpop.permute.xlu1 %3621  ;;  %1663 = vmatpush1.bf16.msra.mxu1 %v1582_v46 }
 0x227   : > { %v3624_v12 = vunpack.i.h.bf16 %v3622_v19  ;;  %v3623_v54 = vunpack.i.l.bf16 %v3622_v19  ;;  %1664 = vmatprep.subr.bf16.mxu1 %v1585_v17  ;;  %v1193_v21 = vsel %vm1191_vm12, %v3588_v51, %v3589_v50 }
 0x228   : > { %v3592_v55 = vpop.permute.xlu0 %3591 }
 0x229   : > { %v3594_v62 = vunpack.i.h.bf16 %v3592_v55  ;;  %v3593_v5 = vunpack.i.l.bf16 %v3592_v55  ;;  %v1195_v63 = vsel %vm1191_vm12, %v3623_v54, %v3624_v12 }
 0x22a   : > { %v3627_v15 = vpop.permute.xlu1 %3626  ;;  %1665 = vmatpush1.bf16.msra.mxu1 %v1584_v56  ;;  %v1589_v32 = vpack.c.bf16 %v1195_v63, %v1193_v21 }
 0x22b   : > { %1666 = vmatprep.subr.bf16.mxu1 %v1587_v11  ;;  %v1192_v34 = vsel %vm1191_vm12, %v3593_v5, %v3588_v51  ;;  %v1194_v35 = vsel %vm1191_vm12, %v3594_v62, %v3623_v54  ;;  %v3629_v37 = vunpack.i.h.bf16 %v3627_v15  ;;  %v3628_v38 = vunpack.i.l.bf16 %v3627_v15 }
 0x22c   : > { %v3602_v25 = vpop.permute.xlu0 %3601  ;;  %v1588_v57 = vpack.c.bf16 %v1194_v35, %v1192_v34 }
 0x22d   : > { %v3604_v3 = vunpack.i.h.bf16 %v3602_v25  ;;  %v3603_v33 = vunpack.i.l.bf16 %v3602_v25  ;;  %v1301_v10 = vsel %vm5583_vm13, %v3628_v38, %v3629_v37 }
 0x22e   : > { %v3637_v36 = vpop.permute.xlu1 %3636  ;;  %1667 = vmatpush1.bf16.msra.mxu1 %v1586_v9 }
 0x22f   : > { %v3639_v0 = vunpack.i.h.bf16 %v3637_v36  ;;  %v3638_v45 = vunpack.i.l.bf16 %v3637_v36  ;;  %1668 = vmatprep.subr.bf16.mxu1 %v1589_v32  ;;  %v1199_v53 = vsel %vm1191_vm12, %v3603_v33, %v3604_v3  ;;  %v1198_v28 = vsel %vm1191_vm12, %v3609_v6, %v3603_v33 }
 0x230   : > { %v3612_v1 = vpop.permute.xlu0 %3611  ;;  %v1591_v60 = vpack.c.bf16 %v1199_v53, %v1197_v39  ;;  %v1590_v42 = vpack.c.bf16 %v1198_v28, %v1196_v61  ;;  %v3959_v61 = vld [vmem:[%s5540_s5] ss:$12 sps:$4 sm:$0xff]  }
 0x231   : > { %v3614_v23 = vunpack.i.h.bf16 %v3612_v1  ;;  %v3613_v26 = vunpack.i.l.bf16 %v3612_v1  ;;  %v1299_v29 = vsel %vm5583_vm13, %v3638_v45, %v3639_v0 }
 0x232   : > { %v3642_v7 = vpop.permute.xlu1 %3641  ;;  %1669 = vmatpush1.bf16.msra.mxu1 %v1588_v57 }
 0x233   : > { %1670 = vmatprep.subr.bf16.mxu1 %v1591_v60  ;;  %v1297_v18 = vsel %vm5583_vm13, %v3613_v26, %v3614_v23  ;;  %v3643_v40 = vunpack.i.l.bf16 %v3642_v7  ;;  %v3644_v17 = vunpack.i.h.bf16 %v3642_v7 }
 0x234   : > { %v3617_v22 = vpop.permute.xlu0 %3616  ;;  %v1593_v30 = vpack.c.bf16 %v1299_v29, %v1297_v18 }
 0x235   : > { %v3619_v31 = vunpack.i.h.bf16 %v3617_v22  ;;  %v3618_v49 = vunpack.i.l.bf16 %v3617_v22  ;;  %v1300_v19 = vsel %vm5583_vm13, %v3643_v40, %v3628_v38  ;;  %v3962_v22 = vld [vmem:[%s5540_s5 + $0x1c] ss:$12 sps:$4 sm:$0xff]  }
 0x236   : > { %v3652_v8 = vpop.permute.xlu1 %3651  ;;  %1671 = vmatpush1.bf16.msra.mxu1 %v1590_v42 }
 0x237   : > { %1672 = vmatprep.subr.bf16.mxu1 %v1593_v30  ;;  %v1296_v44 = vsel %vm5583_vm13, %v3618_v49, %v3613_v26  ;;  %v1298_v52 = vsel %vm5583_vm13, %v3619_v31, %v3638_v45  ;;  %v3654_v47 = vunpack.i.h.bf16 %v3652_v8  ;;  %v3653_v50 = vunpack.i.l.bf16 %v3652_v8 }
 0x238   : > { %v3632_v46 = vpop.permute.xlu0 %3631  ;;  %v1592_v16 = vpack.c.bf16 %v1298_v52, %v1296_v44 }
 0x239   : > { %v3634_v48 = vunpack.i.h.bf16 %v3632_v46  ;;  %v3633_v43 = vunpack.i.l.bf16 %v3632_v46  ;;  %v1372_v11 = vsel %vm5582_vm14, %v3653_v50, %v3654_v47 }
 0x23a   : > { %v3662_v4 = vpop.permute.xlu1 %3661  ;;  %1673 = vmatpush1.bf16.msra.mxu1 %v1592_v16 }
 0x23b   : > { %v1303_v51 = vsel %vm5583_vm13, %v3633_v43, %v3634_v48  ;;  %v1302_v12 = vsel %vm5583_vm13, %v3644_v17, %v3633_v43  ;;  %v3664_v20 = vunpack.i.h.bf16 %v3662_v4  ;;  %v3663_v21 = vunpack.i.l.bf16 %v3662_v4  ;;  %v3964_v4 = vld [vmem:[%s5540_s5 + $0x18] ss:$12 sps:$4 sm:$0xff]  }
 0x23c   : > { %v3647_v54 = vpop.permute.xlu0 %3646  ;;  %v1595_v55 = vpack.c.bf16 %v1303_v51, %v1301_v10  ;;  %v1594_v56 = vpack.c.bf16 %v1302_v12, %v1300_v19 }
 0x23d   : > { %v3649_v58 = vunpack.i.h.bf16 %v3647_v54  ;;  %v3648_v59 = vunpack.i.l.bf16 %v3647_v54  ;;  %v1374_v41 = vsel %vm5582_vm14, %v3663_v21, %v3664_v20  ;;  %v3965_v54 = vld [vmem:[%s5540_s5 + $0x8] ss:$12 sps:$4 sm:$0xff]  }
 0x23e   : > { %v3672_v62 = vpop.permute.xlu1 %3671  ;;  %1674 = vmatprep.subr.bf16.mxu1 %v1595_v55  ;;  %v3966_v55 = vld [vmem:[%s5540_s5 + $0x20] ss:$12 sps:$4 sm:$0xff]  }
 0x23f   : > { %1675 = vmatpush1.bf16.msra.mxu1 %v1594_v56  ;;  %v1370_v5 = vsel %vm5582_vm14, %v3648_v59, %v3649_v58  ;;  %v3673_v25 = vunpack.i.l.bf16 %v3672_v62  ;;  %v3674_v35 = vunpack.i.h.bf16 %v3672_v62 }
 0x240   : > { %v3657_v63 = vpop.permute.xlu0 %3656  ;;  %v1597_v13 = vpack.c.bf16 %v1372_v11, %v1370_v5 }
 0x241   : > { %v3659_v14 = vunpack.i.h.bf16 %v3657_v63  ;;  %v3658_v15 = vunpack.i.l.bf16 %v3657_v63  ;;  %v1373_v0 = vsel %vm5582_vm14, %v3673_v25, %v3663_v21 }
 0x242   : > { %v3687_v9 = vpop.permute.xlu1 %3686  ;;  %1676 = vmatprep.subr.bf16.mxu1 %v1597_v13 }
 0x243   : > { %v1369_v32 = vsel %vm5582_vm14, %v3658_v15, %v3648_v59  ;;  %v1371_v3 = vsel %vm5582_vm14, %v3659_v14, %v3653_v50  ;;  %v3689_v45 = vunpack.i.h.bf16 %v3687_v9  ;;  %v3688_v53 = vunpack.i.l.bf16 %v3687_v9 }
 0x244   : > { %v3667_v33 = vpop.permute.xlu0 %3666  ;;  %v1596_v34 = vpack.c.bf16 %v1371_v3, %v1369_v32 }
 0x245   : > { %v3669_v6 = vunpack.i.h.bf16 %v3667_v33  ;;  %v3668_v36 = vunpack.i.l.bf16 %v3667_v33  ;;  %v1475_v29 = vsel %vm5581_vm15, %v3688_v53, %v3689_v45 }
 0x246   : > { %v3692_v39 = vpop.permute.xlu1 %3691  ;;  %1677 = vmatpush1.bf16.msra.mxu1 %v1596_v34 }
 0x247   : > { %v1376_v1 = vsel %vm5582_vm14, %v3668_v36, %v3669_v6  ;;  %v1375_v57 = vsel %vm5582_vm14, %v3674_v35, %v3668_v36  ;;  %v3694_v38 = vunpack.i.h.bf16 %v3692_v39  ;;  %v3693_v40 = vunpack.i.l.bf16 %v3692_v39 }
 0x248   : > { %v3677_v60 = vpop.permute.xlu0 %3676  ;;  %v1599_v23 = vpack.c.bf16 %v1376_v1, %v1374_v41  ;;  %v1598_v26 = vpack.c.bf16 %v1375_v57, %v1373_v0 }
 0x249   : > { %v3679_v28 = vunpack.i.h.bf16 %v3677_v60  ;;  %v3678_v7 = vunpack.i.l.bf16 %v3677_v60  ;;  %v1477_v47 = vsel %vm5581_vm15, %v3693_v40, %v3694_v38 }
 0x24a   : > { %1678 = vmatprep.subr.bf16.mxu1 %v1599_v23  ;;  %v3702_v42 = vpop.permute.xlu1 %3701 }
 0x24b   : > { %1679 = vmatpush1.bf16.msra.mxu1 %v1598_v26  ;;  %v1473_v18 = vsel %vm5581_vm15, %v3678_v7, %v3679_v28  ;;  %v3703_v8 = vunpack.i.l.bf16 %v3702_v42  ;;  %v3704_v17 = vunpack.i.h.bf16 %v3702_v42 }
 0x24c   : > { %v3682_v30 = vpop.permute.xlu0 %3681  ;;  %v1601_v31 = vpack.c.bf16 %v1475_v29, %v1473_v18 }
 0x24d   : > { %v3684_v49 = vunpack.i.h.bf16 %v3682_v30  ;;  %v3683_v37 = vunpack.i.l.bf16 %v3682_v30  ;;  %v1476_v10 = vsel %vm5581_vm15, %v3703_v8, %v3693_v40 }
 0x24e   : > { %1681 = vmatmul.mubr.bf16.vlgmr.msra.gmra.mrb[0].mxu1 %v3959_v61  ;;  %1701 = vmatprep.subr.bf16.mxu1 %v1601_v31 }
 0x24f   : > { %v1472_v44 = vsel %vm5581_vm15, %v3683_v37, %v3678_v7  ;;  %v1474_v52 = vsel %vm5581_vm15, %v3684_v49, %v3688_v53  ;;  %1690 = vmatprep.mubr.bf16.mxu1 %v3962_v22 }
 0x250   : > { %v3697_v46 = vpop.permute.xlu0 %3696  ;;  %v1600_v16 = vpack.c.bf16 %v1474_v52, %v1472_v44 }
 0x251   : > { %v3699_v48 = vunpack.i.h.bf16 %v3697_v46  ;;  %v3698_v43 = vunpack.i.l.bf16 %v3697_v46 }
 0x252   : > { %1702 = vmatpush1.bf16.msra.mxu1 %v1600_v16 }
 0x253   : > { %v1478_v19 = vsel %vm5581_vm15, %v3704_v17, %v3698_v43  ;;  %v1479_v50 = vsel %vm5581_vm15, %v3698_v43, %v3699_v48 }
 0x254   : > { %v1603_v51 = vpack.c.bf16 %v1479_v50, %v1477_v47  ;;  %v1602_v12 = vpack.c.bf16 %v1478_v19, %v1476_v10 }
 0x256   : > { %1691 = vmatmul.mubr.bf16.gmra.mrb[4].mxu1 %v3964_v4  ;;  %1703 = vmatprep.subr.bf16.mxu1 %v1603_v51 }
 0x257   : > { %1704 = vmatpush1.bf16.msra.mxu1 %v1602_v12  ;;  %1733 = vmatprep.mubr.bf16.mxu1 %v4095_v2 }
 0x25b   : > { %v1766_v56 = vpop.permute.xlu1 %1765 }
 0x25e   : > { %3349 = vmatmul.mubr.msk.bf16.vlgmr.msra.gmra.mrb[0].mxu1 %vm1242_vm6, %v3965_v54 }
 0x25f   : > { %1743 = vmatprep.mubr.bf16.mxu1 %v4095_v2  ;;  %v1793_v59 = vpop.permute.xlu1 %1792 }
 0x261   : > { %v1761_v58 = vpop.permute.xlu0 %1760 }
 0x263   : > { %v1771_v25 = vpop.permute.xlu1 %1770 }
 0x265   : > { %v1798_v62 = vpop.permute.xlu0 %1797 }
 0x266   : > { %3350 = vmatmul.mubr.msk.bf16.gmra.mrb[4].mxu1 %vm1242_vm6, %v3966_v55 }
 0x267   : > { %2919 = vmatprep.mubr.bf16.mxu1 %v4095_v2  ;;  %v1803_v53 = vpop.permute.xlu1 %1802 }
 0x269   : > { %v1776_v34 = vpop.permute.xlu0 %1775 }
 0x26d   : > { %v1808_v28 = vpop.permute.xlu0 %1807 }
 0x331   : > { %v1735_v5 = vpop.f32.mrb[0].mxu1 }
 0x332   : > { %v1778_v11 = vmul.f32 %v1761_v58, %v1735_v5  ;;  %v1737_v63 = vpop.f32.mrb[1].mxu1 }
 0x333   : > { %v1779_v13 = vmul.f32 %v1761_v58, %v1737_v63  ;;  %v1739_v14 = vpop.f32.mrb[2].mxu1  ;;  %v2030_v58 = vld [vmem:[%s5539_s4] sm:$0x3] }
 0x334   : > { %v1810_v15 = vadd.f32 %v1793_v59, %v1778_v11  ;;  %v1780_v20 = vmul.f32 %v1766_v56, %v1739_v14  ;;  %v1741_v21 = vpop.f32.mrb[3].mxu1  ;;  %v2035_v5 = vrot.slane %v2030_v58, %v4303_v24  ;;  %v2039_v11 = vrot.slane %v2030_v58, %v4310_v27  ;;  %v2132_v63 = vld [vmem:[%s5538_s3] sm:$0x3] }
 0x335   : > { %v1811_v9 = vadd.f32 %v1793_v59, %v1779_v13  ;;  %v1781_v32 = vmul.f32 %v1766_v56, %v1741_v21  ;;  %v2137_v13 = vrot.slane %v2132_v63, %v4303_v24  ;;  %v2141_v14 = vrot.slane %v2132_v63, %v4310_v27 }
 0x336   : > { %v1826_v3 = vmul.f32 1.442695, %v1810_v15  ;;  %v1812_v33 = vadd.f32 %v1798_v62, %v1780_v20  ;;  %vm1818_vm0 = vcmp.gt.f32.partialorder %v1810_v15, 0.0 }
 0x337   : > { %v1828_v35 = vmul.f32 1.442695, %v1811_v9  ;;  %v1813_v6 = vadd.f32 %v1798_v62, %v1781_v32  ;;  %vm1819_vm15 = vcmp.gt.f32.partialorder %v1811_v9, 0.0 }
 0x338   : > { %3975 = vpow2.f32 %v1826_v3  ;;  %v1830_v36 = vmul.f32 1.442695, %v1812_v33  ;;  %vm1820_vm14 = vcmp.gt.f32.partialorder %v1812_v33, 0.0  ;;  %v2582_v3 = vld [vmem:[%s5539_s4] sm:$0x3] }
 0x339   : > { %3977 = vpow2.f32 %v1828_v35  ;;  %v1832_v39 = vmul.f32 1.442695, %v1813_v6  ;;  %v1745_v41 = vpop.f32.mrb[4].mxu1  ;;  %vm1821_vm13 = vcmp.gt.f32.partialorder %v1813_v6, 0.0 }
 0x33a   : > { %3979 = vpow2.f32 %v1830_v36  ;;  %v1782_v0 = vmul.f32 %v1771_v25, %v1745_v41  ;;  %v1747_v45 = vpop.f32.mrb[5].mxu1 }
 0x33b   : > { %3981 = vpow2.f32 %v1832_v39  ;;  %v1783_v1 = vmul.f32 %v1771_v25, %v1747_v45  ;;  %v1749_v57 = vpop.f32.mrb[6].mxu1  ;;  %v2408_v25 = vld [vmem:[%s5538_s3] sm:$0x3] }
 0x33c   : > { %v1814_v60 = vadd.f32 %v1803_v53, %v1782_v0  ;;  %v1784_v23 = vmul.f32 %v1776_v34, %v1749_v57  ;;  %v1751_v26 = vpop.f32.mrb[7].mxu1  ;;  %v2417_v32 = vrot.slane %v2408_v25, %v4310_v27 }
 0x33d   : > { %v1815_v7 = vadd.f32 %v1803_v53, %v1783_v1  ;;  %v1785_v61 = vmul.f32 %v1776_v34, %v1751_v26  ;;  %v2587_v34 = vrot.slane %v2582_v3, %v4303_v24 }
 0x33e   : > { %v1834_v18 = vmul.f32 1.442695, %v1814_v60  ;;  %v1816_v29 = vadd.f32 %v1808_v28, %v1784_v23 }
 0x33f   : > { %v1836_v22 = vmul.f32 1.442695, %v1815_v7  ;;  %v1817_v42 = vadd.f32 %v1808_v28, %v1785_v61 }
 0x340   : > { %3983 = vpow2.f32 %v1834_v18  ;;  %v1838_v30 = vmul.f32 1.442695, %v1816_v29 }
 0x341   : > { %3985 = vpow2.f32 %v1836_v22  ;;  %v1840_v31 = vmul.f32 1.442695, %v1817_v42 }
 0x342   : > { %v3976_v49 = vpop.eup %3975  ;;  %3987 = vpow2.f32 %v1838_v30 }
 0x343   : > { %v3978_v37 = vpop.eup %3977  ;;  %3989 = vpow2.f32 %v1840_v31  ;;  %v3351_v38 = vadd.f32 -1.0, %v3976_v49 }
 0x344   : > { %v3980_v40 = vpop.eup %3979  ;;  %v3352_v8 = vadd.f32 -1.0, %v3978_v37 }
 0x345   : > { %v3982_v44 = vpop.eup %3981  ;;  %v1850_v52 = vsel %vm1818_vm0, %v1810_v15, %v3351_v38  ;;  %v3353_v46 = vadd.f32 -1.0, %v3980_v40  ;;  %vm1822_vm0 = vcmp.gt.f32.partialorder %v1814_v60, 0.0  ;;  %v2306_v15 = vld [vmem:[%s5539_s4] sm:$0x3] }
 0x346   : > { %1866 = vrot.lane.b32.xlu1 %v1850_v52, %s4096_s30  ;;  %v1851_v16 = vsel %vm1819_vm15, %v1811_v9, %v3352_v8  ;;  %v3354_v17 = vadd.f32 -1.0, %v3982_v44  ;;  %vm1823_vm15 = vcmp.gt.f32.partialorder %v1815_v7, 0.0  ;;  %v2311_v20 = vrot.slane %v2306_v15, %v4303_v24 }
 0x347   : > { %1868 = vrot.lane.b32.xlu0 %v1851_v16, %s4096_s30  ;;  %v1852_v48 = vsel %vm1820_vm14, %v1812_v33, %v3353_v46  ;;  %vm1825_vm14 = vcmp.gt.f32.partialorder %v1817_v42, 0.0  ;;  %v2315_v21 = vrot.slane %v2306_v15, %v4310_v27  ;;  %v2413_v9 = vrot.slane %v2408_v25, %v4303_v24 }
 0x348   : > { %v1853_v4 = vsel %vm1821_vm13, %v1813_v6, %v3354_v17  ;;  %vm1824_vm13 = vcmp.gt.f32.partialorder %v1816_v29, 0.0  ;;  %v2591_v33 = vrot.slane %v2582_v3, %v4310_v27  ;;  %v1918_v6 = vld [vmem:[%s5538_s3] sm:$0x3] }
 0x349   : > { %v1927_v41 = vrot.slane %v1918_v6, %v4310_v27  ;;  %v1923_v27 = vrot.slane %v1918_v6, %v4303_v24 }
 0x34a   : > { %v3984_v43 = vpop.eup %3983  ;;  %1870 = vrot.lane.b32.xlu1 %v1852_v48, %s4096_s30 }
 0x34b   : > { %v3986_v10 = vpop.eup %3985  ;;  %1872 = vrot.lane.b32.xlu0 %v1853_v4, %s4096_s30  ;;  %v3355_v19 = vadd.f32 -1.0, %v3984_v43 }
 0x34c   : > { %v3988_v47 = vpop.eup %3987  ;;  %v3356_v50 = vadd.f32 -1.0, %v3986_v10 }
 0x34d   : > { %v3990_v51 = vpop.eup %3989  ;;  %v1854_v12 = vsel %vm1822_vm0, %v1814_v60, %v3355_v19  ;;  %v3357_v54 = vadd.f32 -1.0, %v3988_v47 }
 0x34e   : > { %1874 = vrot.lane.b32.xlu1 %v1854_v12, %s4096_s30  ;;  %v1855_v55 = vsel %vm1823_vm15, %v1815_v7, %v3356_v50  ;;  %v3358_v56 = vadd.f32 -1.0, %v3990_v51 }
 0x34f   : > { %1876 = vrot.lane.b32.xlu0 %v1855_v55, %s4096_s30  ;;  %v1856_v59 = vsel %vm1824_vm13, %v1816_v29, %v3357_v54 }
 0x350   : > { %v1857_v62 = vsel %vm1825_vm14, %v1817_v42, %v3358_v56 }
 0x352   : > { %1878 = vrot.lane.b32.xlu1 %v1856_v59, %s4096_s30 }
 0x353   : > { %1880 = vrot.lane.b32.xlu0 %v1857_v62, %s4096_s30  ;;  %s5603_s30 = smov 96  }
 0x356   : > { %2040 = vrot.lane.b32.xlu1 %v2035_v5, %s4098_s17 }
 0x357   : > { %2042 = vrot.lane.b32.xlu0 %v2039_v11, %s4098_s17  ;;  %s3388_s17 = sshll.u32 %s4219_s25, 10  ;;  %s5631_s25 = sld [smem:[#allocation16_spill]] }
 0x35a   : > { %2142 = vrot.lane.b32.xlu1 %v2137_v13, %s4099_s28 }
 0x35b   : > { %2144 = vrot.lane.b32.xlu0 %v2141_v14, %s4099_s28 }
 0x35e   : > { %2316 = vrot.lane.b32.xlu1 %v2311_v20, %s4100_s26 }
 0x35f   : > { %2318 = vrot.lane.b32.xlu0 %v2315_v21, %s4100_s26 }
 0x362   : > { %2418 = vrot.lane.b32.xlu1 %v2413_v9, %s5596_s20 }
 0x363   : > { %2420 = vrot.lane.b32.xlu0 %v2417_v32, %s5596_s20  ;;  %s5605_s20 = smov 94  }
 0x366   : > { %2594 = vrot.lane.b32.xlu1 %v2591_v33, %s5597_s23 }
 0x367   : > { %2592 = vrot.lane.b32.xlu0 %v2587_v34, %s5597_s23 }
 0x3b8   : > { %v1867_v35 = vpop.permute.xlu1 %1866 }
 0x3b9   : > { %1898 = vst.msk [vmem:[#allocation3] sm:$0xff] %vm685_vm3, %v1867_v35  ;;  %v1869_v36 = vpop.permute.xlu0 %1868 }
 0x3ba   : > { %v4896_v39 = vsel %vm676_vm2, %v1867_v35, %v1869_v36  ;;  %1900 = vst.msk [vmem:[#allocation3 + $0x10] sm:$0xff] %vm676_vm2, %v1869_v36 }
 0x3bb   : > { %v1931_v1 = vmul.f32 %v1927_v41, %v4896_v39 }
 0x3bc   : > { %v1871_v0 = vpop.permute.xlu1 %1870 }
 0x3bd   : > { %1901 = vst.msk [vmem:[#allocation3 + $0x18] sm:$0xff] %vm685_vm3, %v1871_v0  ;;  %v1873_v45 = vpop.permute.xlu0 %1872 }
 0x3be   : > { %v4902_v53 = vsel %vm676_vm2, %v1871_v0, %v1873_v45  ;;  %1903 = vst.msk [vmem:[#allocation3 + $0x28] sm:$0xff] %vm676_vm2, %v1873_v45 }
 0x3bf   : > { %v1933_v57 = vmul.f32 %v1927_v41, %v4902_v53 }
 0x3c0   : > { %v1875_v60 = vpop.permute.xlu1 %1874  ;;  %v4919_v18 = vld [vmem:[#allocation3] sm:$0xff] }
 0x3c1   : > { %1904 = vst.msk [vmem:[#allocation3 + $0x30] sm:$0xff] %vm685_vm3, %v1875_v60  ;;  %v1877_v23 = vpop.permute.xlu0 %1876  ;;  %v4908_v26 = vld [vmem:[#allocation3 + $0x10] sm:$0xff]  ;;  %v2745_v28 = vpack.c.bf16 %v1933_v57, %v1931_v1  ;;  %v1930_v49 = vmul.f32 %v4919_v18, %v1923_v27 }
 0x3c2   : > { %v4912_v7 = vsel %vm676_vm2, %v1875_v60, %v1877_v23  ;;  %1906 = vst.msk [vmem:[#allocation3 + $0x40] sm:$0xff] %vm676_vm2, %v1877_v23  ;;  %v4917_v61 = vpack.i.bf16 %v4908_v26, %v4896_v39 }
 0x3c3   : > { %2824 = vmatprep.subr.bf16.mxu0 %v2745_v28  ;;  %v1935_v44 = vmul.f32 %v1927_v41, %v4912_v7 }
 0x3c4   : > { %v1879_v29 = vpop.permute.xlu1 %1878  ;;  %3708 = vrot.lane.b32.xlu1 %v4917_v61, %s5598_s27  ;;  %v4923_v22 = vld [vmem:[#allocation3 + $0x18] sm:$0xff] }
 0x3c5   : > { %1907 = vst.msk [vmem:[#allocation3 + $0x48] sm:$0xff] %vm685_vm3, %v1879_v29  ;;  %v1881_v42 = vpop.permute.xlu0 %1880  ;;  %v4928_v30 = vpack.i.bf16 %v4923_v22, %v4919_v18  ;;  %v4930_v31 = vld [vmem:[#allocation3 + $0x28] sm:$0xff]  ;;  %v1932_v37 = vmul.f32 %v4923_v22, %v1923_v27 }
 0x3c6   : > { %v4935_v38 = vsel %vm676_vm2, %v1879_v29, %v1881_v42  ;;  %1909 = vst.msk [vmem:[#allocation3 + $0x58] sm:$0xff] %vm676_vm2, %v1881_v42  ;;  %v4940_v40 = vpack.i.bf16 %v4930_v31, %v4902_v53 }
 0x3c7   : > { %v2744_v8 = vpack.c.bf16 %v1932_v37, %v1930_v49  ;;  %v1937_v52 = vmul.f32 %v1927_v41, %v4935_v38 }
 0x3c8   : > { %v4944_v46 = vpop.permute.xlu1 %2040  ;;  %3713 = vrot.lane.b32.xlu1 %v4928_v30, %s5598_s27  ;;  %3728 = vrot.lane.b32.xlu0 %v4940_v40, %s5598_s27  ;;  %v4971_v50 = vld [vmem:[#allocation3 + $0x30] sm:$0xff] }
 0x3c9   : > { %v4950_v16 = vpop.permute.xlu0 %2042  ;;  %2825 = vmatpush1.bf16.msra.mxu0 %v2744_v8  ;;  %v2747_v17 = vpack.c.bf16 %v1937_v52, %v1935_v44  ;;  %v1934_v11 = vmul.f32 %v4971_v50, %v1923_v27  ;;  %v2048_v63 = vmul.f32 %v4944_v46, %v4919_v18  ;;  %v2051_v13 = vmul.f32 %v4944_v46, %v4923_v22  ;;  %v5002_v25 = vld [vmem:[#allocation3 + $0x40] sm:$0xff] }
 0x3ca   : > { %v4955_v48 = vsel %vm857_vm4, %v4944_v46, %v4950_v16  ;;  %v2053_v4 = vmul.f32 %v4950_v16, %v4930_v31  ;;  %v2050_v51 = vmul.f32 %v4950_v16, %v4908_v26  ;;  %v5014_v34 = vpack.i.bf16 %v5002_v25, %v4912_v7 }
 0x3cb   : > { %v2052_v43 = vmul.f32 %v4955_v48, %v4902_v53  ;;  %2826 = vmatprep.subr.bf16.mxu0 %v2747_v17  ;;  %v2049_v54 = vmul.f32 %v4955_v48, %v4896_v39  ;;  %v3737_v3 = vpack.i.bf16 %v2051_v13, %v2048_v63 }
 0x3cc   : > { %v4961_v10 = vpop.permute.xlu1 %2142  ;;  %3718 = vrot.lane.b32.xlu1 %v4917_v61, %s5599_s21  ;;  %3753 = vrot.lane.b32.xlu0 %v4940_v40, %s5599_s21  ;;  %v4967_v19 = vld [vmem:[#allocation3 + $0x48] sm:$0xff] }
 0x3cd   : > { %v4969_v47 = vpop.permute.xlu0 %2144  ;;  %v3757_v56 = vpack.i.bf16 %v2053_v4, %v2052_v43  ;;  %v1936_v59 = vmul.f32 %v4967_v19, %v1923_v27  ;;  %v3732_v14 = vpack.i.bf16 %v2050_v51, %v2049_v54  ;;  %v2150_v36 = vmul.f32 %v4961_v10, %v4919_v18  ;;  %v5047_v29 = vld [vmem:[#allocation3 + $0x58] sm:$0xff] }
 0x3ce   : > { %v4978_v12 = vsel %vm961_vm5, %v4961_v10, %v4969_v47  ;;  %v2155_v55 = vmul.f32 %v4969_v47, %v4930_v31  ;;  %v2152_v32 = vmul.f32 %v4969_v47, %v4908_v26  ;;  %v2153_v41 = vmul.f32 %v4961_v10, %v4923_v22 }
 0x3cf   : > { %v2154_v62 = vmul.f32 %v4978_v12, %v4902_v53  ;;  %v2746_v15 = vpack.c.bf16 %v1936_v59, %v1934_v11  ;;  %v2151_v33 = vmul.f32 %v4978_v12, %v4896_v39  ;;  %v5036_v60 = vpack.i.bf16 %v4967_v19, %v4971_v50 }
 0x3d0   : > { %v4984_v58 = vpop.permute.xlu1 %2316  ;;  %3723 = vrot.lane.b32.xlu1 %v4928_v30, %s5599_s21  ;;  %3758 = vrot.lane.b32.xlu0 %v3757_v56, %s5600_s0  ;;  %v3747_v28 = vpack.i.bf16 %v2153_v41, %v2150_v36  ;;  %v5084_v51 = vpack.i.bf16 %v5047_v29, %v4935_v38  ;;  %v2056_v56 = vmul.f32 %v4950_v16, %v5002_v25 }
 0x3d1   : > { %v4992_v5 = vpop.permute.xlu0 %2318  ;;  %v3762_v20 = vpack.i.bf16 %v2155_v55, %v2154_v62  ;;  %2827 = vmatpush1.bf16.msra.mxu0 %v2746_v15  ;;  %v3742_v0 = vpack.i.bf16 %v2152_v32, %v2151_v33  ;;  %v2055_v59 = vmul.f32 %v4955_v48, %v4912_v7  ;;  %v2059_v62 = vmul.f32 %v4950_v16, %v5047_v29 }
 0x3d2   : > { %v2320_v11 = vsel %vm1138_vm7, %v4984_v58, %v4992_v5  ;;  %v2057_v63 = vmul.f32 %v4944_v46, %v4967_v19  ;;  %v2054_v16 = vmul.f32 %v4944_v46, %v4971_v50  ;;  %v2326_v15 = vmul.f32 %v4992_v5, %v4908_v26 }
 0x3d3   : > { %v3792_v13 = vpack.i.bf16 %v2056_v56, %v2055_v59  ;;  %v2325_v32 = vmul.f32 %v2320_v11, %v4896_v39  ;;  %v2161_v46 = vmul.f32 %v4969_v47, %v5047_v29  ;;  %v2160_v36 = vmul.f32 %v4978_v12, %v4935_v38 }
 0x3d4   : > { %v4999_v21 = vpop.permute.xlu1 %2418  ;;  %3733 = vrot.lane.b32.xlu1 %v3732_v14, %s5600_s0  ;;  %3763 = vrot.lane.b32.xlu0 %v3762_v20, %s5601_s24  ;;  %v2058_v14 = vmul.f32 %v4955_v48, %v4935_v38  ;;  %v3797_v33 = vpack.i.bf16 %v2057_v63, %v2054_v16  ;;  %v2157_v48 = vmul.f32 %v4978_v12, %v4912_v7 }
 0x3d5   : > { %v5004_v9 = vpop.permute.xlu0 %2420  ;;  %v2156_v41 = vmul.f32 %v4961_v10, %v4971_v50  ;;  %v2324_v56 = vmul.f32 %v4984_v58, %v4919_v18  ;;  %v3832_v59 = vpack.i.bf16 %v2161_v46, %v2160_v36  ;;  %v2328_v63 = vmul.f32 %v2320_v11, %v4902_v53 }
 0x3d6   : > { %v3817_v20 = vpack.i.bf16 %v2059_v62, %v2058_v14  ;;  %v2422_v12 = vsel %vm1242_vm6, %v4999_v21, %v5004_v9  ;;  %v2329_v62 = vmul.f32 %v4992_v5, %v4930_v31  ;;  %v2431_v36 = vmul.f32 %v5004_v9, %v4930_v31 }
 0x3d7   : > { %v2427_v16 = vmul.f32 %v2422_v12, %v4896_v39 }
 0x3d8   : > { %3738 = vrot.lane.b32.xlu1 %v3737_v3, %s5600_s0  ;;  %v5016_v35 = vpop.permute.xlu1 %2594  ;;  %3768 = vrot.lane.b32.xlu0 %v5014_v34, %s5598_s27  ;;  %v2158_v3 = vmul.f32 %v4969_v47, %v5002_v25  ;;  %v2327_v47 = vmul.f32 %v4984_v58, %v4923_v22 }
 0x3d9   : > { %v2593_v6 = vpop.permute.xlu0 %2592  ;;  %v5051_v42 = vmul.f32 %v5016_v35, %v4908_v26  ;;  %v5055_v49 = vmul.f32 %v5016_v35, %v4930_v31  ;;  %v5063_v8 = vmul.f32 %v5016_v35, %v5002_v25  ;;  %v2436_v31 = vmul.f32 %v2422_v12, %v4935_v38 }
 0x3da   : > { %v5026_v45 = vsel %vm543_vm1, %v2593_v6, %v5016_v35  ;;  %v5029_v1 = vmul.f32 %v2593_v6, %v4919_v18  ;;  %v5032_v57 = vmul.f32 %v2593_v6, %v4923_v22  ;;  %v5040_v23 = vmul.f32 %v2593_v6, %v4971_v50 }
 0x3db   : > { %v5043_v27 = vmul.f32 %v2593_v6, %v4967_v19  ;;  %v5059_v37 = vmul.f32 %v5026_v45, %v4896_v39  ;;  %v5068_v44 = vmul.f32 %v5026_v45, %v4902_v53  ;;  %v5074_v17 = vmul.f32 %v5026_v45, %v4912_v7 }
 0x3dc   : > { %3743 = vrot.lane.b32.xlu1 %v3742_v0, %s5601_s24  ;;  %3773 = vrot.lane.b32.xlu0 %v5036_v60, %s5598_s27  ;;  %v3927_v52 = vpack.i.bf16 %v5032_v57, %v5029_v1  ;;  %v3822_v6 = vpack.i.bf16 %v2326_v15, %v2325_v32  ;;  %v2159_v0 = vmul.f32 %v4961_v10, %v4967_v19  ;;  %v2965_v1 = vld [vmem:[%s5545_s10 + $0x18] sm:$0xff]  ;;  %vm5606_vm1 = vcmask 785408  }
 0x3dd   : > { %v3917_v43 = vpack.i.bf16 %v5051_v42, %v5059_v37  ;;  %v3942_v4 = vpack.i.bf16 %v5043_v27, %v5040_v23  ;;  %v3922_v54 = vpack.i.bf16 %v5055_v49, %v5068_v44  ;;  %v3932_v55 = vpack.i.bf16 %v5063_v8, %v5074_v17  ;;  %vm5607_vm2 = vmmov %vm5606_vm1 }
 0x3de   : > { %v3807_v10 = vpack.i.bf16 %v2159_v0, %v2156_v41  ;;  %v3837_v14 = vpack.i.bf16 %v2327_v47, %v2324_v56  ;;  %v2332_v15 = vmul.f32 %v4992_v5, %v5002_v25  ;;  %v2331_v32 = vmul.f32 %v2320_v11, %v4912_v7  ;;  %vm5608_vm3 = vmmov %vm5606_vm1 }
 0x3df   : > { %v2330_v39 = vmul.f32 %v4984_v58, %v4971_v50  ;;  %v2430_v0 = vmul.f32 %v2422_v12, %v4902_v53  ;;  %v2433_v56 = vmul.f32 %v2422_v12, %v4912_v7  ;;  %v2432_v53 = vmul.f32 %v4999_v21, %v4971_v50  ;;  %v2932_v50 = vld [vmem:[%s5544_s9 + $0x10] sm:$0xff]  ;;  %vm5609_vm5 = vmmov %vm5606_vm1 }
 0x3e0   : > { %3748 = vrot.lane.b32.xlu1 %v3747_v28, %s5601_s24  ;;  %3778 = vrot.lane.b32.xlu0 %v5014_v34, %s5599_s21  ;;  %v3802_v28 = vpack.i.bf16 %v2158_v3, %v2157_v48  ;;  %v2426_v3 = vmul.f32 %v4999_v21, %v4919_v18  ;;  %v2333_v48 = vmul.f32 %v4984_v58, %v4967_v19  ;;  %vm5610_vm7 = vmmov %vm5606_vm1 }
 0x3e1   : > { %v3842_v46 = vpack.i.bf16 %v2332_v15, %v2331_v32  ;;  %v2435_v47 = vmul.f32 %v4999_v21, %v4967_v19 }
 0x3e2   : > { %v3847_v41 = vpack.i.bf16 %v2333_v48, %v2330_v39 }
 0x3e4   : > { %3788 = vrot.lane.b32.xlu1 %v5084_v51, %s5598_s27  ;;  %3783 = vrot.lane.b32.xlu0 %v5036_v60, %s5599_s21  ;;  %s5485_s27 = scalar_lea.hbm %s5631_s25, %s3388_s17 }
 0x3e8   : > { %3813 = vrot.lane.b32.xlu1 %v5084_v51, %s5599_s21  ;;  %3793 = vrot.lane.b32.xlu0 %v3792_v13, %s5600_s0  ;;  %v2428_v13 = vmul.f32 %v5004_v9, %v4908_v26 }
 0x3ea   : > { %v3852_v26 = vpack.i.bf16 %v2428_v13, %v2427_v16 }
 0x3ec   : > { %3818 = vrot.lane.b32.xlu1 %v3817_v20, %s5600_s0  ;;  %3798 = vrot.lane.b32.xlu0 %v3797_v33, %s5600_s0  ;;  %v3827_v20 = vpack.i.bf16 %v2329_v62, %v2328_v63  ;;  %v2429_v33 = vmul.f32 %v4999_v21, %v4923_v22  ;;  %v2334_v22 = vmul.f32 %v2320_v11, %v4935_v38  ;;  %v2931_v21 = vld [vmem:[%s5544_s9 + $0x8] sm:$0xff] }
 0x3ed   : > { %v2437_v11 = vmul.f32 %v5004_v9, %v5047_v29 }
 0x3ee   : > { %v3862_v18 = vpack.i.bf16 %v2429_v33, %v2426_v3 }
 0x3ef   : > { %v3892_v7 = vpack.i.bf16 %v2437_v11, %v2436_v31 }
 0x3f0   : > { %3823 = vrot.lane.b32.xlu1 %v3822_v6, %s5602_s29  ;;  %3803 = vrot.lane.b32.xlu0 %v3802_v28, %s5601_s24  ;;  %v2335_v6 = vmul.f32 %v4992_v5, %v5047_v29  ;;  %v2434_v28 = vmul.f32 %v5004_v9, %v5002_v25  ;;  %v3857_v5 = vpack.i.bf16 %v2431_v36, %v2430_v0  ;;  %v2963_v9 = vld [vmem:[%s5545_s10 + $0x8] sm:$0xff] }
 0x3f1   : > { %v3872_v25 = vpack.i.bf16 %v2435_v47, %v2432_v53 }
 0x3f2   : > { %v3877_v58 = vpack.i.bf16 %v2335_v6, %v2334_v22 }
 0x3f4   : > { %3833 = vrot.lane.b32.xlu1 %v3832_v59, %s5601_s24  ;;  %3808 = vrot.lane.b32.xlu0 %v3807_v10, %s5601_s24  ;;  %v3867_v59 = vpack.i.bf16 %v2434_v28, %v2433_v56  ;;  %s4111_s24 = smov [#allocation5]  }
 0x3f8   : > { %3838 = vrot.lane.b32.xlu1 %v3837_v14, %s5602_s29  ;;  %3828 = vrot.lane.b32.xlu0 %v3827_v20, %s5602_s29 }
 0x3fc   : > { %3853 = vrot.lane.b32.xlu1 %v3852_v26, %s5603_s30  ;;  %3843 = vrot.lane.b32.xlu0 %v3842_v46, %s5602_s29 }
 0x400   : > { %3863 = vrot.lane.b32.xlu1 %v3862_v18, %s5603_s30  ;;  %3848 = vrot.lane.b32.xlu0 %v3847_v41, %s5602_s29 }
 0x404   : > { %3878 = vrot.lane.b32.xlu1 %v3877_v58, %s5602_s29  ;;  %3858 = vrot.lane.b32.xlu0 %v3857_v5, %s5603_s30  ;;  %s4035_s29 = sshll.u32 %s4111_s24, 4  ;;  %s4036_s29 = int_to_ptr.vmem [resolvable:$false] %s4035_s29 }
 0x408   : > { %3883 = vrot.lane.b32.xlu1 %v4917_v61, %s5604_s19  ;;  %3868 = vrot.lane.b32.xlu0 %v3867_v59, %s5603_s30  ;;  %v3969_v61 = vld [vmem:[%s5543_s8 + $0x4] ss:$12 sps:$4 sm:$0xff]  }
 0x409   : > { %2856 = vmatprep.mubr.bf16.mxu0 %v3969_v61 }
 0x40c   : > { %3893 = vrot.lane.b32.xlu1 %v3892_v7, %s5603_s30  ;;  %3873 = vrot.lane.b32.xlu0 %v3872_v25, %s5603_s30  ;;  %s527_s30 = sand.u32 1, %s4085_s22  }
 0x40d   : > { %s5493_s21 = scalar_lea.sflag [#allocation6], %s527_s30 }
 0x410   : > { %3898 = vrot.lane.b32.xlu1 %v4928_v30, %s5604_s19  ;;  %3888 = vrot.lane.b32.xlu0 %v4940_v40, %s5604_s19  ;;  %v2610_v30 = vmul.f32 %v5026_v45, %v4935_v38  ;;  %v2611_v40 = vmul.f32 %v5016_v35, %v5047_v29  ;;  %v2930_v38 = vld [vmem:[%s5544_s9] sm:$0xff]  ;;  %v2964_v35 = vld [vmem:[%s5545_s10 + $0x10] sm:$0xff] }
 0x411   : > { %v2933_v45 = vld [vmem:[%s5544_s9 + $0x18] sm:$0xff] }
 0x412   : > { %v3937_v19 = vpack.i.bf16 %v2611_v40, %v2610_v30 }
 0x414   : > { %3908 = vrot.lane.b32.xlu1 %v5084_v51, %s5604_s19  ;;  %3903 = vrot.lane.b32.xlu0 %v5014_v34, %s5604_s19  ;;  %v2962_v34 = vld [vmem:[%s5545_s10] sm:$0xff] }
 0x418   : > { %3918 = vrot.lane.b32.xlu1 %v3917_v43, %s5605_s20  ;;  %3913 = vrot.lane.b32.xlu0 %v5036_v60, %s5604_s19  ;;  %s3329_s19 = sshll.u32 %s527_s30, 6 }
 0x419   : > { %s529_s18 = scalar_lea.vmem [#allocation5], %s3329_s19  ;;  %s4037_s19 = scalar_lea.vmem %s4036_s29, 2048 }
 0x41c   : > { %3928 = vrot.lane.b32.xlu1 %v3927_v52, %s5605_s20  ;;  %3923 = vrot.lane.b32.xlu0 %v3922_v54, %s5605_s20 }
 0x420   : > { %3938 = vrot.lane.b32.xlu1 %v3937_v19, %s5605_s20  ;;  %3933 = vrot.lane.b32.xlu0 %v3932_v55, %s5605_s20 }
 0x424   : > { %2936 = vperm.xlu1 %3706, %v2930_v38   ;;  %3943 = vrot.lane.b32.xlu0 %v3942_v4, %s5605_s20  ;;  %s3251_s20 = sshll.u32 %s529_s18, 4  ;;  %s5489_s20 = int_to_ptr.vmem [resolvable:$true] %s3251_s20 }
 0x425   : > { %s4031_s0 = scalar_lea.vmem %s5489_s20, 1024  ;;  %p4038_p0 = scmp.lt.s32.totalorder %s5489_s20, %s4036_s29 }
 0x426   : > { %p4032_p11 = scmp.ne.s32.totalorder %s5489_s20, %s4031_s0  ;;  %p4039_p1 = scmp.lt.s32.totalorder %s4037_s19, %s4031_s0 }
 0x428   : > { %2946 = vperm.xlu1 %3706, %v2932_v50   ;;  %2941 = vperm.xlu0 %3705, %v2931_v21   ;;  %p4033_p12 = pnand %p4032_p11, %p4236_p5  ;;  %p4040_p2 = por %p4039_p1, %p4038_p0 }
 0x42a   : > { %p4034_p13 = pneg %p4033_p12 }
 0x42c   : > { %2973 = vperm.xlu1 %3706, %v2963_v9   ;;  %2968 = vperm.xlu0 %3705, %v2962_v34   ;;  %p4041_p3 = pnand %p4040_p2, %p4034_p13 }
 0x430   : > { %2978 = vperm.xlu1 %3706, %v2964_v35   ;;  %2951 = vperm.xlu0 %3705, %v2933_v45  }
 0x434   : > { %2983 = vperm.xlu0 %3705, %v2965_v1  }
 0x436   : > { %v3709_v57 = vpop.permute.xlu1 %3708 }
 0x437   : > { %v3711_v60 = vunpack.i.h.bf16 %v3709_v57  ;;  %v3710_v23 = vunpack.i.l.bf16 %v3709_v57 }
 0x439   : > { %v1995_v17 = vsel %vm806_vm8, %v3710_v23, %v3711_v60 }
 0x43a   : > { %v3714_v27 = vpop.permute.xlu1 %3713  ;;  %v3729_v29 = vpop.permute.xlu0 %3728 }
 0x43b   : > { %v3716_v42 = vunpack.i.h.bf16 %v3714_v27  ;;  %v3715_v49 = vunpack.i.l.bf16 %v3714_v27  ;;  %v3731_v37 = vunpack.i.h.bf16 %v3729_v29  ;;  %v3730_v8 = vunpack.i.l.bf16 %v3729_v29 }
 0x43d   : > { %v1994_v44 = vsel %vm806_vm8, %v3715_v49, %v3710_v23  ;;  %v1996_v52 = vsel %vm806_vm8, %v3716_v42, %v3730_v8  ;;  %v1997_v43 = vsel %vm806_vm8, %v3730_v8, %v3731_v37 }
 0x43e   : > { %v2748_v4 = vpack.c.bf16 %v1996_v52, %v1994_v44  ;;  %v5252_v51 = vpop.permute.xlu1 %3718  ;;  %v5254_v54 = vpop.permute.xlu0 %3753  ;;  %v2749_v55 = vpack.c.bf16 %v1997_v43, %v1995_v17 }
 0x440   : > { %2828 = vmatprep.subr.bf16.mxu0 %v2749_v55 }
 0x441   : > { %2829 = vmatpush1.bf16.msra.mxu0 %v2748_v4 }
 0x442   : > { %v5256_v12 = vpop.permute.xlu1 %3723  ;;  %v3759_v62 = vpop.permute.xlu0 %3758 }
 0x443   : > { %v3761_v46 = vunpack.i.h.bf16 %v3759_v62  ;;  %v3760_v6 = vunpack.i.l.bf16 %v3759_v62  ;;  %v3721_v62 = vunpack.i.h.bf16 %v5252_v51 }
 0x445   : > { %v2099_v25 = vsel %vm910_vm9, %v3760_v6, %v3761_v46 }
 0x446   : > { %v3734_v10 = vpop.permute.xlu1 %3733  ;;  %v5258_v63 = vpop.permute.xlu0 %3763 }
 0x447   : > { %v3736_v32 = vunpack.i.h.bf16 %v3734_v10  ;;  %v3735_v3 = vunpack.i.l.bf16 %v3734_v10  ;;  %v3766_v34 = vunpack.i.h.bf16 %v5258_v63  ;;  %v3765_v45 = vunpack.i.l.bf16 %v5258_v63 }
 0x448   : > { %v3720_v10 = vunpack.i.l.bf16 %v5252_v51  ;;  %v3726_v51 = vunpack.i.h.bf16 %v5256_v12 }
 0x449   : > { %v2097_v5 = vsel %vm910_vm9, %v3735_v3, %v3736_v32  ;;  %v2201_v55 = vsel %vm1014_vm10, %v3765_v45, %v3766_v34 }
 0x44a   : > { %v3739_v13 = vpop.permute.xlu1 %3738  ;;  %v3769_v14 = vpop.permute.xlu0 %3768  ;;  %v2753_v61 = vpack.c.bf16 %v2099_v25, %v2097_v5 }
 0x44b   : > { %v3771_v26 = vunpack.i.h.bf16 %v3769_v14  ;;  %v3770_v39 = vunpack.i.l.bf16 %v3769_v14  ;;  %v3741_v0 = vunpack.i.h.bf16 %v3739_v13  ;;  %v3740_v58 = vunpack.i.l.bf16 %v3739_v13 }
 0x44d   : > { %v1999_v31 = vsel %vm806_vm8, %v3770_v39, %v3771_v26  ;;  %v2096_v30 = vsel %vm910_vm9, %v3740_v58, %v3735_v3  ;;  %v2098_v40 = vsel %vm910_vm9, %v3741_v0, %v3760_v6  ;;  %v3756_v3 = vunpack.i.h.bf16 %v5254_v54 }
 0x44e   : > { %v5260_v16 = vpop.permute.xlu1 %3743  ;;  %v3774_v15 = vpop.permute.xlu0 %3773  ;;  %v2752_v1 = vpack.c.bf16 %v2098_v40, %v2096_v30  ;;  %v3755_v26 = vunpack.i.l.bf16 %v5254_v54  ;;  %v3725_v6 = vunpack.i.l.bf16 %v5256_v12 }
 0x44f   : > { %v3775_v48 = vunpack.i.l.bf16 %v3774_v15  ;;  %v3776_v22 = vunpack.i.h.bf16 %v3774_v15  ;;  %v3746_v19 = vunpack.i.h.bf16 %v5260_v16  ;;  %v3745_v38 = vunpack.i.l.bf16 %v5260_v16 }
 0x450   : > { %v2270_v40 = vsel %vm1087_vm11, %v3725_v6, %v3720_v10 }
 0x451   : > { %v1998_v56 = vsel %vm806_vm8, %v3775_v48, %v3770_v39  ;;  %v2199_v42 = vsel %vm1014_vm10, %v3745_v38, %v3746_v19 }
 0x452   : > { %v5262_v20 = vpop.permute.xlu1 %3748  ;;  %v5264_v33 = vpop.permute.xlu0 %3778  ;;  %v2757_v14 = vpack.c.bf16 %v2201_v55, %v2199_v42 }
 0x453   : > { %v3751_v23 = vunpack.i.h.bf16 %v5262_v20  ;;  %v3750_v27 = vunpack.i.l.bf16 %v5262_v20  ;;  %v3780_v25 = vunpack.i.l.bf16 %v5264_v33 }
 0x455   : > { %v2198_v16 = vsel %vm1014_vm10, %v3750_v27, %v3745_v38  ;;  %v2200_v15 = vsel %vm1014_vm10, %v3751_v23, %v3765_v45 }
 0x456   : > { %v3789_v18 = vpop.permute.xlu1 %3788  ;;  %v5266_v28 = vpop.permute.xlu0 %3783 }
 0x457   : > { %v3791_v36 = vunpack.i.h.bf16 %v3789_v18  ;;  %v3790_v41 = vunpack.i.l.bf16 %v3789_v18  ;;  %v2756_v18 = vpack.c.bf16 %v2200_v15, %v2198_v16  ;;  %v3786_v34 = vunpack.i.h.bf16 %v5266_v28 }
 0x459   : > { %v2000_v11 = vsel %vm806_vm8, %v3776_v22, %v3790_v41  ;;  %v2001_v53 = vsel %vm806_vm8, %v3790_v41, %v3791_v36  ;;  %v2271_v36 = vsel %vm1087_vm11, %v3720_v10, %v3721_v62  ;;  %vm5611_vm8 = vmmov %vm5606_vm1 }
 0x45a   : > { %v2750_v47 = vpack.c.bf16 %v2000_v11, %v1998_v56  ;;  %v5273_v59 = vpop.permute.xlu1 %3813  ;;  %v2751_v7 = vpack.c.bf16 %v2001_v53, %v1999_v31  ;;  %v3794_v50 = vpop.permute.xlu0 %3793  ;;  %v2273_v53 = vsel %vm1087_vm11, %v3755_v26, %v3756_v3 }
 0x45b   : > { %v3796_v21 = vunpack.i.h.bf16 %v3794_v50  ;;  %v3795_v9 = vunpack.i.l.bf16 %v3794_v50  ;;  %v3816_v54 = vunpack.i.h.bf16 %v5273_v59  ;;  %v3815_v56 = vunpack.i.l.bf16 %v5273_v59 }
 0x45c   : > { %2830 = vmatprep.subr.bf16.mxu0 %v2751_v7  ;;  %v3781_v7 = vunpack.i.h.bf16 %v5264_v33  ;;  %v2272_v59 = vsel %vm1087_vm11, %v3726_v51, %v3755_v26  ;;  %v2761_v19 = vpack.c.bf16 %v2273_v53, %v2271_v36 }
 0x45d   : > { %2831 = vmatpush1.bf16.msra.mxu0 %v2750_v47  ;;  %v2101_v8 = vsel %vm910_vm9, %v3795_v9, %v3796_v21  ;;  %v2760_v33 = vpack.c.bf16 %v2272_v59, %v2270_v40  ;;  %v2276_v23 = vsel %vm1087_vm11, %v3786_v34, %v3815_v56 }
 0x45e   : > { %v3819_v35 = vpop.permute.xlu1 %3818  ;;  %2832 = vmatprep.subr.bf16.mxu0 %v2753_v61  ;;  %v3799_v29 = vpop.permute.xlu0 %3798 }
 0x45f   : > { %v3821_v57 = vunpack.i.h.bf16 %v3819_v35  ;;  %v3820_v60 = vunpack.i.l.bf16 %v3819_v35  ;;  %v3801_v49 = vunpack.i.h.bf16 %v3799_v29  ;;  %v3800_v37 = vunpack.i.l.bf16 %v3799_v29 }
 0x460   : > { %v3785_v35 = vunpack.i.l.bf16 %v5266_v28 }
 0x461   : > { %2833 = vmatpush1.bf16.msra.mxu0 %v2752_v1  ;;  %v2103_v44 = vsel %vm910_vm9, %v3820_v60, %v3821_v57  ;;  %v2102_v43 = vsel %vm910_vm9, %v3801_v49, %v3820_v60  ;;  %v2100_v4 = vsel %vm910_vm9, %v3800_v37, %v3795_v9  ;;  %v2277_v9 = vsel %vm1087_vm11, %v3815_v56, %v3816_v54  ;;  %vm5612_vm9 = vmmov %vm5606_vm1 }
 0x462   : > { %v5287_v52 = vpop.permute.xlu1 %3823  ;;  %v2755_v17 = vpack.c.bf16 %v2103_v44, %v2101_v8  ;;  %v2754_v63 = vpack.c.bf16 %v2102_v43, %v2100_v4  ;;  %v3804_v13 = vpop.permute.xlu0 %3803  ;;  %v2275_v60 = vsel %vm1087_vm11, %v3780_v25, %v3781_v7  ;;  %v2274_v28 = vsel %vm1087_vm11, %v3785_v35, %v3780_v25 }
 0x463   : > { %v3806_v20 = vunpack.i.h.bf16 %v3804_v13  ;;  %v3805_v32 = vunpack.i.l.bf16 %v3804_v13  ;;  %v3826_v45 = vunpack.i.h.bf16 %v5287_v52  ;;  %v3825_v1 = vunpack.i.l.bf16 %v5287_v52 }
 0x464   : > { %2834 = vmatprep.subr.bf16.mxu0 %v2755_v17  ;;  %v2763_v42 = vpack.c.bf16 %v2277_v9, %v2275_v60  ;;  %v2762_v8 = vpack.c.bf16 %v2276_v23, %v2274_v28  ;;  %vm5614_vm11 = vcmask 777216  }
 0x465   : > { %2835 = vmatpush1.bf16.msra.mxu0 %v2754_v63  ;;  %v2203_v58 = vsel %vm1014_vm10, %v3805_v32, %v3806_v20  ;;  %v2373_v52 = vsel %vm1191_vm12, %v3825_v1, %v3826_v45  ;;  %vm5616_vm0 = vmmov %vm5614_vm11 }
 0x466   : > { %v3834_v39 = vpop.permute.xlu1 %3833  ;;  %2836 = vmatprep.subr.bf16.mxu0 %v2757_v14  ;;  %v3809_v22 = vpop.permute.xlu0 %3808  ;;  %vm5617_vm15 = vmmov %vm5616_vm0 }
 0x467   : > { %v3836_v48 = vunpack.i.h.bf16 %v3834_v39  ;;  %v3835_v46 = vunpack.i.l.bf16 %v3834_v39  ;;  %v3811_v41 = vunpack.i.h.bf16 %v3809_v22  ;;  %v3810_v0 = vunpack.i.l.bf16 %v3809_v22  ;;  %vm5618_vm13 = vmmov %vm5616_vm0 }
 0x468   : > { %vm5619_vm14 = vmmov %vm5616_vm0 }
 0x469   : > { %v2205_v5 = vsel %vm1014_vm10, %v3835_v46, %v3836_v48  ;;  %2837 = vmatpush1.bf16.msra.mxu0 %v2756_v18  ;;  %v2204_v12 = vsel %vm1014_vm10, %v3811_v41, %v3835_v46  ;;  %v2202_v47 = vsel %vm1014_vm10, %v3810_v0, %v3805_v32  ;;  %vm5613_vm10 = vmmov %vm5606_vm1 }
 0x46a   : > { %v3839_v11 = vpop.permute.xlu1 %3838  ;;  %v2759_v31 = vpack.c.bf16 %v2205_v5, %v2203_v58  ;;  %v2758_v61 = vpack.c.bf16 %v2204_v12, %v2202_v47  ;;  %v3829_v30 = vpop.permute.xlu0 %3828 }
 0x46b   : > { %v3831_v38 = vunpack.i.h.bf16 %v3829_v30  ;;  %v3830_v50 = vunpack.i.l.bf16 %v3829_v30  ;;  %v3841_v27 = vunpack.i.h.bf16 %v3839_v11  ;;  %v3840_v29 = vunpack.i.l.bf16 %v3839_v11 }
 0x46c   : > { %2838 = vmatprep.subr.bf16.mxu0 %v2759_v31 }
 0x46d   : > { %2839 = vmatpush1.bf16.msra.mxu0 %v2758_v61  ;;  %v2375_v37 = vsel %vm1191_vm12, %v3830_v50, %v3831_v38  ;;  %v2372_v4 = vsel %vm1191_vm12, %v3840_v29, %v3825_v1  ;;  %v2374_v55 = vsel %vm1191_vm12, %v3841_v27, %v3830_v50 }
 0x46e   : > { %v3854_v21 = vpop.permute.xlu1 %3853  ;;  %2840 = vmatprep.subr.bf16.mxu0 %v2761_v19  ;;  %v3844_v57 = vpop.permute.xlu0 %3843  ;;  %v2765_v10 = vpack.c.bf16 %v2375_v37, %v2373_v52  ;;  %v2764_v20 = vpack.c.bf16 %v2374_v55, %v2372_v4 }
 0x46f   : > { %v3846_v44 = vunpack.i.h.bf16 %v3844_v57  ;;  %v3845_v17 = vunpack.i.l.bf16 %v3844_v57  ;;  %v3856_v13 = vunpack.i.h.bf16 %v3854_v21  ;;  %v3855_v32 = vunpack.i.l.bf16 %v3854_v21 }
 0x471   : > { %2841 = vmatpush1.bf16.msra.mxu0 %v2760_v33  ;;  %v2377_v39 = vsel %vm1191_vm12, %v3845_v17, %v3846_v44  ;;  %v2475_v54 = vsel %vm5607_vm2, %v3855_v32, %v3856_v13  ;;  %vm5621_vm2 = vmmov %vm5616_vm0 }
 0x472   : > { %v3864_v49 = vpop.permute.xlu1 %3863  ;;  %2842 = vmatprep.subr.bf16.mxu0 %v2763_v42  ;;  %v3849_v43 = vpop.permute.xlu0 %3848 }
 0x473   : > { %v3850_v62 = vunpack.i.l.bf16 %v3849_v43  ;;  %v3851_v14 = vunpack.i.h.bf16 %v3849_v43  ;;  %v3866_v41 = vunpack.i.h.bf16 %v3864_v49  ;;  %v3865_v0 = vunpack.i.l.bf16 %v3864_v49 }
 0x475   : > { %2843 = vmatpush1.bf16.msra.mxu0 %v2762_v8  ;;  %v2376_v3 = vsel %vm1191_vm12, %v3850_v62, %v3845_v17  ;;  %v2474_v47 = vsel %vm5609_vm5, %v3865_v0, %v3855_v32 }
 0x476   : > { %v3879_v63 = vpop.permute.xlu1 %3878  ;;  %2844 = vmatprep.subr.bf16.mxu0 %v2765_v10  ;;  %v3859_v26 = vpop.permute.xlu0 %3858 }
 0x477   : > { %v3881_v16 = vunpack.i.h.bf16 %v3879_v63  ;;  %v3880_v15 = vunpack.i.l.bf16 %v3879_v63  ;;  %v3861_v46 = vunpack.i.h.bf16 %v3859_v26  ;;  %v3860_v51 = vunpack.i.l.bf16 %v3859_v26 }
 0x479   : > { %v2378_v48 = vsel %vm1191_vm12, %v3851_v14, %v3880_v15  ;;  %v2379_v6 = vsel %vm1191_vm12, %v3880_v15, %v3881_v16  ;;  %2845 = vmatpush1.bf16.msra.mxu0 %v2764_v20  ;;  %v2477_v58 = vsel %vm5606_vm1, %v3860_v51, %v3861_v46  ;;  %v2476_v56 = vsel %vm5608_vm3, %v3866_v41, %v3860_v51  ;;  %vm5615_vm12 = vmmov %vm5614_vm11  ;;  %v3967_v41 = vld [vmem:[%s5543_s8] ss:$12 sps:$4 sm:$0xff]  }
 0x47a   : > { %v2766_v18 = vpack.c.bf16 %v2378_v48, %v2376_v3  ;;  %v3884_v22 = vpop.permute.xlu1 %3883  ;;  %v2767_v36 = vpack.c.bf16 %v2379_v6, %v2377_v39  ;;  %v3869_v5 = vpop.permute.xlu0 %3868  ;;  %v2769_v53 = vpack.c.bf16 %v2477_v58, %v2475_v54  ;;  %v2768_v61 = vpack.c.bf16 %v2476_v56, %v2474_v47  ;;  %vm5620_vm1 = vmmov %vm5616_vm0  ;;  %v3970_v47 = vld [vmem:[%s5543_s8 + $0x1c] ss:$12 sps:$4 sm:$0xff]  }
 0x47b   : > { %v3871_v11 = vunpack.i.h.bf16 %v3869_v5  ;;  %v3870_v31 = vunpack.i.l.bf16 %v3869_v5  ;;  %v3886_v50 = vunpack.i.h.bf16 %v3884_v22  ;;  %v3885_v21 = vunpack.i.l.bf16 %v3884_v22 }
 0x47c   : > { %2846 = vmatprep.subr.bf16.mxu0 %v2767_v36  ;;  %vm5622_vm3 = vcmask 769024  }
 0x47d   : > { %2847 = vmatpush1.bf16.msra.mxu0 %v2766_v18  ;;  %v2479_v19 = vsel %vm5610_vm7, %v3870_v31, %v3871_v11  ;;  %v2547_v49 = vsel %vm5615_vm12, %v3885_v21, %v3886_v50  ;;  %vm5623_vm5 = vmmov %vm5622_vm3  ;;  %v3972_v50 = vld [vmem:[%s5543_s8 + $0x18] ss:$12 sps:$4 sm:$0xff]  }
 0x47e   : > { %v3894_v12 = vpop.permute.xlu1 %3893  ;;  %2848 = vmatprep.subr.bf16.mxu0 %v2769_v53  ;;  %v3874_v30 = vpop.permute.xlu0 %3873  ;;  %vm5624_vm7 = vmmov %vm5622_vm3 }
 0x47f   : > { %v3896_v7 = vunpack.i.h.bf16 %v3894_v12  ;;  %v3895_v25 = vunpack.i.l.bf16 %v3894_v12  ;;  %v3876_v40 = vunpack.i.h.bf16 %v3874_v30  ;;  %v3875_v59 = vunpack.i.l.bf16 %v3874_v30  ;;  %vm5629_vm12 = vmmov %vm5622_vm3 }
 0x481   : > { %v2481_v38 = vsel %vm5611_vm8, %v3895_v25, %v3896_v7  ;;  %2849 = vmatpush1.bf16.msra.mxu0 %v2768_v61  ;;  %v2480_v35 = vsel %vm5612_vm9, %v3876_v40, %v3895_v25  ;;  %v2478_v33 = vsel %vm5613_vm10, %v3875_v59, %v3870_v31  ;;  %vm5625_vm8 = vmmov %vm5622_vm3 }
 0x482   : > { %v3899_v9 = vpop.permute.xlu1 %3898  ;;  %v2771_v34 = vpack.c.bf16 %v2481_v38, %v2479_v19  ;;  %v2770_v57 = vpack.c.bf16 %v2480_v35, %v2478_v33  ;;  %v3889_v60 = vpop.permute.xlu0 %3888  ;;  %vm5626_vm9 = vmmov %vm5622_vm3  ;;  %v3973_v35 = vld [vmem:[%s5543_s8 + $0x20] ss:$12 sps:$4 sm:$0xff]   ;;  %v3974_v33 = vld [vmem:[%s5543_s8 + $0x8] ss:$12 sps:$4 sm:$0xff]  }
 0x483   : > { %v3901_v45 = vunpack.i.h.bf16 %v3899_v9  ;;  %v3900_v1 = vunpack.i.l.bf16 %v3899_v9  ;;  %v3891_v27 = vunpack.i.h.bf16 %v3889_v60  ;;  %v3890_v29 = vunpack.i.l.bf16 %v3889_v60  ;;  %vm5627_vm10 = vmmov %vm5622_vm3 }
 0x484   : > { %2850 = vmatprep.subr.bf16.mxu0 %v2771_v34 }
 0x485   : > { %v2546_v23 = vsel %vm5614_vm11, %v3900_v1, %v3885_v21  ;;  %2851 = vmatpush1.bf16.msra.mxu0 %v2770_v57  ;;  %v2548_v37 = vsel %vm5616_vm0, %v3901_v45, %v3890_v29  ;;  %v2549_v44 = vsel %vm5617_vm15, %v3890_v29, %v3891_v27  ;;  %vm5628_vm11 = vmmov %vm5622_vm3 }
 0x486   : > { %v3909_v42 = vpop.permute.xlu1 %3908  ;;  %v2772_v17 = vpack.c.bf16 %v2548_v37, %v2546_v23  ;;  %v3904_v43 = vpop.permute.xlu0 %3903  ;;  %v2773_v52 = vpack.c.bf16 %v2549_v44, %v2547_v49 }
 0x487   : > { %v3911_v28 = vunpack.i.h.bf16 %v3909_v42  ;;  %v3910_v8 = vunpack.i.l.bf16 %v3909_v42  ;;  %v3906_v4 = vunpack.i.h.bf16 %v3904_v43  ;;  %v3905_v55 = vunpack.i.l.bf16 %v3904_v43 }
 0x488   : > { %2852 = vmatprep.subr.bf16.mxu0 %v2773_v52 }
 0x489   : > { %v2553_v62 = vsel %vm5618_vm13, %v3910_v8, %v3911_v28  ;;  %2853 = vmatpush1.bf16.msra.mxu0 %v2772_v17  ;;  %v2551_v63 = vsel %vm5619_vm14, %v3905_v55, %v3906_v4 }
 0x48a   : > { %v3919_v10 = vpop.permute.xlu1 %3918  ;;  %v3914_v13 = vpop.permute.xlu0 %3913  ;;  %v2775_v14 = vpack.c.bf16 %v2553_v62, %v2551_v63 }
 0x48b   : > { %v3916_v16 = vunpack.i.h.bf16 %v3914_v13  ;;  %v3915_v15 = vunpack.i.l.bf16 %v3914_v13  ;;  %v3921_v20 = vunpack.i.h.bf16 %v3919_v10  ;;  %v3920_v32 = vunpack.i.l.bf16 %v3919_v10 }
 0x48c   : > { %2854 = vmatprep.subr.bf16.mxu0 %v2775_v14 }
 0x48d   : > { %v2552_v26 = vsel %vm5620_vm1, %v3916_v16, %v3910_v8  ;;  %v2550_v39 = vsel %vm5621_vm2, %v3915_v15, %v3905_v55  ;;  %v2649_v58 = vsel %vm5623_vm5, %v3920_v32, %v3921_v20 }
 0x48e   : > { %v3929_v3 = vpop.permute.xlu1 %3928  ;;  %v2774_v51 = vpack.c.bf16 %v2552_v26, %v2550_v39  ;;  %v3924_v6 = vpop.permute.xlu0 %3923 }
 0x48f   : > { %v3931_v48 = vunpack.i.h.bf16 %v3929_v3  ;;  %v3930_v46 = vunpack.i.l.bf16 %v3929_v3  ;;  %v3926_v22 = vunpack.i.h.bf16 %v3924_v6  ;;  %v3925_v36 = vunpack.i.l.bf16 %v3924_v6 }
 0x490   : > { %2855 = vmatpush1.bf16.msra.mxu0 %v2774_v51 }
 0x491   : > { %v2648_v18 = vsel %vm5622_vm3, %v3930_v46, %v3920_v32  ;;  %v2650_v5 = vsel %vm5624_vm7, %v3931_v48, %v3925_v36  ;;  %v2651_v11 = vsel %vm5625_vm8, %v3925_v36, %v3926_v22 }
 0x492   : > { %v3939_v0 = vpop.permute.xlu1 %3938  ;;  %v2776_v31 = vpack.c.bf16 %v2650_v5, %v2648_v18  ;;  %v3934_v53 = vpop.permute.xlu0 %3933  ;;  %v2777_v12 = vpack.c.bf16 %v2651_v11, %v2649_v58 }
 0x493   : > { %v3941_v54 = vunpack.i.h.bf16 %v3939_v0  ;;  %v3940_v56 = vunpack.i.l.bf16 %v3939_v0  ;;  %v3936_v7 = vunpack.i.h.bf16 %v3934_v53  ;;  %v3935_v25 = vunpack.i.l.bf16 %v3934_v53  ;;  %2857 = vmatmul.mubr.bf16.vlgmr.msra.gmra.mrb[4].mxu0 %v3967_v41 }
 0x494   : > { %2877 = vmatprep.subr.bf16.mxu0 %v2777_v12  ;;  %3389 = vmatprep.subr.bf16.mxu1 %v2777_v12 }
 0x495   : > { %v2655_v61 = vsel %vm5626_vm9, %v3940_v56, %v3941_v54  ;;  %2878 = vmatpush1.bf16.msra.mxu0 %v2776_v31  ;;  %3391 = vmatpush1.bf16.msra.mxu1 %v2776_v31  ;;  %v2653_v30 = vsel %vm5627_vm10, %v3935_v25, %v3936_v7 }
 0x496   : > { %v3944_v40 = vpop.permute.xlu0 %3943  ;;  %v2779_v59 = vpack.c.bf16 %v2655_v61, %v2653_v30  ;;  %2866 = vmatprep.mubr.bf16.mxu0 %v3970_v47 }
 0x497   : > { %v3946_v19 = vunpack.i.h.bf16 %v3944_v40  ;;  %v3945_v38 = vunpack.i.l.bf16 %v3944_v40 }
 0x498   : > { %2879 = vmatprep.subr.bf16.mxu0 %v2779_v59  ;;  %3390 = vmatprep.subr.bf16.mxu1 %v2779_v59 }
 0x499   : > { %v2654_v21 = vsel %vm5628_vm11, %v3946_v19, %v3940_v56  ;;  %v2652_v9 = vsel %vm5629_vm12, %v3945_v38, %v3935_v25 }
 0x49a   : > { %v2778_v34 = vpack.c.bf16 %v2654_v21, %v2652_v9 }
 0x49b   : > { %2867 = vmatmul.mubr.bf16.gmra.mrb[8].mxu0 %v3972_v50 }
 0x49c   : > { %2880 = vmatpush1.bf16.msra.mxu0 %v2778_v34  ;;  %3392 = vmatpush1.bf16.msra.mxu1 %v2778_v34 }
 0x49d   : > { %2909 = vmatprep.mubr.bf16.mxu0 %v4095_v2 }
 0x49f   : > { %3366 = vmatmul.mubr.msk.bf16.vlgmr.msra.gmra.mrb[8].mxu1 %vm1242_vm6, %v3973_v35 }
 0x4a3   : > { %3365 = vmatmul.mubr.msk.bf16.vlgmr.msra.gmra.mrb[4].mxu0 %vm1242_vm6, %v3974_v33  ;;  %v2937_v45 = vpop.permute.xlu1 %2936 }
 0x4a7   : > { %v2942_v1 = vpop.permute.xlu0 %2941  ;;  %v2947_v57 = vpop.permute.xlu1 %2946 }
 0x4ab   : > { %v2969_v60 = vpop.permute.xlu0 %2968  ;;  %v2974_v29 = vpop.permute.xlu1 %2973 }
 0x4af   : > { %v2952_v37 = vpop.permute.xlu0 %2951  ;;  %v2979_v55 = vpop.permute.xlu1 %2978 }
 0x4b3   : > { %v2984_v20 = vpop.permute.xlu0 %2983 }
 0x56e   : > { %v2868_v23 = vpop.f32.mrb[8].mxu0 }
 0x56f   : > { %v2870_v27 = vpop.f32.mrb[9].mxu0 }
 0x570   : > { %v2872_v42 = vpop.f32.mrb[10].mxu0 }
 0x571   : > { %v2874_v49 = vpop.f32.mrb[11].mxu0 }
 0x572   : > { %v2921_v28 = vpop.f32.mrb[8].mxu1 }
 0x573   : > { %v2922_v2 = vadd.f32 %v2921_v28, %v2868_v23  ;;  %v2923_v8 = vpop.f32.mrb[9].mxu1 }
 0x574   : > { %v2924_v44 = vadd.f32 %v2923_v8, %v2870_v27  ;;  %v2925_v17 = vpop.f32.mrb[10].mxu1 }
 0x575   : > { %v2958_v43 = vmul.f32 %v2947_v57, %v2922_v2  ;;  %v2926_v52 = vadd.f32 %v2925_v17, %v2872_v42  ;;  %v2927_v4 = vpop.f32.mrb[11].mxu1 }
 0x576   : > { %v2959_v62 = vmul.f32 %v2947_v57, %v2924_v44  ;;  %v2928_v10 = vadd.f32 %v2927_v4, %v2874_v49  ;;  %v2911_v63 = vpop.f32.mrb[4].mxu0 }
 0x577   : > { %v5370_v13 = vadd.f32 %v2979_v55, %v2958_v43  ;;  %v2960_v14 = vmul.f32 %v2952_v37, %v2926_v52  ;;  %v2954_v16 = vmul.f32 %v2937_v45, %v2911_v63  ;;  %v2913_v15 = vpop.f32.mrb[5].mxu0  ;;  %v3113_v43 = vld [vmem:[%s5547_s12] sm:$0xff]  ;;  %v3114_v52 = vld [vmem:[%s5547_s12 + $0x8] sm:$0xff] }
 0x578   : > { %v5372_v32 = vadd.f32 %v2979_v55, %v2959_v62  ;;  %v2961_v3 = vmul.f32 %v2952_v37, %v2928_v10  ;;  %v2955_v26 = vmul.f32 %v2937_v45, %v2913_v15  ;;  %v2915_v39 = vpop.f32.mrb[6].mxu0 }
 0x579   : > { %v3010_v48 = vmul.f32 1.442695, %v5370_v13  ;;  %v2992_v46 = vadd.f32 %v2984_v20, %v2960_v14  ;;  %v2986_v51 = vadd.f32 %v2969_v60, %v2954_v16  ;;  %v2956_v6 = vmul.f32 %v2942_v1, %v2915_v39  ;;  %v2917_v18 = vpop.f32.mrb[7].mxu0  ;;  %v3116_v14 = vld [vmem:[%s5547_s12 + $0x18] sm:$0xff]  ;;  %v3115_v16 = vld [vmem:[%s5547_s12 + $0x10] sm:$0xff] }
 0x57a   : > { %v3012_v22 = vmul.f32 1.442695, %v5372_v32  ;;  %v2993_v36 = vadd.f32 %v2984_v20, %v2961_v3  ;;  %v2987_v41 = vadd.f32 %v2969_v60, %v2955_v26  ;;  %v2957_v0 = vmul.f32 %v2942_v1, %v2917_v18 }
 0x57b   : > { %3991 = vpow2.f32 %v3010_v48  ;;  %v3014_v58 = vmul.f32 1.442695, %v2992_v46  ;;  %v3002_v5 = vmul.f32 1.442695, %v2986_v51  ;;  %v2988_v11 = vadd.f32 %v2974_v29, %v2956_v6 }
 0x57c   : > { %3993 = vpow2.f32 %v3012_v22  ;;  %v3016_v54 = vmul.f32 1.442695, %v2993_v36  ;;  %v3004_v56 = vmul.f32 1.442695, %v2987_v41  ;;  %v2989_v31 = vadd.f32 %v2974_v29, %v2957_v0 }
 0x57d   : > { %3995 = vpow2.f32 %v3014_v58  ;;  %v3006_v53 = vmul.f32 1.442695, %v2988_v11  ;;  %vm2994_vm6 = vcmp.gt.f32.partialorder %v2986_v51, 0.0  ;;  %vm2995_vm0 = vcmp.gt.f32.partialorder %v2987_v41, 0.0 }
 0x57e   : > { %3997 = vpow2.f32 %v3016_v54  ;;  %v3008_v12 = vmul.f32 1.442695, %v2989_v31  ;;  %vm2996_vm15 = vcmp.gt.f32.partialorder %v2988_v11, 0.0  ;;  %vm3000_vm13 = vcmp.gt.f32.partialorder %v2992_v46, 0.0 }
 0x57f   : > { %3999 = vpow2.f32 %v3002_v5  ;;  %vm2997_vm14 = vcmp.gt.f32.partialorder %v2989_v31, 0.0  ;;  %vm3001_vm1 = vcmp.gt.f32.partialorder %v2993_v36, 0.0  ;;  %vm2998_vm2 = vcmp.gt.f32.partialorder %v5370_v13, 0.0  ;;  %v3134_v5 = vld [vmem:[%s5548_s13] sm:$0x1] }
 0x580   : > { %4001 = vpow2.f32 %v3004_v56  ;;  %vm2999_vm3 = vcmp.gt.f32.partialorder %v5372_v32, 0.0 }
 0x581   : > { %4003 = vpow2.f32 %v3006_v53  ;;  %v3137_v53 = vld [vmem:[%s5549_s14] sm:$0xff] }
 0x582   : > { %4005 = vpow2.f32 %v3008_v12 }
 0x585   : > { %v3992_v47 = vpop.eup %3991 }
 0x586   : > { %v3994_v7 = vpop.eup %3993  ;;  %v3371_v1 = vadd.f32 -1.0, %v3992_v47  ;;  %v3140_v47 = vld [vmem:[%s5549_s14 + $0x18] sm:$0xff] }
 0x587   : > { %v3996_v25 = vpop.eup %3995  ;;  %v3372_v57 = vadd.f32 -1.0, %v3994_v7  ;;  %v3139_v7 = vld [vmem:[%s5549_s14 + $0x10] sm:$0xff] }
 0x588   : > { %v3998_v61 = vpop.eup %3997  ;;  %v3373_v50 = vadd.f32 -1.0, %v3996_v25  ;;  %v5395_v37 = vsel %vm2998_vm2, %v5370_v13, %v3371_v1  ;;  %v3161_v1 = vld [vmem:[%s5550_s15] sm:$0xff] }
 0x589   : > { %v4000_v30 = vpop.eup %3999  ;;  %v3374_v21 = vadd.f32 -1.0, %v3998_v61  ;;  %v5398_v28 = vsel %vm2999_vm3, %v5372_v32, %v3372_v57 }
 0x58a   : > { %v4002_v40 = vpop.eup %4001  ;;  %v3367_v59 = vadd.f32 -1.0, %v4000_v30  ;;  %v5386_v29 = vsel %vm3000_vm13, %v2992_v46, %v3373_v50  ;;  %v3102_v8 = vadd.f32 %v5398_v28, %v5395_v37  ;;  %v3035_v50 = vld [vmem:[%s5546_s11 + $0x8] sm:$0xff] }
 0x58b   : > { %v4004_v19 = vpop.eup %4003  ;;  %v3368_v38 = vadd.f32 -1.0, %v4002_v40  ;;  %v5388_v42 = vsel %vm3001_vm1, %v2993_v36, %v3374_v21  ;;  %v3036_v21 = vld [vmem:[%s5546_s11 + $0x10] sm:$0xff] }
 0x58c   : > { %v4006_v9 = vpop.eup %4005  ;;  %v3369_v34 = vadd.f32 -1.0, %v4004_v19  ;;  %v5376_v35 = vsel %vm2994_vm6, %v2986_v51, %v3367_v59  ;;  %v3105_v2 = vadd.f32 %v5388_v42, %v5386_v29 }
 0x58d   : > { %v3370_v33 = vadd.f32 -1.0, %v4006_v9  ;;  %v5378_v45 = vsel %vm2995_vm0, %v2987_v41, %v3368_v38  ;;  %v3034_v9 = vld [vmem:[%s5546_s11] sm:$0xff] }
 0x58e   : > { %v3096_v60 = vadd.f32 %v5378_v45, %v5376_v35  ;;  %v5382_v23 = vsel %vm2996_vm15, %v2988_v11, %v3369_v34  ;;  %v3037_v34 = vld [vmem:[%s5546_s11 + $0x18] sm:$0xff] }
 0x58f   : > { %v5384_v27 = vsel %vm2997_vm14, %v2989_v31, %v3370_v33  ;;  %v3138_v31 = vld [vmem:[%s5549_s14 + $0x8] sm:$0xff] }
 0x590   : > { %3097 = vadd.xlane.f32.xlu1 %v3096_v60  ;;  %v3099_v49 = vadd.f32 %v5384_v27, %v5382_v23  ;;  %v3162_v33 = vld [vmem:[%s5550_s15 + $0x8] sm:$0xff] }
 0x592   : > { %3100 = vadd.xlane.f32.xlu0 %v3099_v49 }
 0x594   : > { %3106 = vadd.xlane.f32.xlu1 %v3105_v2 }
 0x596   : > { %3103 = vadd.xlane.f32.xlu0 %v3102_v8  ;;  %v3164_v8 = vld [vmem:[%s5550_s15 + $0x18] sm:$0xff] }
 0x61d   : > { %v3098_v44 = vpop.xlane.xlu1 %3097 }
 0x61e   : > { %v3109_v17 = vmul.f32 0.00390625, %v3098_v44  ;;  %v3163_v44 = vld [vmem:[%s5550_s15 + $0x10] sm:$0xff] }
 0x61f   : > { %v3101_v4 = vpop.xlane.xlu0 %3100 }
 0x620   : > { %v3110_v55 = vmul.f32 0.00390625, %v3101_v4  ;;  %v3117_v10 = vmul.f32 %v3113_v43, %v3109_v17 }
 0x621   : > { %v3107_v62 = vpop.xlane.xlu1 %3106 }
 0x622   : > { %v3118_v63 = vmul.f32 %v3114_v52, %v3110_v55  ;;  %v3112_v13 = vmul.f32 0.00390625, %v3107_v62  ;;  %v3121_v3 = vsel %vm857_vm4, %v3117_v10, 0.0 }
 0x623   : > { %v3104_v15 = vpop.xlane.xlu0 %3103 }
 0x624   : > { %v3122_v20 = vsel %vm857_vm4, %v3118_v63, 0.0  ;;  %v3111_v32 = vmul.f32 0.00390625, %v3104_v15  ;;  %v3120_v26 = vmul.f32 %v3116_v14, %v3112_v13 }
 0x625   : > { %v3123_v48 = vadd.f32 %v3122_v20, %v3121_v3 }
 0x626   : > { %v3119_v39 = vmul.f32 %v3115_v16, %v3111_v32  ;;  %v3126_v6 = vsel %vm857_vm4, %v3120_v26, 0.0 }
 0x628   : > { %v3124_v46 = vsel %vm857_vm4, %v3119_v39, 0.0 }
 0x629   : > { %v3125_v51 = vadd.f32 %v3124_v46, %v3123_v48 }
 0x62b   : > { %v3127_v18 = vadd.f32 %v3126_v6, %v3125_v51 }
 0x62d   : > { %v3128_v22 = vrot.slane %v3127_v18, 4 }
 0x62f   : > { %v3129_v36 = vadd.f32 %v3128_v22, %v3127_v18 }
 0x631   : > { %v3130_v41 = vrot.slane %v3129_v36, 2 }
 0x633   : > { %v3131_v0 = vadd.f32 %v3130_v41, %v3129_v36 }
 0x635   : > { %v3132_v58 = vrot.slane %v3131_v0, 1 }
 0x637   : > { %v3133_v54 = vadd.f32 %v3132_v58, %v3131_v0 }
 0x639   : > { %v3135_v56 = vadd.f32 %v3134_v5, %v3133_v54 }
 0x63b   : > { %v3136_v11 = vmax.f32 %v3135_v56, 0.0 }
 0x63d   : > { %v3144_v12 = vrot.slane %v3136_v11, %v4303_v24 }
 0x63f   : > { %v3146_v25 = vmul.f32 %v3144_v12, %v3138_v31  ;;  %v3145_v61 = vmul.f32 %v3144_v12, %v3137_v53  ;;  %v3148_v59 = vmul.f32 %v3144_v12, %v3140_v47  ;;  %v3147_v19 = vmul.f32 %v3144_v12, %v3139_v7 }
 0x641   : > { %v3152_v30 = vsel %vm857_vm4, %v3146_v25, 0.0  ;;  %v3149_v40 = vsel %vm857_vm4, %v3145_v61, 0.0  ;;  %v3158_v24 = vsel %vm857_vm4, %v3148_v59, 0.0  ;;  %v3155_v38 = vsel %vm857_vm4, %v3147_v19, 0.0 }
 0x642   : > { %3153 = vadd.xlane.f32.xlu1 %v3152_v30  ;;  %3150 = vadd.xlane.f32.xlu0 %v3149_v40 }
 0x646   : > { %3159 = vadd.xlane.f32.xlu1 %v3158_v24  ;;  %3156 = vadd.xlane.f32.xlu0 %v3155_v38 }
 0x657   : > { %3045 = vperm.xlu1 %3706, %v3035_v50  }
 0x65b   : > { %3050 = vperm.xlu1 %3706, %v3036_v21  }
 0x65c   : > { %3040 = vperm.xlu0 %3705, %v3034_v9  }
 0x660   : > { %3055 = vperm.xlu0 %3705, %v3037_v34  }
 0x6cf   : > { %v3154_v57 = vpop.xlane.xlu1 %3153  ;;  %v3151_v60 = vpop.xlane.xlu0 %3150 }
 0x6d0   : > { %v3166_v49 = vadd.f32 %v3162_v33, %v3154_v57  ;;  %v3165_v2 = vadd.f32 %v3161_v1, %v3151_v60 }
 0x6d2   : > { %v3378_v17 = vmul.f32 -1.442695, %v3166_v49  ;;  %v3377_v43 = vmul.f32 -1.442695, %v3165_v2 }
 0x6d3   : > { %v3160_v52 = vpop.xlane.xlu1 %3159  ;;  %v3157_v4 = vpop.xlane.xlu0 %3156 }
 0x6d4   : > { %4007 = vpow2.f32 %v3378_v17  ;;  %v3168_v55 = vadd.f32 %v3164_v8, %v3160_v52  ;;  %v3167_v62 = vadd.f32 %v3163_v44, %v3157_v4 }
 0x6d5   : > { %4009 = vpow2.f32 %v3377_v43 }
 0x6d6   : > { %v3380_v10 = vmul.f32 -1.442695, %v3168_v55  ;;  %v3379_v63 = vmul.f32 -1.442695, %v3167_v62 }
 0x6d7   : > { %v3046_v6 = vpop.permute.xlu1 %3045 }
 0x6d8   : > { %4011 = vpow2.f32 %v3380_v10  ;;  %v3060_v41 = vmul.f32 %v3046_v6, %v5382_v23  ;;  %v3061_v0 = vmul.f32 %v3046_v6, %v5384_v27 }
 0x6d9   : > { %4013 = vpow2.f32 %v3379_v63 }
 0x6db   : > { %v3041_v18 = vpop.permute.xlu0 %3040  ;;  %v3051_v58 = vpop.permute.xlu1 %3050 }
 0x6dc   : > { %v3058_v22 = vmul.f32 %v3041_v18, %v5376_v35  ;;  %v3059_v36 = vmul.f32 %v3041_v18, %v5378_v45  ;;  %v3062_v11 = vmul.f32 %v3051_v58, %v5395_v37  ;;  %v3063_v31 = vmul.f32 %v3051_v58, %v5398_v28 }
 0x6de   : > { %v4008_v13 = vpop.eup %4007  ;;  %v3066_v5 = vadd.f32 %v3060_v41, %v3058_v22  ;;  %v3075_v54 = vadd.f32 %v3061_v0, %v3059_v36 }
 0x6df   : > { %v4010_v14 = vpop.eup %4009  ;;  %v3182_v16 = vadd.f32 1.0, %v4008_v13  ;;  %v3056_v56 = vpop.permute.xlu0 %3055 }
 0x6e0   : > { %v3181_v15 = vadd.f32 1.0, %v4010_v14  ;;  %v3067_v53 = vadd.f32 %v3066_v5, %v3062_v11  ;;  %v3064_v12 = vmul.f32 %v3056_v56, %v5386_v29  ;;  %v3076_v47 = vadd.f32 %v3075_v54, %v3063_v31 }
 0x6e1   : > { %4015 = vrcp.f32 %v3182_v16  ;;  %v3065_v7 = vmul.f32 %v3056_v56, %v5388_v42 }
 0x6e2   : > { %v4012_v20 = vpop.eup %4011  ;;  %4017 = vrcp.f32 %v3181_v15  ;;  %v3068_v25 = vadd.f32 %v3067_v53, %v3064_v12 }
 0x6e3   : > { %v4014_v32 = vpop.eup %4013  ;;  %v3184_v3 = vadd.f32 1.0, %v4012_v20  ;;  %v3077_v61 = vadd.f32 %v3076_v47, %v3065_v7 }
 0x6e4   : > { %v3183_v26 = vadd.f32 1.0, %v4014_v32  ;;  %v3069_v30 = vrot.slane %v3068_v25, 4 }
 0x6e5   : > { %4019 = vrcp.f32 %v3184_v3  ;;  %v3078_v40 = vrot.slane %v3077_v61, 4 }
 0x6e6   : > { %4021 = vrcp.f32 %v3183_v26  ;;  %v3070_v59 = vadd.f32 %v3069_v30, %v3068_v25 }
 0x6e7   : > { %v3079_v19 = vadd.f32 %v3078_v40, %v3077_v61 }
 0x6e8   : > { %v3071_v24 = vrot.slane %v3070_v59, 2 }
 0x6e9   : > { %v3080_v38 = vrot.slane %v3079_v19, 2 }
 0x6ea   : > { %v3072_v50 = vadd.f32 %v3071_v24, %v3070_v59 }
 0x6eb   : > { %v4016_v39 = vpop.eup %4015  ;;  %v3081_v21 = vadd.f32 %v3080_v38, %v3079_v19 }
 0x6ec   : > { %v4018_v48 = vpop.eup %4017  ;;  %3200 = vperm.xlu0 %3705, %v4016_v39   ;;  %v3073_v9 = vrot.slane %v3072_v50, 1 }
 0x6ed   : > { %3195 = vperm.xlu1 %3706, %v4018_v48   ;;  %v3082_v34 = vrot.slane %v3081_v21, 1 }
 0x6ee   : > { %v3074_v33 = vadd.f32 %v3073_v9, %v3072_v50 }
 0x6ef   : > { %v4020_v46 = vpop.eup %4019  ;;  %v3083_v1 = vadd.f32 %v3082_v34, %v3081_v21 }
 0x6f0   : > { %v4022_v51 = vpop.eup %4021  ;;  %3210 = vperm.xlu0 %3705, %v4020_v46   ;;  %v3375_v57 = vmul.f32 -1.442695, %v3074_v33 }
 0x6f1   : > { %3205 = vperm.xlu1 %3706, %v4022_v51   ;;  %v3376_v60 = vmul.f32 -1.442695, %v3083_v1 }
 0x6f2   : > { %4023 = vpow2.f32 %v3375_v57 }
 0x6f3   : > { %4025 = vpow2.f32 %v3376_v60 }
 0x6fc   : > { %v4024_v49 = vpop.eup %4023 }
 0x6fd   : > { %v4026_v2 = vpop.eup %4025  ;;  %v3090_v8 = vadd.f32 1.0, %v4024_v49 }
 0x6fe   : > { %v3091_v44 = vadd.f32 1.0, %v4026_v2 }
 0x6ff   : > { %4027 = vrcp.f32 %v3090_v8 }
 0x700   : > { %4029 = vrcp.f32 %v3091_v44 }
 0x709   : > { %v4028_v17 = vpop.eup %4027 }
 0x70a   : > { %v4030_v43 = vpop.eup %4029 }
 0x76b   : > { %v3201_v52 = vpop.permute.xlu0 %3200 }
 0x76c   : > { %v3196_v4 = vpop.permute.xlu1 %3195  ;;  %v3215_v55 = vadd.f32 %v4028_v17, %v3201_v52  ;;  %v3216_v62 = vadd.f32 %v4030_v43, %v3201_v52 }
 0x76d   : > { %v3213_v10 = vadd.f32 %v4028_v17, %v3196_v4  ;;  %v3214_v63 = vadd.f32 %v4030_v43, %v3196_v4 }
 0x76e   : > { %v3223_v13 = vmul.f32 %v3215_v55, %v5382_v23  ;;  %v3224_v14 = vmul.f32 %v3216_v62, %v5384_v27 }
 0x76f   : > { %v3221_v16 = vmul.f32 %v3213_v10, %v5376_v35  ;;  %v3222_v15 = vmul.f32 %v3214_v63, %v5378_v45  ;;  %v3211_v20 = vpop.permute.xlu0 %3210 }
 0x770   : > { %3231 = vst [vmem:[%s529_s18 + $0x10] sm:$0xff] %v3223_v13  ;;  %3232 = vst [vmem:[%s529_s18 + $0x18] sm:$0xff] %v3224_v14  ;;  %v3206_v32 = vpop.permute.xlu1 %3205  ;;  %v3219_v3 = vadd.f32 %v4028_v17, %v3211_v20  ;;  %v3220_v26 = vadd.f32 %v4030_v43, %v3211_v20 }
 0x771   : > { %3229 = vst [vmem:[%s529_s18] sm:$0xff] %v3221_v16  ;;  %3230 = vst [vmem:[%s529_s18 + $0x8] sm:$0xff] %v3222_v15  ;;  %v3217_v23 = vadd.f32 %v4028_v17, %v3206_v32  ;;  %v3218_v39 = vadd.f32 %v4030_v43, %v3206_v32 }
 0x772   : > { %v3227_v27 = vmul.f32 %v3219_v3, %v5386_v29  ;;  %v3228_v35 = vmul.f32 %v3220_v26, %v5388_v42 }
 0x773   : > { %v3225_v45 = vmul.f32 %v3217_v23, %v5395_v37  ;;  %v3226_v48 = vmul.f32 %v3218_v39, %v5398_v28 }
 0x774   : > { %3235 = vst [vmem:[%s529_s18 + $0x30] sm:$0xff] %v3227_v27  ;;  %3236 = vst [vmem:[%s529_s18 + $0x38] sm:$0xff] %v3228_v35 }
 0x775   : > { %3233 = vst [vmem:[%s529_s18 + $0x20] sm:$0xff] %v3225_v45  ;;  %3234 = vst [vmem:[%s529_s18 + $0x28] sm:$0xff] %v3226_v48 }
 0x776   : > { %4044 = shalt.err (!%p4041_p3)
}
 0x777   : > { %s4045_s30 = scalar_lea.hbm %s5485_s27, 1024  ;;  %s4049_s26 = scalar_lea.hbm %s5631_s25, 2048 }
 0x778   : > { %p4046_p4 = scmp.ne.s32.totalorder %s5485_s27, %s4045_s30  ;;  %p4050_p9 = scmp.lt.u32.totalorder %s5485_s27, %s5631_s25 }
 0x779   : > { %p4051_p10 = scmp.lt.u32.totalorder %s4049_s26, %s4045_s30  ;;  %p4053_p12 = scmp.lt.u32.totalorder %s4045_s30, %s5485_s27 }
 0x77a   : > { %p4047_p7 = pnand %p4046_p4, %p4236_p5 }
 0x77b   : > { %p4052_p11 = por %p4051_p10, %p4050_p9 }
 0x77c   : > { %p4048_p8 = pneg %p4047_p7 }
 0x77d   : > { %p4054_p13 = por %p4053_p12, %p4052_p11 }
 0x77f   : > { %p4055_p0 = pnand %p4054_p13, %p4048_p8 }
 0x781   : > { %4058 = shalt.err (!%p4055_p0)
}
 0x782   : > { %s4112_s0 = smov 256  }
 0x783   : > { %3409 = dma.vmem_to_hbm [thread:$0]  (%p4236_p5), %s5489_s20, 1024, %s5485_s27, %s5493_s21, %s4112_s0, %s4112_s0, %s4099_s28  }
 0x784 PF: > { %s5632_s29 = sld [smem:[#allocation10_spill]]  ;;  %s5633_s19 = sld [smem:[#allocation8_spill]] }
 0x78a   : > { %p3415_p1 = scmp.ge.s32.totalorder %s5632_s29, 2  ;;  %s3266_s18 = sand.u32 1, %s5633_s19  }
 0x78b   : > { %s3267_s30 = scalar_lea.sflag [#allocation6], %s3266_s18 }
 0x78c   : > { %p3412_p2 = pnand %p3415_p1, %p4240_p6 }
 0x78e   : > { %4076 = dma.done.wait (!%p3412_p2), %s3267_s30, 1024  }
 0x78f   : > { %4078 = vsyncadd (!%p3412_p2), %s3267_s30, 4294966272  ;;  %s5635_s24 = sld [smem:[#allocation11_spill]]  ;;  %s5636_s26 = sld [smem:[#allocation9_spill]] }
 0x790   : > { %s5637_s23 = sld [smem:[#allocation12_spill]]  ;;  %s5638_s21 = smov %s4085_s22 }
 0x795   : > { %p26_p3 = scmp.ge.s32.totalorder %s5635_s24, 4   ;;  %s5639_s22 = smov %s5636_s26 }
 0x797   :  { %28 = sbr.rel (!%p26_p3) target bundleno = 6 (0x6), region = 122 }
 0x79e   :  { %3272 = vsyncpa [#allocation6], 1 }
 0x79f   :  { %3274 = vsyncpa [#allocation6 + $0x1], 1 }

</bundles_post_ra>
